<compile_context>
chip_gen: v7x
topology: tpu7x:2x2x1
jax: 0.10.0
libtpu: 0.0.40
codegen_flags: <defaults>
</compile_context>

<pallas_src>
import math

import jax
import jax.numpy as jnp
from jax.experimental import pallas as pl
from jax.experimental.pallas import tpu as pltpu


def _mlp_kernel(x_ref, w1_ref, b1_ref, w2_ref, b2_ref, o_ref):
    # First linear: MXU matmul with f32 accumulation; bias + ReLU in f32.
    h = jnp.dot(x_ref[...], w1_ref[...], preferred_element_type=jnp.float32)
    h = jnp.maximum(h + b1_ref[...], 0.0)
    # Second linear: feed the activation back at the weight dtype (bf16 when
    # compute_dtype=bf16) so both matmuls run at full MXU rate.
    y = jnp.dot(h.astype(w2_ref.dtype), w2_ref[...],
                preferred_element_type=jnp.float32)
    o_ref[...] = (y + b2_ref[...]).astype(o_ref.dtype)


def _build_call(B, in_dim, hidden_dim, out_dim, block_b,
                x_dtype, w_dtype, out_dtype, *, single_buffer_weights):
    grid = (pl.cdiv(B, block_b),)

    # Weights/biases have a constant index_map (resident across the grid);
    # single-buffering them frees one copy of W1+W2 of VMEM that can be
    # reinvested in a larger batch tile (matters most on v7x's 64 MiB VMEM).
    resident = {"pipeline_mode": pl.Buffered(1)} if single_buffer_weights else {}

    in_specs = [
        pl.BlockSpec((block_b, in_dim), lambda i: (i, 0)),                  # x (streamed)
        pl.BlockSpec((in_dim, hidden_dim), lambda i: (0, 0), **resident),   # W1 (resident)
        pl.BlockSpec((1, hidden_dim), lambda i: (0, 0), **resident),        # b1
        pl.BlockSpec((hidden_dim, out_dim), lambda i: (0, 0), **resident),  # W2 (resident)
        pl.BlockSpec((1, out_dim), lambda i: (0, 0), **resident),           # b2
    ]
    out_specs = pl.BlockSpec((block_b, out_dim), lambda i: (i, 0))

    itm = jnp.dtype(w_dtype).itemsize
    # VMEM budget: double-buffered x/y tiles + resident weights + f32 hidden
    # intermediate + biases, with 2x headroom; clamped to a range valid on all
    # chips (v5e/v6e: 128 MiB physical, v7x: 64 MiB physical).
    est = (2 * block_b * (in_dim + out_dim) * itm                       # x/y double buffers
           + 2 * (in_dim * hidden_dim + hidden_dim * out_dim) * itm     # weights
           + block_b * hidden_dim * 4                                   # h intermediate (f32)
           + 2 * (hidden_dim + out_dim) * 4)                            # biases
    vmem_limit = int(min(56 * 1024 * 1024, max(16 * 1024 * 1024, 2 * est)))

    flops = 2 * B * (in_dim * hidden_dim + hidden_dim * out_dim)
    bytes_accessed = (B * in_dim * jnp.dtype(x_dtype).itemsize
                      + (in_dim * hidden_dim + hidden_dim * out_dim) * itm
                      + (hidden_dim + out_dim) * 4
                      + B * out_dim * jnp.dtype(out_dtype).itemsize)

    return pl.pallas_call(
        _mlp_kernel,
        out_shape=jax.ShapeDtypeStruct((B, out_dim), out_dtype),
        grid_spec=pltpu.PrefetchScalarGridSpec(
            num_scalar_prefetch=0,
            grid=grid,
            in_specs=in_specs,
            out_specs=out_specs,
        ),
        compiler_params=pltpu.CompilerParams(
            # batch tiles are independent -> shard across v7x's 2 TensorCores
            dimension_semantics=("parallel",),
            vmem_limit_bytes=vmem_limit),
        cost_estimate=pl.CostEstimate(
            flops=flops, transcendentals=0, bytes_accessed=bytes_accessed),
    )


def pro_mlp_for_simclr(x, w1, b1, w2, b2, *, block_b=256, compute_dtype=None):
    """Fused MLP forward: relu(x @ w1 + b1) @ w2 + b2.

    x: [B, in_dim] -> [B, out_dim].
    block_b: batch tile (default 256 = multiple of 128 for v5e MXU and 256 for
      v6e/v7x), so grid > 1 for real batches -> pipelined DMA + megacore.
    compute_dtype=jnp.bfloat16 runs both matmuls in bf16 (f32 accumulation;
      bias + ReLU stay in f32).
    """
    B, in_dim = x.shape
    hidden_dim = w1.shape[1]
    out_dim = w2.shape[1]
    out_dtype = x.dtype  # output keeps the caller's dtype

    if compute_dtype is not None:
        x = x.astype(compute_dtype)
        w1 = w1.astype(compute_dtype)
        w2 = w2.astype(compute_dtype)
    b1 = b1.astype(jnp.float32)
    b2 = b2.astype(jnp.float32)

    # Fixed batch tile (not the whole batch): keeps tiles inside scoped VMEM
    # and gives the pipeline/megacore multiple grid steps.  Clamp for tiny
    # batches; a partial final tile is padded by Pallas (padded rows are
    # computed on garbage but never written back).
    block_b = int(min(block_b, B))
    if block_b != B:
        block_b = max(8, (block_b // 8) * 8)

    fn = _build_call(B, in_dim, hidden_dim, out_dim, block_b,
                     x.dtype, w1.dtype, out_dtype, single_buffer_weights=True)
    try:
        return fn(x, w1, b1, w2, b2)
    except Exception:
        # Fallback if pl.Buffered(1) is rejected by this jax/Mosaic version:
        # default (double) buffering for the resident weights.
        fn = _build_call(B, in_dim, hidden_dim, out_dim, block_b,
                         x.dtype, w1.dtype, out_dtype,
                         single_buffer_weights=False)
        return fn(x, w1, b1, w2, b2)


def init_params(key, in_dim, hidden_dim, out_dim, dtype=jnp.float32):
    """Deterministic init mimicking PyTorch nn.Linear (uniform +/- 1/sqrt(fan_in))."""
    k1, k2, k3, k4 = jax.random.split(key, 4)
    bound1 = 1.0 / math.sqrt(in_dim)
    bound2 = 1.0 / math.sqrt(hidden_dim)
    # Stored as [fan_in, fan_out] (transpose of PyTorch's [out, in]).
    w1 = jax.random.uniform(k1, (in_dim, hidden_dim), dtype, -bound1, bound1)
    b1 = jax.random.uniform(k2, (1, hidden_dim), dtype, -bound1, bound1)
    w2 = jax.random.uniform(k3, (hidden_dim, out_dim), dtype, -bound2, bound2)
    b2 = jax.random.uniform(k4, (1, out_dim), dtype, -bound2, bound2)
    return w1, b1, w2, b2


if __name__ == "__main__":
    in_dim, hidden_dim, out_dim = 256, 512, 256   # module defaults
    batch = 512                                   # small, but enough for grid=(2,)

    key = jax.random.PRNGKey(0)
    kx, kp = jax.random.split(key)
    x = jax.random.normal(kx, (batch, in_dim), jnp.float32)
    w1, b1, w2, b2 = init_params(kp, in_dim, hidden_dim, out_dim)

    # Pure-JAX reference (same math as the PyTorch forward).
    ref = jnp.maximum(x @ w1 + b1, 0.0) @ w2 + b2

    # f32 path.
    y = pro_mlp_for_simclr(x, w1, b1, w2, b2, block_b=256)
    jax.block_until_ready(y)
    assert y.shape == (batch, out_dim)
    assert jnp.allclose(y, ref, atol=1e-3, rtol=1e-3)

    # bf16-matmul path (f32 accumulation) -> looser tolerance vs f32 reference.
    y_bf16 = pro_mlp_for_simclr(x, w1, b1, w2, b2, block_b=256,
                                compute_dtype=jnp.bfloat16)
    jax.block_until_ready(y_bf16)
    assert y_bf16.shape == (batch, out_dim)
    assert jnp.allclose(y_bf16, ref, atol=5e-2, rtol=5e-2)

    print("KERNEL_OK")
</pallas_src>

<mosaic_0001>
module attributes {stable_mosaic.version = 11 : i64} {
  func.func @_mlp_kernel(%arg0: i32, %arg1: memref<256x256xf32, #tpu.memory_space<vmem>>, %arg2: memref<256x512xf32, #tpu.memory_space<vmem>>, %arg3: memref<1x512xf32, #tpu.memory_space<vmem>>, %arg4: memref<512x256xf32, #tpu.memory_space<vmem>>, %arg5: memref<1x256xf32, #tpu.memory_space<vmem>>, %arg6: memref<256x256xf32, #tpu.memory_space<vmem>>) attributes {dimension_semantics = [#tpu.dimension_semantics<parallel>], iteration_bounds = array<i64: 2>, scalar_prefetch = 0 : i64, scratch_operands = 0 : i64, tpu.core_type = #tpu.core_type<tc>, window_params = [{transform_indices = @transform_0, window_bounds = array<i64: 256, 256>}, {pipeline_mode = #tpu.pipeline_mode<synchronous>, transform_indices = @transform_1, window_bounds = array<i64: 256, 512>}, {pipeline_mode = #tpu.pipeline_mode<synchronous>, transform_indices = @transform_2, window_bounds = array<i64: 1, 512>}, {pipeline_mode = #tpu.pipeline_mode<synchronous>, transform_indices = @transform_3, window_bounds = array<i64: 512, 256>}, {pipeline_mode = #tpu.pipeline_mode<synchronous>, transform_indices = @transform_4, window_bounds = array<i64: 1, 256>}, {transform_indices = @transform_5, window_bounds = array<i64: 256, 256>}]} {
    %c0 = arith.constant 0 : index
    %c0_0 = arith.constant 0 : index
    %0 = vector.load %arg1[%c0, %c0_0] : memref<256x256xf32, #tpu.memory_space<vmem>>, vector<256x256xf32>
    %c0_1 = arith.constant 0 : index
    %c0_2 = arith.constant 0 : index
    %1 = vector.load %arg2[%c0_1, %c0_2] : memref<256x512xf32, #tpu.memory_space<vmem>>, vector<256x512xf32>
    %cst = arith.constant dense<0.000000e+00> : vector<256x512xf32>
    %2 = tpu.matmul %0, %1, %cst {dimension_numbers = #tpu.dot_dimension_numbers<[1], [0], [0], [1], [0, 0, 1, 1], [], []>} : vector<256x256xf32>, vector<256x512xf32>, vector<256x512xf32> -> vector<256x512xf32>
    %c0_3 = arith.constant 0 : index
    %c0_4 = arith.constant 0 : index
    %3 = vector.load %arg3[%c0_3, %c0_4] : memref<1x512xf32, #tpu.memory_space<vmem>>, vector<1x512xf32>
    %4 = vector.broadcast %3 : vector<1x512xf32> to vector<256x512xf32>
    %5 = arith.addf %2, %4 : vector<256x512xf32>
    %cst_5 = arith.constant 0.000000e+00 : f32
    %6 = vector.broadcast %cst_5 : f32 to vector<256x512xf32>
    %7 = arith.maximumf %5, %6 : vector<256x512xf32>
    %c0_6 = arith.constant 0 : index
    %c0_7 = arith.constant 0 : index
    %8 = vector.load %arg4[%c0_6, %c0_7] : memref<512x256xf32, #tpu.memory_space<vmem>>, vector<512x256xf32>
    %cst_8 = arith.constant dense<0.000000e+00> : vector<256x256xf32>
    %9 = tpu.matmul %7, %8, %cst_8 {dimension_numbers = #tpu.dot_dimension_numbers<[1], [0], [0], [1], [0, 0, 1, 1], [], []>} : vector<256x512xf32>, vector<512x256xf32>, vector<256x256xf32> -> vector<256x256xf32>
    %c0_9 = arith.constant 0 : index
    %c0_10 = arith.constant 0 : index
    %10 = vector.load %arg5[%c0_9, %c0_10] : memref<1x256xf32, #tpu.memory_space<vmem>>, vector<1x256xf32>
    %11 = vector.broadcast %10 : vector<1x256xf32> to vector<256x256xf32>
    %12 = arith.addf %9, %11 : vector<256x256xf32>
    %c0_11 = arith.constant 0 : index
    %c0_12 = arith.constant 0 : index
    %13 = vector.load %arg6[%c0_11, %c0_12] : memref<256x256xf32, #tpu.memory_space<vmem>>, vector<256x256xf32>
    tpu.vector_store %arg6[%c0_11, %c0_12], %12 {strides = array<i32>} : memref<256x256xf32, #tpu.memory_space<vmem>>, vector<256x256xf32>,
    return
  }
  func.func @transform_0(%arg0: i32) -> (i32, i32) {
    %c0_i32 = arith.constant 0 : i32
    %c0_i32_0 = arith.constant 0 : i32
    return %arg0, %c0_i32 : i32, i32
  }
  func.func @transform_1(%arg0: i32) -> (i32, i32) {
    %c0_i32 = arith.constant 0 : i32
    %c0_i32_0 = arith.constant 0 : i32
    %c0_i32_1 = arith.constant 0 : i32
    return %c0_i32, %c0_i32_0 : i32, i32
  }
  func.func @transform_2(%arg0: i32) -> (i32, i32) {
    %c0_i32 = arith.constant 0 : i32
    %c0_i32_0 = arith.constant 0 : i32
    %c0_i32_1 = arith.constant 0 : i32
    return %c0_i32, %c0_i32_0 : i32, i32
  }
  func.func @transform_3(%arg0: i32) -> (i32, i32) {
    %c0_i32 = arith.constant 0 : i32
    %c0_i32_0 = arith.constant 0 : i32
    %c0_i32_1 = arith.constant 0 : i32
    return %c0_i32, %c0_i32_0 : i32, i32
  }
  func.func @transform_4(%arg0: i32) -> (i32, i32) {
    %c0_i32 = arith.constant 0 : i32
    %c0_i32_0 = arith.constant 0 : i32
    %c0_i32_1 = arith.constant 0 : i32
    return %c0_i32, %c0_i32_0 : i32, i32
  }
  func.func @transform_5(%arg0: i32) -> (i32, i32) {
    %c0_i32 = arith.constant 0 : i32
    %c0_i32_0 = arith.constant 0 : i32
    return %arg0, %c0_i32 : i32, i32
  }
}

module attributes {stable_mosaic.version = 11 : i64} {
  func.func @_mlp_kernel(%arg0: i32, %arg1: memref<256x256xf32, #tpu.memory_space<vmem>>, %arg2: memref<256x512xf32, #tpu.memory_space<vmem>>, %arg3: memref<1x512xf32, #tpu.memory_space<vmem>>, %arg4: memref<512x256xf32, #tpu.memory_space<vmem>>, %arg5: memref<1x256xf32, #tpu.memory_space<vmem>>, %arg6: memref<256x256xf32, #tpu.memory_space<vmem>>) attributes {dimension_semantics = [#tpu.dimension_semantics<parallel>], iteration_bounds = array<i64: 2>, scalar_prefetch = 0 : i64, scratch_operands = 0 : i64, tpu.core_type = #tpu.core_type<tc>, window_params = [{transform_indices = @transform_0, window_bounds = array<i64: 256, 256>}, {pipeline_mode = #tpu.pipeline_mode<synchronous>, transform_indices = @transform_1, window_bounds = array<i64: 256, 512>}, {pipeline_mode = #tpu.pipeline_mode<synchronous>, transform_indices = @transform_2, window_bounds = array<i64: 1, 512>}, {pipeline_mode = #tpu.pipeline_mode<synchronous>, transform_indices = @transform_3, window_bounds = array<i64: 512, 256>}, {pipeline_mode = #tpu.pipeline_mode<synchronous>, transform_indices = @transform_4, window_bounds = array<i64: 1, 256>}, {transform_indices = @transform_5, window_bounds = array<i64: 256, 256>}]} {
    %c0 = arith.constant 0 : index
    %c0_0 = arith.constant 0 : index
    %0 = vector.load %arg1[%c0, %c0_0] : memref<256x256xf32, #tpu.memory_space<vmem>>, vector<256x256xf32>
    %c0_1 = arith.constant 0 : index
    %c0_2 = arith.constant 0 : index
    %1 = vector.load %arg2[%c0_1, %c0_2] : memref<256x512xf32, #tpu.memory_space<vmem>>, vector<256x512xf32>
    %cst = arith.constant dense<0.000000e+00> : vector<256x512xf32>
    %2 = tpu.matmul %0, %1, %cst {dimension_numbers = #tpu.dot_dimension_numbers<[1], [0], [0], [1], [0, 0, 1, 1], [], []>} : vector<256x256xf32>, vector<256x512xf32>, vector<256x512xf32> -> vector<256x512xf32>
    %c0_3 = arith.constant 0 : index
    %c0_4 = arith.constant 0 : index
    %3 = vector.load %arg3[%c0_3, %c0_4] : memref<1x512xf32, #tpu.memory_space<vmem>>, vector<1x512xf32>
    %4 = vector.broadcast %3 : vector<1x512xf32> to vector<256x512xf32>
    %5 = arith.addf %2, %4 : vector<256x512xf32>
    %cst_5 = arith.constant 0.000000e+00 : f32
    %6 = vector.broadcast %cst_5 : f32 to vector<256x512xf32>
    %7 = arith.maximumf %5, %6 : vector<256x512xf32>
    %c0_6 = arith.constant 0 : index
    %c0_7 = arith.constant 0 : index
    %8 = vector.load %arg4[%c0_6, %c0_7] : memref<512x256xf32, #tpu.memory_space<vmem>>, vector<512x256xf32>
    %cst_8 = arith.constant dense<0.000000e+00> : vector<256x256xf32>
    %9 = tpu.matmul %7, %8, %cst_8 {dimension_numbers = #tpu.dot_dimension_numbers<[1], [0], [0], [1], [0, 0, 1, 1], [], []>} : vector<256x512xf32>, vector<512x256xf32>, vector<256x256xf32> -> vector<256x256xf32>
    %c0_9 = arith.constant 0 : index
    %c0_10 = arith.constant 0 : index
    %10 = vector.load %arg5[%c0_9, %c0_10] : memref<1x256xf32, #tpu.memory_space<vmem>>, vector<1x256xf32>
    %11 = vector.broadcast %10 : vector<1x256xf32> to vector<256x256xf32>
    %12 = arith.addf %9, %11 : vector<256x256xf32>
    %c0_11 = arith.constant 0 : index
    %c0_12 = arith.constant 0 : index
    %13 = vector.load %arg6[%c0_11, %c0_12] : memref<256x256xf32, #tpu.memory_space<vmem>>, vector<256x256xf32>
    tpu.vector_store %arg6[%c0_11, %c0_12], %12 {strides = array<i32>} : memref<256x256xf32, #tpu.memory_space<vmem>>, vector<256x256xf32>,
    return
  }
  func.func @transform_0(%arg0: i32) -> (i32, i32) {
    %c0_i32 = arith.constant 0 : i32
    %c0_i32_0 = arith.constant 0 : i32
    return %arg0, %c0_i32 : i32, i32
  }
  func.func @transform_1(%arg0: i32) -> (i32, i32) {
    %c0_i32 = arith.constant 0 : i32
    %c0_i32_0 = arith.constant 0 : i32
    %c0_i32_1 = arith.constant 0 : i32
    return %c0_i32, %c0_i32_0 : i32, i32
  }
  func.func @transform_2(%arg0: i32) -> (i32, i32) {
    %c0_i32 = arith.constant 0 : i32
    %c0_i32_0 = arith.constant 0 : i32
    %c0_i32_1 = arith.constant 0 : i32
    return %c0_i32, %c0_i32_0 : i32, i32
  }
  func.func @transform_3(%arg0: i32) -> (i32, i32) {
    %c0_i32 = arith.constant 0 : i32
    %c0_i32_0 = arith.constant 0 : i32
    %c0_i32_1 = arith.constant 0 : i32
    return %c0_i32, %c0_i32_0 : i32, i32
  }
  func.func @transform_4(%arg0: i32) -> (i32, i32) {
    %c0_i32 = arith.constant 0 : i32
    %c0_i32_0 = arith.constant 0 : i32
    %c0_i32_1 = arith.constant 0 : i32
    return %c0_i32, %c0_i32_0 : i32, i32
  }
  func.func @transform_5(%arg0: i32) -> (i32, i32) {
    %c0_i32 = arith.constant 0 : i32
    %c0_i32_0 = arith.constant 0 : i32
    return %arg0, %c0_i32 : i32, i32
  }
}

</mosaic_0001>

<bundles_post_ra>
// kernel: tpu_custom_call.1
= control target key start
LH: loop header
LB: loop body
LE: loop exit
PB: predicated region body
PF: predicated region fallthrough
CT: control target
= control target key end

     0   :  { %10 = vsyncpa [#allocation3], 0  ;;  %s3498_s0 = inlined_call_operand.hbm [shape: f32[512,256], index: 0, kind: input, shape index: {}]   ;;  %s3499_s1 = inlined_call_operand.hbm [shape: f32[256,512], index: 1, kind: input, shape index: {}]   ;;  %s3500_s2 = inlined_call_operand.vmem [shape: f32[1,512], index: 2, kind: input, shape index: {}]   ;;  %s3501_s3 = inlined_call_operand.hbm [shape: f32[512,256], index: 3, kind: input, shape index: {}]   ;;  %s3502_s4 = inlined_call_operand.vmem [shape: f32[1,256], index: 4, kind: input, shape index: {}]   ;;  %s3503_s5 = inlined_call_operand.hbm [shape: f32[512,256], index: 5, kind: output, shape index: {}]  }
   0x1   :  { %12 = vsyncpa [#allocation3 + $0x1], 0 }
   0x2   :  { %13 = vsyncpa [#allocation6], 0 }
   0x3   :  { %14 = vsyncpa [#allocation4], 0 }
   0x4   :  { %16 = vsyncpa [#allocation4 + $0x1], 0  ;;  %s2635_s18 = smov 0   ;;  %s2637_s19 = smov 0  }
   0x5   :  { %s2639_s20 = smov 0   ;;  %s2641_s21 = smov 0  }
   0x6 LB: > { %s2656_s22 = sadd.s32 4294967295, %s2593_s21   ;;  %s1956_s23 = sadd.s32 4294967294, %s2593_s21   ;;  %s2593_s21 = sphi %s2641_s21, %s3523_s21   ;;  %s2589_s20 = sphi %s2639_s20, %s3522_s20   ;;  %s2585_s19 = sphi %s2637_s19, %s3521_s19   ;;  %s2581_s18 = sphi %s2635_s18, %s3520_s18  }
   0x7   : > { %p42_p0 = scmp.ne.s32.totalorder %s2585_s19, %s2581_s18  ;;  %p3504_p1 = scmp.eq.s32.totalorder %s2656_s22, 0 }
   0x8   : > { %p156_p3 = scmp.eq.s32.totalorder %s1956_s23, 1  ;;  %p1957_p5 = scmp.ge.s32.totalorder %s2593_s21, 1 }
   0x9   : > { %p2665_p4 = por %p3504_p1, %p42_p0  ;;  %p163_p7 = scmp.lt.s32.totalorder %s2593_s21, 3 }
   0xa   : > { %p2670_p6 = por %p156_p3, %p42_p0  ;;  %s2595_s27 = smov [#allocation5]  }
   0xb   : > { %s3507_s24 = scalar_select %p2665_p4, 1, 0 }
   0xc   : > { %s3508_s25 = scalar_select %p2670_p6, 1, 0 }
   0xd   : > { %p2675_p8 = pnand %p1957_p5, %p163_p7  ;;  %s175_s28 = sshll.u32 %s2595_s27, 4  ;;  %s2679_s28 = int_to_ptr.vmem [resolvable:$true] %s175_s28 }
   0xe   : > { %s2596_s30 = smov [#allocation7]   ;;  %s2437_s9 = scalar_lea.hbm %s3499_s1, 16384 }
   0xf   : > { %p2376_p9 = pneg %p2675_p8  ;;  %s191_s6 = sshll.u32 %s2596_s30, 4  ;;  %s2690_s6 = int_to_ptr.vmem [resolvable:$true] %s191_s6 }
  0x10   : > { %p2438_p12 = scmp.ne.s32.totalorder %s3499_s1, %s2437_s9  ;;  %p2444_p5 = scmp.lt.u32.totalorder %s2437_s9, %s3499_s1 }
  0x11   : > { %p2686_p11 = pnand %p2376_p9, %p3504_p1 }
  0x13   : > { %p2439_p13 = pneg %p2686_p11 }
  0x15   : > { %p2440_p0 = pnand %p2439_p13, %p2438_p12 }
  0x17   : > { %p2441_p3 = pneg %p2440_p0 }
  0x19   : > { %p2446_p7 = pnand %p2444_p5, %p2441_p3 }
  0x1b   : > { %2449 = shalt.err (!%p2446_p7)
}
  0x1c   : > { %s2450_s14 = scalar_lea.vmem %s2679_s28, 16384  ;;  %p2458_p2 = scmp.lt.s32.totalorder %s2679_s28, %s2679_s28 }
  0x1d   : > { %p2451_p9 = scmp.ne.s32.totalorder %s2679_s28, %s2450_s14  ;;  %p2459_p12 = scmp.lt.s32.totalorder %s2450_s14, %s2450_s14 }
  0x1f   : > { %p2453_p10 = pnand %p2451_p9, %p2439_p13  ;;  %p2460_p0 = por %p2459_p12, %p2458_p2 }
  0x21   : > { %p2454_p1 = pneg %p2453_p10 }
  0x23   : > { %p2461_p6 = pnand %p2460_p0, %p2454_p1 }
  0x25   : > { %2464 = shalt.err (!%p2461_p6)
}
  0x26   : > { %s2597_s15 = smov 512   ;;  %s2598_s16 = smov 32  }
  0x27   : > { %2379 = dma.hbm_to_vmem [thread:$0]  (!%p2686_p11), %s3499_s1, 16384, %s2679_s28, [#allocation6], %s2597_s15, %s2597_s15, %s2598_s16  }
  0x28   : > { %s2465_s7 = scalar_lea.hbm %s3501_s3, 16384 }
  0x29   : > { %p2466_p2 = scmp.ne.s32.totalorder %s3501_s3, %s2465_s7  ;;  %p2472_p10 = scmp.lt.u32.totalorder %s2465_s7, %s3501_s3 }
  0x2b   : > { %p2468_p1 = pnand %p2466_p2, %p2439_p13 }
  0x2d   : > { %p2469_p6 = pneg %p2468_p1 }
  0x2f   : > { %p2474_p3 = pnand %p2472_p10, %p2469_p6 }
  0x31   : > { %2477 = shalt.err (!%p2474_p3)
}
  0x32   : > { %s2478_s28 = scalar_lea.vmem %s2690_s6, 16384  ;;  %p2486_p12 = scmp.lt.s32.totalorder %s2690_s6, %s2690_s6 }
  0x33   : > { %p2479_p5 = scmp.ne.s32.totalorder %s2690_s6, %s2478_s28  ;;  %p2487_p0 = scmp.lt.s32.totalorder %s2478_s28, %s2478_s28 }
  0x35   : > { %p2481_p7 = pnand %p2479_p5, %p2439_p13  ;;  %p2488_p2 = por %p2487_p0, %p2486_p12 }
  0x37   : > { %p2482_p9 = pneg %p2481_p7 }
  0x39   : > { %p2489_p1 = pnand %p2488_p2, %p2482_p9 }
  0x3b   : > { %2492 = shalt.err (!%p2489_p1)
}
  0x3c   : > { %s2599_s12 = smov 256   ;;  %s2600_s13 = smov 16  }
  0x3d   : > { %2382 = dma.hbm_to_vmem [thread:$0]  (!%p2686_p11), %s3501_s3, 16384, %s2690_s6, [#allocation6], %s2599_s12, %s2599_s12, %s2600_s13  }
  0x3e   : > { %s2748_s16 = sadd.s32 1, %s2593_s21   ;;  %s29_s23 = sadd.s32 1, %s2589_s20 }
  0x3f   : > { %s26_s17 = ssub.s32 %s2593_s21, %s2748_s16  ;;  %p36_p6 = scmp.ne.s32.totalorder %s2589_s20, %s2585_s19 }
  0x40   : > { %p27_p13 = scmp.eq.s32.totalorder %s26_s17, 0  ;;  %p37_p10 = scmp.eq.s32.totalorder %s2593_s21, 0 }
  0x41   : > { %p3511_p5 = scmp.eq.s32.totalorder %s2656_s22, 1  ;;  %p2393_p9 = scmp.lt.s32.totalorder %s2593_s21, 2 }
  0x42   : > { %s2757_s27 = scalar_select %p27_p13, %s2589_s20, %s29_s23  }
  0x43   : > { %p38_p3 = por %p37_p10, %p36_p6  ;;  %p2761_p7 = por %p3511_p5, %p36_p6 }
  0x44   : > { %s208_s30 = sand.u32 1, %s2589_s20   ;;  %s1977_s6 = sshll.u32 %s2593_s21, 13 }
  0x45   : > { %s3512_s29 = scalar_select %p2761_p7, 1, 0 }
  0x46   : > { %s1961_s7 = sshll.u32 %s208_s30, 9  ;;  %s2771_s10 = scalar_lea.hbm %s3498_s0, %s1977_s6 }
  0x47   : > { %s212_s11 = scalar_lea.vmem [#allocation2], %s1961_s7  ;;  %p2775_p11 = pnand %p2393_p9, %p38_p3 }
  0x48   : > { %s220_s28 = sshll.u32 %s212_s11, 4  ;;  %s2779_s15 = scalar_lea.sflag [#allocation3], %s208_s30  ;;  %s2773_s28 = int_to_ptr.vmem [resolvable:$true] %s220_s28 }
  0x49   : > { %s2493_s17 = scalar_lea.hbm %s2771_s10, 8192  ;;  %p2495_p0 = pneg %p2775_p11 }
  0x4a   : > { %p2494_p12 = scmp.ne.s32.totalorder %s2771_s10, %s2493_s17  ;;  %s2498_s6 = scalar_lea.hbm %s3498_s0, 16384 }
  0x4b   : > { %p2499_p13 = scmp.lt.u32.totalorder %s2771_s10, %s3498_s0  ;;  %p2500_p6 = scmp.lt.u32.totalorder %s2498_s6, %s2493_s17 }
  0x4c   : > { %p2496_p2 = pnand %p2495_p0, %p2494_p12  ;;  %p2502_p3 = scmp.lt.u32.totalorder %s2493_s17, %s2771_s10 }
  0x4d   : > { %p2501_p10 = por %p2500_p6, %p2499_p13 }
  0x4e   : > { %p2497_p1 = pneg %p2496_p2 }
  0x4f   : > { %p2503_p5 = por %p2502_p3, %p2501_p10 }
  0x51   : > { %p2504_p9 = pnand %p2503_p5, %p2497_p1 }
  0x53   : > { %2507 = shalt.err (!%p2504_p9)
}
  0x54   : > { %s2508_s30 = scalar_lea.vmem %s2773_s28, 8192  ;;  %s2601_s11 = smov [#allocation2]  }
  0x55   : > { %p2509_p12 = scmp.ne.s32.totalorder %s2773_s28, %s2508_s30  ;;  %s2513_s23 = sshll.u32 %s2601_s11, 4  ;;  %s2514_s23 = int_to_ptr.vmem [resolvable:$false] %s2513_s23 }
  0x56   : > { %s2515_s7 = scalar_lea.vmem %s2514_s23, 16384  ;;  %p2516_p4 = scmp.lt.s32.totalorder %s2773_s28, %s2514_s23 }
  0x57   : > { %p2511_p2 = pnand %p2509_p12, %p2495_p0  ;;  %p2517_p13 = scmp.lt.s32.totalorder %s2515_s7, %s2508_s30 }
  0x59   : > { %p2512_p7 = pneg %p2511_p2  ;;  %p2518_p6 = por %p2517_p13, %p2516_p4 }
  0x5b   : > { %p2519_p10 = pnand %p2518_p6, %p2512_p7 }
  0x5d   : > { %2522 = shalt.err (!%p2519_p10)
}
  0x5e   : > { %2386 = dma.hbm_to_vmem [thread:$0]  (!%p2775_p11), %s2771_s10, 8192, %s2773_s28, %s2779_s15, %s2599_s12, %s2599_s12, %s2600_s13  }
  0x5f   : > { %232 = sbr.rel (%p2675_p8) target bundleno = 874 (0x36a), region = 40  ;;  %s2813_s17 = sand.u32 (!%p2675_p8), 1, %s2585_s19  }
  0x60   : > { %s1966_s6 = sshll.u32 (!%p2675_p8), %s2813_s17, 9  ;;  %s235_s8 = scalar_lea.sflag (!%p2675_p8), [#allocation3], %s2813_s17 }
  0x61   : > { %s2819_s14 = scalar_lea.vmem (!%p2675_p8), [#allocation2], %s1966_s6  ;;  %p3514_p4 = scmp.ne.s32.totalorder (!%p2675_p8), %s3507_s24, 0 }
  0x66   : > { %2568 = dma.done.wait (%p3514_p4), %s235_s8, 8192  }
  0x67   : > { %2570 = vsyncadd (%p3514_p4), %s235_s8, 4294959104  ;;  %p3515_p7 = scmp.eq.s32.totalorder %s2656_s22, 0 }
  0x69   : > { %2572 = dma.done.wait (%p3515_p7), [#allocation6], 32768   ;;  %p3516_p8 = pmov %p3515_p7 }
  0x6a   : > { %v340_v0 = vld [vmem:[#allocation5 + $0x8] sm:$0xff]  ;;  %v339_v2 = vld [vmem:[#allocation5] sm:$0xff]  ;;  %s3319_s10 = scalar_lea.vmem [#allocation8], %s1966_s6  ;;  %s1979_s28 = sshll.u32 %s2656_s22, 13 }
  0x6b   : > { %2574 = vsyncadd (%p3516_p8), [#allocation6], 4294934528  ;;  %v344_v1 = vld [vmem:[#allocation5 + $0x28] sm:$0xff]  ;;  %v343_v4 = vld [vmem:[#allocation5 + $0x20] sm:$0xff]  ;;  %s1864_s15 = sshll.u32 %s3319_s10, 4  ;;  %s3449_s11 = scalar_lea.hbm %s3503_s5, %s1979_s28  ;;  %s3451_s15 = int_to_ptr.vmem [resolvable:$true] %s1864_s15 }
  0x6c   : > { %v1980_v3 = vpack.c.bf16 %v344_v1, %v340_v0  ;;  %v348_v5 = vld [vmem:[#allocation5 + $0x48] sm:$0xff]  ;;  %v1982_v7 = vpack.c.bf16 %v343_v4, %v339_v2  ;;  %v347_v9 = vld [vmem:[#allocation5 + $0x40] sm:$0xff]  ;;  %s1850_s22 = scalar_lea.sflag [#allocation4], %s2813_s17  ;;  %s2523_s23 = scalar_lea.vmem %s3451_s15, 8192 }
  0x6d   : > { %v352_v6 = vld [vmem:[#allocation5 + $0x68] sm:$0xff]  ;;  %v351_v10 = vld [vmem:[#allocation5 + $0x60] sm:$0xff]  ;;  %p2524_p11 = scmp.ne.s32.totalorder %s3451_s15, %s2523_s23  ;;  %p3517_p0 = scmp.ne.s32.totalorder %s3512_s29, 0 }
  0x6e   : > { %v1984_v8 = vpack.c.bf16 %v352_v6, %v348_v5  ;;  %v356_v11 = vld [vmem:[#allocation5 + $0x88] sm:$0xff]  ;;  %1981 = vmatprep.subr.bf16.mxu1 %v1980_v3  ;;  %v1986_v13 = vpack.c.bf16 %v351_v10, %v347_v9  ;;  %v355_v15 = vld [vmem:[#allocation5 + $0x80] sm:$0xff]  ;;  %s2602_s7 = smov [#allocation8]  }
  0x6f   : > { %v360_v12 = vld [vmem:[#allocation5 + $0xa8] sm:$0xff]  ;;  %1983 = vmatpush1.bf16.msra.mxu1 %v1982_v7  ;;  %v359_v16 = vld [vmem:[#allocation5 + $0xa0] sm:$0xff]  ;;  %p2525_p1 = pnand %p2524_p11, %p3517_p0  ;;  %s2527_s6 = sshll.u32 %s2602_s7, 4  ;;  %s2528_s6 = int_to_ptr.vmem [resolvable:$false] %s2527_s6 }
  0x70   : > { %1985 = vmatprep.subr.bf16.mxu1 %v1984_v8  ;;  %v1988_v14 = vpack.c.bf16 %v360_v12, %v356_v11  ;;  %v364_v17 = vld [vmem:[#allocation5 + $0xc8] sm:$0xff]  ;;  %v1990_v19 = vpack.c.bf16 %v359_v16, %v355_v15  ;;  %v363_v21 = vld [vmem:[#allocation5 + $0xc0] sm:$0xff]  ;;  %s2529_s8 = scalar_lea.vmem %s2528_s6, 16384  ;;  %p2530_p5 = scmp.lt.s32.totalorder %s3451_s15, %s2528_s6 }
  0x71   : > { %v368_v18 = vld [vmem:[#allocation5 + $0xe8] sm:$0xff]  ;;  %v367_v22 = vld [vmem:[#allocation5 + $0xe0] sm:$0xff]  ;;  %p2526_p3 = pneg %p2525_p1  ;;  %p2531_p9 = scmp.lt.s32.totalorder %s2529_s8, %s2523_s23 }
  0x72   : > { %v1992_v20 = vpack.c.bf16 %v368_v18, %v364_v17  ;;  %v372_v23 = vld [vmem:[#allocation5 + $0x108] sm:$0xff]  ;;  %v1994_v25 = vpack.c.bf16 %v367_v22, %v363_v21  ;;  %v371_v27 = vld [vmem:[#allocation5 + $0x100] sm:$0xff] }
  0x73   : > { %1987 = vmatpush1.bf16.msra.mxu1 %v1986_v13  ;;  %v376_v24 = vld [vmem:[#allocation5 + $0x128] sm:$0xff]  ;;  %v375_v28 = vld [vmem:[#allocation5 + $0x120] sm:$0xff]  ;;  %p2532_p12 = por %p2531_p9, %p2530_p5 }
  0x74   : > { %1989 = vmatprep.subr.bf16.mxu1 %v1988_v14  ;;  %v1996_v26 = vpack.c.bf16 %v376_v24, %v372_v23  ;;  %v380_v29 = vld [vmem:[#allocation5 + $0x148] sm:$0xff]  ;;  %v1998_v31 = vpack.c.bf16 %v375_v28, %v371_v27  ;;  %v379_v33 = vld [vmem:[#allocation5 + $0x140] sm:$0xff] }
  0x75   : > { %v384_v30 = vld [vmem:[#allocation5 + $0x168] sm:$0xff]  ;;  %v383_v34 = vld [vmem:[#allocation5 + $0x160] sm:$0xff]  ;;  %p2533_p2 = pnand %p2532_p12, %p2526_p3 }
  0x76   : > { %v2000_v32 = vpack.c.bf16 %v384_v30, %v380_v29  ;;  %v388_v35 = vld [vmem:[#allocation5 + $0x188] sm:$0xff]  ;;  %v2002_v37 = vpack.c.bf16 %v383_v34, %v379_v33  ;;  %v387_v39 = vld [vmem:[#allocation5 + $0x180] sm:$0xff]  ;;  %v346_v33 = vld [vmem:[#allocation5 + $0x38] sm:$0xff] }
  0x77   : > { %1991 = vmatpush1.bf16.msra.mxu1 %v1990_v19  ;;  %v392_v36 = vld [vmem:[#allocation5 + $0x1a8] sm:$0xff]  ;;  %v391_v40 = vld [vmem:[#allocation5 + $0x1a0] sm:$0xff] }
  0x78   : > { %1993 = vmatprep.subr.bf16.mxu1 %v1992_v20  ;;  %v2004_v38 = vpack.c.bf16 %v392_v36, %v388_v35  ;;  %v2830_v41 = vld [vmem:[%s2819_s14 + $0x8] sm:$0xff]  ;;  %v2006_v44 = vpack.c.bf16 %v391_v40, %v387_v39  ;;  %v395_v46 = vld [vmem:[#allocation5 + $0x1c0] sm:$0xff]  ;;  %v341_v36 = vld [vmem:[#allocation5 + $0x10] sm:$0xff] }
  0x79   : > { %v396_v42 = vld [vmem:[#allocation5 + $0x1c8] sm:$0xff]  ;;  %553 = vmatprep.mubr.f32.mxu1 %v2830_v41  ;;  %v399_v47 = vld [vmem:[#allocation5 + $0x1e0] sm:$0xff]  ;;  %v354_v39 = vld [vmem:[#allocation5 + $0x78] sm:$0xff] }
  0x7a   : > { %v400_v43 = vld [vmem:[#allocation5 + $0x1e8] sm:$0xff]  ;;  %v2010_v50 = vpack.c.bf16 %v399_v47, %v395_v46  ;;  %v403_v52 = vld [vmem:[#allocation5 + $0x200] sm:$0xff]  ;;  %v353_v46 = vld [vmem:[#allocation5 + $0x70] sm:$0xff] }
  0x7b   : > { %1995 = vmatpush1.bf16.msra.mxu1 %v1994_v25  ;;  %v2008_v45 = vpack.c.bf16 %v400_v43, %v396_v42  ;;  %v404_v48 = vld [vmem:[#allocation5 + $0x208] sm:$0xff]  ;;  %v407_v53 = vld [vmem:[#allocation5 + $0x220] sm:$0xff]  ;;  %v2837_v43 = vld [vmem:[%s2819_s14 + $0x18] sm:$0xff] }
  0x7c   : > { %1997 = vmatprep.subr.bf16.mxu1 %v1996_v26  ;;  %v408_v49 = vld [vmem:[#allocation5 + $0x228] sm:$0xff]  ;;  %v2014_v56 = vpack.c.bf16 %v407_v53, %v403_v52  ;;  %v411_v58 = vld [vmem:[#allocation5 + $0x240] sm:$0xff]  ;;  %v358_v47 = vld [vmem:[#allocation5 + $0x98] sm:$0xff] }
  0x7d   : > { %v2012_v51 = vpack.c.bf16 %v408_v49, %v404_v48  ;;  %v412_v54 = vld [vmem:[#allocation5 + $0x248] sm:$0xff]  ;;  %v415_v59 = vld [vmem:[#allocation5 + $0x260] sm:$0xff]  ;;  %v362_v48 = vld [vmem:[#allocation5 + $0xb8] sm:$0xff] }
  0x7e   : > { %v416_v55 = vld [vmem:[#allocation5 + $0x268] sm:$0xff]  ;;  %v2018_v62 = vpack.c.bf16 %v415_v59, %v411_v58  ;;  %v419_v0 = vld [vmem:[#allocation5 + $0x280] sm:$0xff]  ;;  %v2842_v49 = vld [vmem:[%s2819_s14 + $0x10] sm:$0xff]  ;;  %v2052_v52 = vpack.c.bf16 %v362_v48, %v358_v47 }
  0x7f   : > { %1999 = vmatpush1.bf16.msra.mxu1 %v1998_v31  ;;  %v2016_v57 = vpack.c.bf16 %v416_v55, %v412_v54  ;;  %v420_v60 = vld [vmem:[#allocation5 + $0x288] sm:$0xff]  ;;  %v423_v1 = vld [vmem:[#allocation5 + $0x2a0] sm:$0xff]  ;;  %v357_v53 = vld [vmem:[#allocation5 + $0x90] sm:$0xff] }
  0x80   : > { %2001 = vmatprep.subr.bf16.mxu1 %v2000_v32  ;;  %v424_v61 = vld [vmem:[#allocation5 + $0x2a8] sm:$0xff]  ;;  %v2022_v4 = vpack.c.bf16 %v423_v1, %v419_v0  ;;  %v427_v6 = vld [vmem:[#allocation5 + $0x2c0] sm:$0xff]  ;;  %v342_v32 = vld [vmem:[#allocation5 + $0x18] sm:$0xff] }
  0x81   : > { %v2020_v63 = vpack.c.bf16 %v424_v61, %v420_v60  ;;  %v428_v2 = vld [vmem:[#allocation5 + $0x2c8] sm:$0xff]  ;;  %v431_v7 = vld [vmem:[#allocation5 + $0x2e0] sm:$0xff]  ;;  %v2044_v35 = vpack.c.bf16 %v346_v33, %v342_v32  ;;  %v361_v54 = vld [vmem:[#allocation5 + $0xb0] sm:$0xff] }
  0x82   : > { %v432_v3 = vld [vmem:[#allocation5 + $0x2e8] sm:$0xff]  ;;  %v2026_v10 = vpack.c.bf16 %v431_v7, %v427_v6  ;;  %v435_v12 = vld [vmem:[#allocation5 + $0x300] sm:$0xff]  ;;  %v366_v55 = vld [vmem:[#allocation5 + $0xd8] sm:$0xff]  ;;  %v2054_v58 = vpack.c.bf16 %v361_v54, %v357_v53 }
  0x83   : > { %2003 = vmatpush1.bf16.msra.mxu1 %v2002_v37  ;;  %v2024_v5 = vpack.c.bf16 %v432_v3, %v428_v2  ;;  %v436_v8 = vld [vmem:[#allocation5 + $0x308] sm:$0xff]  ;;  %v439_v13 = vld [vmem:[#allocation5 + $0x320] sm:$0xff]  ;;  %v345_v37 = vld [vmem:[#allocation5 + $0x30] sm:$0xff] }
  0x84   : > { %2005 = vmatprep.subr.bf16.mxu1 %v2004_v38  ;;  %v440_v9 = vld [vmem:[#allocation5 + $0x328] sm:$0xff]  ;;  %v2030_v16 = vpack.c.bf16 %v439_v13, %v435_v12  ;;  %v443_v18 = vld [vmem:[#allocation5 + $0x340] sm:$0xff]  ;;  %v350_v38 = vld [vmem:[#allocation5 + $0x58] sm:$0xff]  ;;  %v2046_v42 = vpack.c.bf16 %v345_v37, %v341_v36 }
  0x85   : > { %v2028_v11 = vpack.c.bf16 %v440_v9, %v436_v8  ;;  %v444_v14 = vld [vmem:[#allocation5 + $0x348] sm:$0xff]  ;;  %v447_v19 = vld [vmem:[#allocation5 + $0x360] sm:$0xff]  ;;  %v2853_v59 = vld [vmem:[%s2819_s14 + $0x38] sm:$0xff] }
  0x86   : > { %v448_v15 = vld [vmem:[#allocation5 + $0x368] sm:$0xff]  ;;  %v2034_v22 = vpack.c.bf16 %v447_v19, %v443_v18  ;;  %v451_v24 = vld [vmem:[#allocation5 + $0x380] sm:$0xff]  ;;  %v365_v61 = vld [vmem:[#allocation5 + $0xd0] sm:$0xff] }
  0x87   : > { %2007 = vmatpush1.bf16.msra.mxu1 %v2006_v44  ;;  %v2032_v17 = vpack.c.bf16 %v448_v15, %v444_v14  ;;  %v452_v20 = vld [vmem:[#allocation5 + $0x388] sm:$0xff]  ;;  %v455_v25 = vld [vmem:[#allocation5 + $0x3a0] sm:$0xff]  ;;  %v2048_v44 = vpack.c.bf16 %v354_v39, %v350_v38  ;;  %v378_v0 = vld [vmem:[#allocation5 + $0x138] sm:$0xff] }
  0x88   : > { %2009 = vmatprep.subr.bf16.mxu1 %v2008_v45  ;;  %v456_v21 = vld [vmem:[#allocation5 + $0x3a8] sm:$0xff]  ;;  %v2038_v28 = vpack.c.bf16 %v455_v25, %v451_v24  ;;  %v459_v30 = vld [vmem:[#allocation5 + $0x3c0] sm:$0xff]  ;;  %v349_v45 = vld [vmem:[#allocation5 + $0x50] sm:$0xff] }
  0x89   : > { %v2036_v23 = vpack.c.bf16 %v456_v21, %v452_v20  ;;  %v460_v26 = vld [vmem:[#allocation5 + $0x3c8] sm:$0xff]  ;;  %v463_v31 = vld [vmem:[#allocation5 + $0x3e0] sm:$0xff]  ;;  %v2858_v1 = vld [vmem:[%s2819_s14 + $0x30] sm:$0xff] }
  0x8a   : > { %v464_v27 = vld [vmem:[#allocation5 + $0x3e8] sm:$0xff]  ;;  %v2042_v34 = vpack.c.bf16 %v463_v31, %v459_v30  ;;  %v2834_v40 = vld [vmem:[%s2819_s14] sm:$0xff]  ;;  %v377_v6 = vld [vmem:[#allocation5 + $0x130] sm:$0xff] }
  0x8b   : > { %2011 = vmatpush1.bf16.msra.mxu1 %v2010_v50  ;;  %v2040_v29 = vpack.c.bf16 %v464_v27, %v460_v26  ;;  %v2050_v50 = vpack.c.bf16 %v353_v46, %v349_v45  ;;  %v2861_v3 = vld [vmem:[%s2819_s14 + $0x48] sm:$0xff]  ;;  %v382_v7 = vld [vmem:[#allocation5 + $0x158] sm:$0xff]  ;;  %v2866_v9 = vld [vmem:[%s2819_s14 + $0x40] sm:$0xff] }
  0x8c   : > { %2013 = vmatprep.subr.bf16.mxu1 %v2012_v51  ;;  %v2845_v51 = vld [vmem:[%s2819_s14 + $0x28] sm:$0xff]  ;;  %v386_v8 = vld [vmem:[#allocation5 + $0x178] sm:$0xff]  ;;  %v381_v13 = vld [vmem:[#allocation5 + $0x150] sm:$0xff] }
  0x8d   : > { %v2064_v12 = vpack.c.bf16 %v386_v8, %v382_v7  ;;  %v385_v14 = vld [vmem:[#allocation5 + $0x170] sm:$0xff]  ;;  %v390_v15 = vld [vmem:[#allocation5 + $0x198] sm:$0xff]  ;;  %v2877_v19 = vld [vmem:[%s2819_s14 + $0x68] sm:$0xff] }
  0x8e   : > { %v2066_v18 = vpack.c.bf16 %v385_v14, %v381_v13  ;;  %v389_v21 = vld [vmem:[#allocation5 + $0x190] sm:$0xff]  ;;  %v402_v24 = vld [vmem:[#allocation5 + $0x1f8] sm:$0xff]  ;;  %v2882_v25 = vld [vmem:[%s2819_s14 + $0x60] sm:$0xff] }
  0x8f   : > { %2015 = vmatpush1.bf16.msra.mxu1 %v2014_v56  ;;  %v370_v56 = vld [vmem:[#allocation5 + $0xf8] sm:$0xff]  ;;  %v401_v30 = vld [vmem:[#allocation5 + $0x1f0] sm:$0xff]  ;;  %v1132_v33 = vld [vmem:[#allocation7 + $0x8] sm:$0xff] }
  0x90   : > { %2017 = vmatprep.subr.bf16.mxu1 %v2016_v57  ;;  %v2850_v57 = vld [vmem:[%s2819_s14 + $0x20] sm:$0xff]  ;;  %v2056_v60 = vpack.c.bf16 %v370_v56, %v366_v55  ;;  %v2885_v26 = vld [vmem:[%s2819_s14 + $0x78] sm:$0xff]  ;;  %v1133_v37 = vld [vmem:[#allocation7 + $0x10] sm:$0xff] }
  0x91   : > { %v406_v31 = vld [vmem:[#allocation5 + $0x218] sm:$0xff]  ;;  %v1131_v36 = vld [vmem:[#allocation7] sm:$0xff]  ;;  %v2890_v38 = vld [vmem:[%s2819_s14 + $0x70] sm:$0xff] }
  0x92   : > { %v410_v32 = vld [vmem:[#allocation5 + $0x238] sm:$0xff]  ;;  %v2893_v39 = vld [vmem:[%s2819_s14 + $0x88] sm:$0xff]  ;;  %v405_v46 = vld [vmem:[#allocation5 + $0x210] sm:$0xff] }
  0x93   : > { %2019 = vmatpush1.bf16.msra.mxu1 %v2018_v62  ;;  %v369_v62 = vld [vmem:[#allocation5 + $0xf0] sm:$0xff]  ;;  %v2076_v45 = vpack.c.bf16 %v410_v32, %v406_v31  ;;  %v414_v48 = vld [vmem:[#allocation5 + $0x258] sm:$0xff]  ;;  %v1135_v55 = vld [vmem:[#allocation7 + $0x20] sm:$0xff] }
  0x94   : > { %2021 = vmatprep.subr.bf16.mxu1 %v2020_v63  ;;  %v374_v63 = vld [vmem:[#allocation5 + $0x118] sm:$0xff]  ;;  %v2058_v2 = vpack.c.bf16 %v369_v62, %v365_v61  ;;  %v409_v47 = vld [vmem:[#allocation5 + $0x230] sm:$0xff]  ;;  %v2909_v14 = vld [vmem:[%s2819_s14 + $0xa8] sm:$0xff] }
  0x95   : > { %v1138_v53 = vld [vmem:[#allocation7 + $0x38] sm:$0xff]  ;;  %v1137_v56 = vld [vmem:[#allocation7 + $0x30] sm:$0xff]  ;;  %v2078_v61 = vpack.c.bf16 %v409_v47, %v405_v46  ;;  %v2914_v31 = vld [vmem:[%s2819_s14 + $0xa0] sm:$0xff] }
  0x96   : > { %v2114_v62 = vpack.c.bf16 %v1137_v56, %v1135_v55  ;;  %v1142_v7 = vld [vmem:[#allocation7 + $0x58] sm:$0xff]  ;;  %v2906_v13 = vld [vmem:[%s2819_s14 + $0x90] sm:$0xff] }
  0x97   : > { %2023 = vmatpush1.bf16.msra.mxu1 %v2022_v4  ;;  %v2060_v4 = vpack.c.bf16 %v378_v0, %v374_v63  ;;  %v413_v0 = vld [vmem:[#allocation5 + $0x250] sm:$0xff]  ;;  %v2917_v32 = vld [vmem:[%s2819_s14 + $0xb8] sm:$0xff] }
  0x98   : > { %2025 = vmatprep.subr.bf16.mxu1 %v2024_v5  ;;  %v373_v5 = vld [vmem:[#allocation5 + $0x110] sm:$0xff]  ;;  %v1150_v46 = vld [vmem:[#allocation7 + $0x98] sm:$0xff] }
  0x9b   : > { %2027 = vmatpush1.bf16.msra.mxu1 %v2026_v10  ;;  %v2062_v10 = vpack.c.bf16 %v377_v6, %v373_v5  ;;  %v426_v5 = vld [vmem:[#allocation5 + $0x2b8] sm:$0xff]  ;;  %v1140_v6 = vld [vmem:[#allocation7 + $0x48] sm:$0xff] }
  0x9c   : > { %2029 = vmatprep.subr.bf16.mxu1 %v2028_v11  ;;  %v2869_v11 = vld [vmem:[%s2819_s14 + $0x58] sm:$0xff]  ;;  %v2116_v8 = vpack.c.bf16 %v1142_v7, %v1140_v6  ;;  %v1151_v6 = vld [vmem:[#allocation7 + $0xa0] sm:$0xff]  ;;  %v1153_v7 = vld [vmem:[#allocation7 + $0xb0] sm:$0xff] }
  0x9f   : > { %2031 = vmatpush1.bf16.msra.mxu1 %v2030_v16  ;;  %v394_v16 = vld [vmem:[#allocation5 + $0x1b8] sm:$0xff] }
  0xa0   : > { %2033 = vmatprep.subr.bf16.mxu1 %v2032_v17  ;;  %v2874_v17 = vld [vmem:[%s2819_s14 + $0x50] sm:$0xff]  ;;  %v2068_v20 = vpack.c.bf16 %v394_v16, %v390_v15 }
  0xa3   : > { %2035 = vmatpush1.bf16.msra.mxu1 %v2034_v22  ;;  %v393_v22 = vld [vmem:[#allocation5 + $0x1b0] sm:$0xff] }
  0xa4   : > { %2037 = vmatprep.subr.bf16.mxu1 %v2036_v23  ;;  %v398_v23 = vld [vmem:[#allocation5 + $0x1d8] sm:$0xff]  ;;  %v2070_v27 = vpack.c.bf16 %v393_v22, %v389_v21  ;;  %v425_v21 = vld [vmem:[#allocation5 + $0x2b0] sm:$0xff] }
  0xa5   : > { %v430_v22 = vld [vmem:[#allocation5 + $0x2d8] sm:$0xff] }
  0xa7   : > { %2039 = vmatpush1.bf16.msra.mxu1 %v2038_v28  ;;  %v2072_v28 = vpack.c.bf16 %v402_v24, %v398_v23  ;;  %v434_v23 = vld [vmem:[#allocation5 + $0x2f8] sm:$0xff]  ;;  %v1144_v24 = vld [vmem:[#allocation7 + $0x68] sm:$0xff] }
  0xa8   : > { %2041 = vmatprep.subr.bf16.mxu1 %v2040_v29  ;;  %v397_v29 = vld [vmem:[#allocation5 + $0x1d0] sm:$0xff] }
  0xab   : > { %2043 = vmatpush1.bf16.msra.mxu1 %v2042_v34  ;;  %v1134_v34 = vld [vmem:[#allocation7 + $0x18] sm:$0xff] }
  0xac   : > { %2045 = vmatprep.subr.bf16.mxu1 %v2044_v35  ;;  %v2108_v35 = vpack.c.bf16 %v1134_v34, %v1132_v33 }
  0xae   : > { %554 = vmatmul.mubr.f32.vlgmr.msra.gmra.mrb[0].mxu1 %v2834_v40  ;;  %2109 = vmatprep.subr.bf16.mxu0 %v2108_v35  ;;  %v2088_v35 = vpack.c.bf16 %v434_v23, %v430_v22  ;;  %v458_v22 = vld [vmem:[#allocation5 + $0x3b8] sm:$0xff]  ;;  %v1156_v23 = vld [vmem:[#allocation7 + $0xc8] sm:$0xff] }
  0xaf   : > { %2047 = vmatpush1.bf16.msra.mxu1 %v2046_v42  ;;  %559 = vmatprep.mubr.f32.mxu1 %v2837_v43  ;;  %v2074_v42 = vpack.c.bf16 %v401_v30, %v397_v29  ;;  %v1143_v29 = vld [vmem:[#allocation7 + $0x60] sm:$0xff]  ;;  %v1145_v30 = vld [vmem:[#allocation7 + $0x70] sm:$0xff] }
  0xb0   : > { %2049 = vmatprep.subr.bf16.mxu1 %v2048_v44  ;;  %v2110_v44 = vpack.c.bf16 %v1133_v37, %v1131_v36  ;;  %v2122_v34 = vpack.c.bf16 %v1145_v30, %v1143_v29  ;;  %v429_v36 = vld [vmem:[#allocation5 + $0x2d0] sm:$0xff] }
  0xb1   : > { %v433_v37 = vld [vmem:[#allocation5 + $0x2f0] sm:$0xff] }
  0xb2   : > { %560 = vmatmul.mubr.f32.gmra.mrb[2].mxu1 %v2842_v49  ;;  %2111 = vmatpush1.bf16.msra.mxu0 %v2110_v44  ;;  %v442_v44 = vld [vmem:[#allocation5 + $0x338] sm:$0xff]  ;;  %v1157_v29 = vld [vmem:[#allocation7 + $0xd0] sm:$0xff] }
  0xb3   : > { %565 = vmatprep.mubr.f32.mxu1 %v2845_v51  ;;  %2051 = vmatpush1.bf16.msra.mxu1 %v2050_v50  ;;  %v418_v50 = vld [vmem:[#allocation5 + $0x278] sm:$0xff]  ;;  %v2938_v30 = vld [vmem:[%s2819_s14 + $0xd0] sm:$0xff] }
  0xb4   : > { %2053 = vmatprep.subr.bf16.mxu1 %v2052_v52  ;;  %v1136_v52 = vld [vmem:[#allocation7 + $0x28] sm:$0xff]  ;;  %v2080_v63 = vpack.c.bf16 %v418_v50, %v414_v48  ;;  %v1147_v48 = vld [vmem:[#allocation7 + $0x80] sm:$0xff]  ;;  %v1149_v50 = vld [vmem:[#allocation7 + $0x90] sm:$0xff] }
  0xb5   : > { %v2112_v54 = vpack.c.bf16 %v1138_v53, %v1136_v52  ;;  %v2922_v52 = vld [vmem:[%s2819_s14 + $0xb0] sm:$0xff]  ;;  %v2925_v53 = vld [vmem:[%s2819_s14 + $0xc8] sm:$0xff]  ;;  %v2126_v55 = vpack.c.bf16 %v1149_v50, %v1147_v48  ;;  %v1159_v50 = vld [vmem:[#allocation7 + $0xe0] sm:$0xff] }
  0xb6   : > { %566 = vmatmul.mubr.f32.gmra.mrb[4].mxu1 %v2850_v57 }
  0xb7   : > { %571 = vmatprep.mubr.f32.mxu1 %v2853_v59  ;;  %2055 = vmatpush1.bf16.msra.mxu1 %v2054_v58  ;;  %v2898_v58 = vld [vmem:[%s2819_s14 + $0x80] sm:$0xff] }
  0xb8   : > { %2057 = vmatprep.subr.bf16.mxu1 %v2056_v60  ;;  %v2901_v60 = vld [vmem:[%s2819_s14 + $0x98] sm:$0xff]  ;;  %2113 = vmatprep.subr.bf16.mxu0 %v2112_v54  ;;  %v2090_v54 = vpack.c.bf16 %v433_v37, %v429_v36  ;;  %v453_v37 = vld [vmem:[#allocation5 + $0x390] sm:$0xff] }
  0xb9   : > { %2115 = vmatpush1.bf16.msra.mxu0 %v2114_v62  ;;  %v441_v62 = vld [vmem:[#allocation5 + $0x330] sm:$0xff] }
  0xba   : > { %572 = vmatmul.mubr.f32.gmra.mrb[6].mxu1 %v2858_v1  ;;  %2117 = vmatprep.subr.bf16.mxu0 %v2116_v8  ;;  %v2930_v8 = vld [vmem:[%s2819_s14 + $0xc0] sm:$0xff] }
  0xbb   : > { %577 = vmatprep.mubr.f32.mxu1 %v2861_v3  ;;  %2059 = vmatpush1.bf16.msra.mxu1 %v2058_v2  ;;  %v417_v2 = vld [vmem:[#allocation5 + $0x270] sm:$0xff] }
  0xbc   : > { %2061 = vmatprep.subr.bf16.mxu1 %v2060_v4  ;;  %v422_v4 = vld [vmem:[#allocation5 + $0x298] sm:$0xff]  ;;  %v2082_v15 = vpack.c.bf16 %v417_v2, %v413_v0  ;;  %v1152_v2 = vld [vmem:[#allocation7 + $0xa8] sm:$0xff] }
  0xbd   : > { %v450_v0 = vld [vmem:[#allocation5 + $0x378] sm:$0xff] }
  0xbe   : > { %578 = vmatmul.mubr.f32.gmra.mrb[8].mxu1 %v2866_v9 }
  0xbf   : > { %583 = vmatprep.mubr.f32.mxu1 %v2869_v11  ;;  %2063 = vmatpush1.bf16.msra.mxu1 %v2062_v10  ;;  %v1139_v10 = vld [vmem:[#allocation7 + $0x40] sm:$0xff] }
  0xc0   : > { %2065 = vmatprep.subr.bf16.mxu1 %v2064_v12  ;;  %v1141_v12 = vld [vmem:[#allocation7 + $0x50] sm:$0xff] }
  0xc1   : > { %v2118_v16 = vpack.c.bf16 %v1141_v12, %v1139_v10  ;;  %v2933_v10 = vld [vmem:[%s2819_s14 + $0xd8] sm:$0xff] }
  0xc2   : > { %584 = vmatmul.mubr.f32.gmra.mrb[10].mxu1 %v2874_v17 }
  0xc3   : > { %589 = vmatprep.mubr.f32.mxu1 %v2877_v19  ;;  %2067 = vmatpush1.bf16.msra.mxu1 %v2066_v18  ;;  %v2084_v18 = vpack.c.bf16 %v426_v5, %v422_v4  ;;  %v1154_v4 = vld [vmem:[#allocation7 + $0xb8] sm:$0xff] }
  0xc4   : > { %2069 = vmatprep.subr.bf16.mxu1 %v2068_v20  ;;  %v421_v20 = vld [vmem:[#allocation5 + $0x290] sm:$0xff]  ;;  %2119 = vmatpush1.bf16.msra.mxu0 %v2118_v16  ;;  %v2128_v5 = vpack.c.bf16 %v1154_v4, %v1152_v2  ;;  %v1164_v4 = vld [vmem:[#allocation7 + $0x108] sm:$0xff] }
  0xc5   : > { %v2086_v33 = vpack.c.bf16 %v425_v21, %v421_v20  ;;  %v449_v20 = vld [vmem:[#allocation5 + $0x370] sm:$0xff]  ;;  %v454_v21 = vld [vmem:[#allocation5 + $0x398] sm:$0xff] }
  0xc6   : > { %590 = vmatmul.mubr.f32.gmra.mrb[12].mxu1 %v2882_v25  ;;  %v2100_v36 = vpack.c.bf16 %v458_v22, %v454_v21  ;;  %v465_v2 = vld [vmem:[#allocation5 + $0x3f0] sm:$0xff]  ;;  %v1168_v21 = vld [vmem:[#allocation7 + $0x128] sm:$0xff]  ;;  %v1170_v22 = vld [vmem:[#allocation7 + $0x138] sm:$0xff] }
  0xc7   : > { %595 = vmatprep.mubr.f32.mxu1 %v2885_v26  ;;  %2071 = vmatpush1.bf16.msra.mxu1 %v2070_v27  ;;  %v1146_v27 = vld [vmem:[#allocation7 + $0x78] sm:$0xff] }
  0xc8   : > { %2073 = vmatprep.subr.bf16.mxu1 %v2072_v28  ;;  %v2120_v28 = vpack.c.bf16 %v1146_v27, %v1144_v24  ;;  %v1158_v24 = vld [vmem:[#allocation7 + $0xd8] sm:$0xff] }
  0xc9   : > { %v2132_v27 = vpack.c.bf16 %v1158_v24, %v1156_v23  ;;  %v2144_v23 = vpack.c.bf16 %v1170_v22, %v1168_v21  ;;  %v1167_v24 = vld [vmem:[#allocation7 + $0x120] sm:$0xff]  ;;  %v2989_v21 = vld [vmem:[%s2819_s14 + $0x148] sm:$0xff] }
  0xca   : > { %596 = vmatmul.mubr.f32.gmra.mrb[14].mxu1 %v2890_v38  ;;  %2121 = vmatprep.subr.bf16.mxu0 %v2120_v28  ;;  %v1155_v28 = vld [vmem:[#allocation7 + $0xc0] sm:$0xff]  ;;  %v1184_v22 = vld [vmem:[#allocation7 + $0x1a8] sm:$0xff] }
  0xcb   : > { %601 = vmatprep.mubr.f32.mxu1 %v2893_v39  ;;  %2075 = vmatpush1.bf16.msra.mxu1 %v2074_v42  ;;  %v438_v42 = vld [vmem:[#allocation5 + $0x318] sm:$0xff] }
  0xcc   : > { %2077 = vmatprep.subr.bf16.mxu1 %v2076_v45  ;;  %2123 = vmatpush1.bf16.msra.mxu0 %v2122_v34  ;;  %v1148_v45 = vld [vmem:[#allocation7 + $0x88] sm:$0xff]  ;;  %v2092_v56 = vpack.c.bf16 %v442_v44, %v438_v42  ;;  %v457_v42 = vld [vmem:[#allocation5 + $0x3b0] sm:$0xff]  ;;  %v462_v44 = vld [vmem:[#allocation5 + $0x3d8] sm:$0xff] }
  0xcd   : > { %v2124_v47 = vpack.c.bf16 %v1150_v46, %v1148_v45  ;;  %v466_v45 = vld [vmem:[#allocation5 + $0x3f8] sm:$0xff]  ;;  %v1160_v46 = vld [vmem:[#allocation7 + $0xe8] sm:$0xff] }
  0xce   : > { %602 = vmatmul.mubr.f32.gmra.mrb[16].mxu1 %v2898_v58 }
  0xcf   : > { %607 = vmatprep.mubr.f32.mxu1 %v2901_v60  ;;  %2079 = vmatpush1.bf16.msra.mxu1 %v2078_v61  ;;  %v437_v61 = vld [vmem:[#allocation5 + $0x310] sm:$0xff] }
  0xd0   : > { %2081 = vmatprep.subr.bf16.mxu1 %v2080_v63  ;;  %v446_v63 = vld [vmem:[#allocation5 + $0x358] sm:$0xff]  ;;  %2125 = vmatprep.subr.bf16.mxu0 %v2124_v47  ;;  %v2094_v12 = vpack.c.bf16 %v441_v62, %v437_v61 }
  0xd1   : > { %2127 = vmatpush1.bf16.msra.mxu0 %v2126_v55  ;;  %v2096_v16 = vpack.c.bf16 %v450_v0, %v446_v63  ;;  %v1162_v47 = vld [vmem:[#allocation7 + $0xf8] sm:$0xff]  ;;  %v2946_v55 = vld [vmem:[%s2819_s14 + $0xe0] sm:$0xff]  ;;  %v2104_v63 = vpack.c.bf16 %v466_v45, %v462_v44  ;;  %v461_v0 = vld [vmem:[#allocation5 + $0x3d0] sm:$0xff] }
  0xd2   : > { %608 = vmatmul.mubr.f32.gmra.mrb[18].mxu1 %v2906_v13  ;;  %2129 = vmatprep.subr.bf16.mxu0 %v2128_v5  ;;  %v2136_v48 = vpack.c.bf16 %v1162_v47, %v1160_v46  ;;  %v2949_v62 = vld [vmem:[%s2819_s14 + $0xf8] sm:$0xff]  ;;  %v1173_v44 = vld [vmem:[#allocation7 + $0x150] sm:$0xff]  ;;  %v2973_v47 = vld [vmem:[%s2819_s14 + $0x128] sm:$0xff] }
  0xd3   : > { %613 = vmatprep.mubr.f32.mxu1 %v2909_v14  ;;  %2083 = vmatpush1.bf16.msra.mxu1 %v2082_v15  ;;  %v2130_v15 = vpack.c.bf16 %v1153_v7, %v1151_v6  ;;  %v1166_v5 = vld [vmem:[#allocation7 + $0x118] sm:$0xff]  ;;  %v1163_v7 = vld [vmem:[#allocation7 + $0x100] sm:$0xff]  ;;  %v2970_v45 = vld [vmem:[%s2819_s14 + $0x110] sm:$0xff] }
  0xd4   : > { %2085 = vmatprep.subr.bf16.mxu1 %v2084_v18  ;;  %v445_v18 = vld [vmem:[#allocation5 + $0x350] sm:$0xff]  ;;  %v2140_v6 = vpack.c.bf16 %v1166_v5, %v1164_v4  ;;  %v1180_v4 = vld [vmem:[#allocation7 + $0x188] sm:$0xff]  ;;  %v1182_v5 = vld [vmem:[#allocation7 + $0x198] sm:$0xff] }
  0xd5   : > { %2131 = vmatpush1.bf16.msra.mxu0 %v2130_v15  ;;  %v2098_v34 = vpack.c.bf16 %v449_v20, %v445_v18  ;;  %v2954_v15 = vld [vmem:[%s2819_s14 + $0xf0] sm:$0xff]  ;;  %v2957_v20 = vld [vmem:[%s2819_s14 + $0x108] sm:$0xff] }
  0xd6   : > { %614 = vmatmul.mubr.f32.gmra.mrb[20].mxu1 %v2914_v31  ;;  %2133 = vmatprep.subr.bf16.mxu0 %v2132_v27  ;;  %v1169_v27 = vld [vmem:[#allocation7 + $0x130] sm:$0xff] }
  0xd7   : > { %619 = vmatprep.mubr.f32.mxu1 %v2917_v32  ;;  %2087 = vmatpush1.bf16.msra.mxu1 %v2086_v33  ;;  %v2941_v33 = vld [vmem:[%s2819_s14 + $0xe8] sm:$0xff] }
  0xd8   : > { %2089 = vmatprep.subr.bf16.mxu1 %v2088_v35  ;;  %v2134_v35 = vpack.c.bf16 %v1157_v29, %v1155_v28  ;;  %v2962_v28 = vld [vmem:[%s2819_s14 + $0x100] sm:$0xff]  ;;  %v2146_v29 = vpack.c.bf16 %v1169_v27, %v1167_v24 }
  0xd9   : > { %v1183_v27 = vld [vmem:[#allocation7 + $0x1a0] sm:$0xff] }
  0xda   : > { %620 = vmatmul.mubr.f32.gmra.mrb[22].mxu1 %v2922_v52  ;;  %2135 = vmatpush1.bf16.msra.mxu0 %v2134_v35  ;;  %v1172_v35 = vld [vmem:[#allocation7 + $0x148] sm:$0xff] }
  0xdb   : > { %625 = vmatprep.mubr.f32.mxu1 %v2925_v53  ;;  %2091 = vmatpush1.bf16.msra.mxu1 %v2090_v54  ;;  %v1161_v54 = vld [vmem:[#allocation7 + $0xf0] sm:$0xff] }
  0xdc   : > { %2093 = vmatprep.subr.bf16.mxu1 %v2092_v56  ;;  %v2102_v56 = vpack.c.bf16 %v457_v42, %v453_v37  ;;  %v2138_v61 = vpack.c.bf16 %v1161_v54, %v1159_v50  ;;  %2137 = vmatprep.subr.bf16.mxu0 %v2136_v48  ;;  %v1171_v42 = vld [vmem:[#allocation7 + $0x140] sm:$0xff]  ;;  %v1176_v48 = vld [vmem:[#allocation7 + $0x168] sm:$0xff]  ;;  %v1178_v50 = vld [vmem:[#allocation7 + $0x178] sm:$0xff] }
  0xdd   : > { %v2150_v46 = vpack.c.bf16 %v1173_v44, %v1171_v42  ;;  %v2152_v54 = vpack.c.bf16 %v1178_v50, %v1176_v48  ;;  %v1188_v42 = vld [vmem:[#allocation7 + $0x1c8] sm:$0xff]  ;;  %v1190_v44 = vld [vmem:[#allocation7 + $0x1d8] sm:$0xff]  ;;  %v1187_v48 = vld [vmem:[#allocation7 + $0x1c0] sm:$0xff] }
  0xde   : > { %626 = vmatmul.mubr.f32.gmra.mrb[24].mxu1 %v2930_v8  ;;  %2139 = vmatpush1.bf16.msra.mxu0 %v2138_v61  ;;  %v1177_v61 = vld [vmem:[#allocation7 + $0x170] sm:$0xff] }
  0xdf   : > { %631 = vmatprep.mubr.f32.mxu1 %v2933_v10  ;;  %2095 = vmatpush1.bf16.msra.mxu1 %v2094_v12  ;;  %v1165_v12 = vld [vmem:[#allocation7 + $0x110] sm:$0xff] }
  0xe0   : > { %2097 = vmatprep.subr.bf16.mxu1 %v2096_v16  ;;  %v2106_v16 = vpack.c.bf16 %v465_v2, %v461_v0  ;;  %v2142_v18 = vpack.c.bf16 %v1165_v12, %v1163_v7  ;;  %2141 = vmatprep.subr.bf16.mxu0 %v2140_v6  ;;  %v2981_v2 = vld [vmem:[%s2819_s14 + $0x138] sm:$0xff]  ;;  %v2156_v6 = vpack.c.bf16 %v1182_v5, %v1180_v4  ;;  %v1179_v7 = vld [vmem:[#allocation7 + $0x180] sm:$0xff]  ;;  %v1181_v12 = vld [vmem:[#allocation7 + $0x190] sm:$0xff] }
  0xe1   : > { %v1189_v50 = vld [vmem:[#allocation7 + $0x1d0] sm:$0xff]  ;;  %v1194_v4 = vld [vmem:[#allocation7 + $0x1f8] sm:$0xff] }
  0xe2   : > { %632 = vmatmul.mubr.f32.gmra.mrb[26].mxu1 %v2938_v30  ;;  %2143 = vmatpush1.bf16.msra.mxu0 %v2142_v18  ;;  %v2158_v18 = vpack.c.bf16 %v1181_v12, %v1179_v7  ;;  %v1193_v7 = vld [vmem:[#allocation7 + $0x1f0] sm:$0xff]  ;;  %v3010_v12 = vld [vmem:[%s2819_s14 + $0x160] sm:$0xff] }
  0xe3   : > { %637 = vmatprep.mubr.f32.mxu1 %v2941_v33  ;;  %2099 = vmatpush1.bf16.msra.mxu1 %v2098_v34  ;;  %v2965_v34 = vld [vmem:[%s2819_s14 + $0x118] sm:$0xff] }
  0xe4   : > { %2101 = vmatprep.subr.bf16.mxu1 %v2100_v36  ;;  %2145 = vmatprep.subr.bf16.mxu0 %v2144_v23  ;;  %v1174_v36 = vld [vmem:[#allocation7 + $0x158] sm:$0xff] }
  0xe5   : > { %v2148_v37 = vpack.c.bf16 %v1174_v36, %v1172_v35  ;;  %v1186_v23 = vld [vmem:[#allocation7 + $0x1b8] sm:$0xff]  ;;  %v2994_v35 = vld [vmem:[%s2819_s14 + $0x140] sm:$0xff] }
  0xe6   : > { %638 = vmatmul.mubr.f32.gmra.mrb[28].mxu1 %v2946_v55  ;;  %2147 = vmatpush1.bf16.msra.mxu0 %v2146_v29  ;;  %v2160_v24 = vpack.c.bf16 %v1186_v23, %v1184_v22  ;;  %v1185_v29 = vld [vmem:[#allocation7 + $0x1b0] sm:$0xff]  ;;  %v3013_v22 = vld [vmem:[%s2819_s14 + $0x178] sm:$0xff] }
  0xe7   : > { %643 = vmatprep.mubr.f32.mxu1 %v2949_v62  ;;  %2103 = vmatpush1.bf16.msra.mxu1 %v2102_v56  ;;  %v1175_v56 = vld [vmem:[#allocation7 + $0x160] sm:$0xff]  ;;  %v2162_v36 = vpack.c.bf16 %v1185_v29, %v1183_v27  ;;  %v3018_v23 = vld [vmem:[%s2819_s14 + $0x170] sm:$0xff]  ;;  %v1196_v27 = vld [vmem:[#allocation7 + $0x208] sm:$0xff] }
  0xe8   : > { %2105 = vmatprep.subr.bf16.mxu1 %v2104_v63  ;;  %2149 = vmatprep.subr.bf16.mxu0 %v2148_v37  ;;  %v2978_v63 = vld [vmem:[%s2819_s14 + $0x120] sm:$0xff]  ;;  %v2154_v0 = vpack.c.bf16 %v1177_v61, %v1175_v56  ;;  %v2997_v37 = vld [vmem:[%s2819_s14 + $0x158] sm:$0xff]  ;;  %v2166_v56 = vpack.c.bf16 %v1189_v50, %v1187_v48  ;;  %v3005_v61 = vld [vmem:[%s2819_s14 + $0x168] sm:$0xff] }
  0xe9   : > { %v1198_v29 = vld [vmem:[#allocation7 + $0x218] sm:$0xff]  ;;  %v3037_v48 = vld [vmem:[%s2819_s14 + $0x1a8] sm:$0xff]  ;;  %v3042_v50 = vld [vmem:[%s2819_s14 + $0x1a0] sm:$0xff] }
  0xea   : > { %644 = vmatmul.mubr.f32.gmra.mrb[30].mxu1 %v2954_v15  ;;  %2151 = vmatpush1.bf16.msra.mxu0 %v2150_v46  ;;  %v2164_v46 = vpack.c.bf16 %v1190_v44, %v1188_v42  ;;  %v3026_v42 = vld [vmem:[%s2819_s14 + $0x180] sm:$0xff]  ;;  %v3029_v44 = vld [vmem:[%s2819_s14 + $0x198] sm:$0xff] }
  0xeb   : > { %649 = vmatprep.mubr.f32.mxu1 %v2957_v20  ;;  %2107 = vmatpush1.bf16.msra.mxu1 %v2106_v16  ;;  %v2986_v16 = vld [vmem:[%s2819_s14 + $0x130] sm:$0xff] }
  0xec   : > { %2153 = vmatprep.subr.bf16.mxu0 %v2152_v54  ;;  %v3002_v54 = vld [vmem:[%s2819_s14 + $0x150] sm:$0xff] }
  0xee   : > { %650 = vmatmul.mubr.f32.gmra.mrb[32].mxu1 %v2962_v28  ;;  %2155 = vmatpush1.bf16.msra.mxu0 %v2154_v0  ;;  %v1192_v0 = vld [vmem:[#allocation7 + $0x1e8] sm:$0xff] }
  0xef   : > { %655 = vmatprep.mubr.f32.mxu1 %v2965_v34  ;;  %2157 = vmatprep.subr.bf16.mxu0 %v2156_v6  ;;  %v2168_v5 = vpack.c.bf16 %v1194_v4, %v1192_v0  ;;  %v1191_v6 = vld [vmem:[#allocation7 + $0x1e0] sm:$0xff]  ;;  %v3050_v0 = vld [vmem:[%s2819_s14 + $0x1b0] sm:$0xff]  ;;  %v3053_v4 = vld [vmem:[%s2819_s14 + $0x1c8] sm:$0xff] }
  0xf2   : > { %656 = vmatmul.mubr.f32.gmra.mrb[34].mxu1 %v2970_v45  ;;  %2159 = vmatpush1.bf16.msra.mxu0 %v2158_v18  ;;  %v2170_v18 = vpack.c.bf16 %v1193_v7, %v1191_v6  ;;  %v3061_v6 = vld [vmem:[%s2819_s14 + $0x1d8] sm:$0xff]  ;;  %v3066_v7 = vld [vmem:[%s2819_s14 + $0x1d0] sm:$0xff] }
  0xf3   : > { %661 = vmatprep.mubr.f32.mxu1 %v2973_v47  ;;  %2161 = vmatprep.subr.bf16.mxu0 %v2160_v24  ;;  %v3021_v24 = vld [vmem:[%s2819_s14 + $0x188] sm:$0xff] }
  0xf6   : > { %662 = vmatmul.mubr.f32.gmra.mrb[36].mxu1 %v2978_v63  ;;  %2163 = vmatpush1.bf16.msra.mxu0 %v2162_v36  ;;  %v2172_v36 = vpack.c.bf16 %v1198_v29, %v1196_v27  ;;  %v3074_v27 = vld [vmem:[%s2819_s14 + $0x1e0] sm:$0xff]  ;;  %v3077_v29 = vld [vmem:[%s2819_s14 + $0x1f8] sm:$0xff] }
  0xf7   : > { %667 = vmatprep.mubr.f32.mxu1 %v2981_v2  ;;  %2165 = vmatprep.subr.bf16.mxu0 %v2164_v46  ;;  %v3034_v46 = vld [vmem:[%s2819_s14 + $0x190] sm:$0xff] }
  0xfa   : > { %668 = vmatmul.mubr.f32.gmra.mrb[38].mxu1 %v2986_v16  ;;  %2167 = vmatpush1.bf16.msra.mxu0 %v2166_v56  ;;  %v3045_v56 = vld [vmem:[%s2819_s14 + $0x1b8] sm:$0xff] }
  0xfb   : > { %673 = vmatprep.mubr.f32.mxu1 %v2989_v21  ;;  %2169 = vmatprep.subr.bf16.mxu0 %v2168_v5  ;;  %v3058_v5 = vld [vmem:[%s2819_s14 + $0x1c0] sm:$0xff] }
  0xfe   : > { %674 = vmatmul.mubr.f32.gmra.mrb[40].mxu1 %v2994_v35  ;;  %2171 = vmatpush1.bf16.msra.mxu0 %v2170_v18  ;;  %v3069_v18 = vld [vmem:[%s2819_s14 + $0x1e8] sm:$0xff] }
  0xff   : > { %679 = vmatprep.mubr.f32.mxu1 %v2997_v37  ;;  %2173 = vmatprep.subr.bf16.mxu0 %v2172_v36  ;;  %v3082_v36 = vld [vmem:[%s2819_s14 + $0x1f0] sm:$0xff] }
 0x102   : > { %680 = vmatmul.mubr.f32.gmra.mrb[42].mxu1 %v3002_v54 }
 0x103   : > { %685 = vmatprep.mubr.f32.mxu1 %v3005_v61 }
 0x106   : > { %686 = vmatmul.mubr.f32.gmra.mrb[44].mxu1 %v3010_v12 }
 0x107   : > { %691 = vmatprep.mubr.f32.mxu1 %v3013_v22 }
 0x10a   : > { %692 = vmatmul.mubr.f32.gmra.mrb[46].mxu1 %v3018_v23 }
 0x10b   : > { %697 = vmatprep.mubr.f32.mxu1 %v3021_v24 }
 0x10e   : > { %698 = vmatmul.mubr.f32.gmra.mrb[48].mxu1 %v3026_v42 }
 0x10f   : > { %703 = vmatprep.mubr.f32.mxu1 %v3029_v44 }
 0x112   : > { %704 = vmatmul.mubr.f32.gmra.mrb[50].mxu1 %v3034_v46 }
 0x113   : > { %709 = vmatprep.mubr.f32.mxu1 %v3037_v48 }
 0x116   : > { %710 = vmatmul.mubr.f32.gmra.mrb[52].mxu1 %v3042_v50 }
 0x117   : > { %715 = vmatprep.mubr.f32.mxu1 %v3045_v56 }
 0x11a   : > { %716 = vmatmul.mubr.f32.gmra.mrb[54].mxu1 %v3050_v0 }
 0x11b   : > { %721 = vmatprep.mubr.f32.mxu1 %v3053_v4 }
 0x11e   : > { %722 = vmatmul.mubr.f32.gmra.mrb[56].mxu1 %v3058_v5 }
 0x11f   : > { %727 = vmatprep.mubr.f32.mxu1 %v3061_v6 }
 0x122   : > { %728 = vmatmul.mubr.f32.gmra.mrb[58].mxu1 %v3066_v7 }
 0x123   : > { %733 = vmatprep.mubr.f32.mxu1 %v3069_v18 }
 0x126   : > { %734 = vmatmul.mubr.f32.gmra.mrb[60].mxu1 %v3074_v27 }
 0x127   : > { %739 = vmatprep.mubr.f32.mxu1 %v3077_v29 }
 0x12a   : > { %740 = vmatmul.mubr.f32.gmra.mrb[62].mxu1 %v3082_v36 }
 0x12b   : > { %810 = vmatprep.mubr.f32.mxu1 %v2830_v41  ;;  %v469_v41 = vlaneseq }
 0x12e   : > { %811 = vmatmul.mubr.f32.vlgmr.msra.gmra.mrb[64].mxu1 %v2834_v40  ;;  %v3123_v40 = vshrl.u32 %v469_v41, 7 }
 0x12f   : > { %816 = vmatprep.mubr.f32.mxu1 %v2837_v43 }
 0x130   : > { %v471_v43 = vsub.s32 0, %v3123_v40 }
 0x132   : > { %817 = vmatmul.mubr.f32.gmra.mrb[66].mxu1 %v2842_v49  ;;  %v3132_v49 = vld [vmem:[%s3500_s2] sm:$0xf] }
 0x133   : > { %822 = vmatprep.mubr.f32.mxu1 %v2845_v51  ;;  %v475_v51 = vsub.s32 1, %v3123_v40 }
 0x136   : > { %823 = vmatmul.mubr.f32.gmra.mrb[68].mxu1 %v2850_v57  ;;  %v3139_v57 = vrot.slane %v3132_v49, %v471_v43 }
 0x137   : > { %828 = vmatprep.mubr.f32.mxu1 %v2853_v59  ;;  %v3145_v59 = vrot.slane %v3132_v49, %v475_v51 }
 0x13a   : > { %829 = vmatmul.mubr.f32.gmra.mrb[70].mxu1 %v2858_v1 }
 0x13b   : > { %834 = vmatprep.mubr.f32.mxu1 %v2861_v3 }
 0x13e   : > { %835 = vmatmul.mubr.f32.gmra.mrb[72].mxu1 %v2866_v9 }
 0x13f   : > { %840 = vmatprep.mubr.f32.mxu1 %v2869_v11  ;;  %v1195_v11 = vld [vmem:[#allocation7 + $0x200] sm:$0xff] }
 0x142   : > { %841 = vmatmul.mubr.f32.gmra.mrb[74].mxu1 %v2874_v17  ;;  %v1197_v17 = vld [vmem:[#allocation7 + $0x210] sm:$0xff] }
 0x143   : > { %846 = vmatprep.mubr.f32.mxu1 %v2877_v19 }
 0x146   : > { %847 = vmatmul.mubr.f32.gmra.mrb[76].mxu1 %v2882_v25  ;;  %v1200_v25 = vld [vmem:[#allocation7 + $0x228] sm:$0xff] }
 0x147   : > { %852 = vmatprep.mubr.f32.mxu1 %v2885_v26  ;;  %v1202_v26 = vld [vmem:[#allocation7 + $0x238] sm:$0xff] }
 0x14a   : > { %853 = vmatmul.mubr.f32.gmra.mrb[78].mxu1 %v2890_v38 }
 0x14b   : > { %858 = vmatprep.mubr.f32.mxu1 %v2893_v39 }
 0x14e   : > { %859 = vmatmul.mubr.f32.gmra.mrb[80].mxu1 %v2898_v58  ;;  %v2174_v58 = vpack.c.bf16 %v1197_v17, %v1195_v11 }
 0x14f   : > { %864 = vmatprep.mubr.f32.mxu1 %v2901_v60 }
 0x152   : > { %865 = vmatmul.mubr.f32.gmra.mrb[82].mxu1 %v2906_v13 }
 0x153   : > { %870 = vmatprep.mubr.f32.mxu1 %v2909_v14 }
 0x156   : > { %871 = vmatmul.mubr.f32.gmra.mrb[84].mxu1 %v2914_v31  ;;  %v2176_v31 = vpack.c.bf16 %v1202_v26, %v1200_v25  ;;  %v1211_v26 = vld [vmem:[#allocation7 + $0x280] sm:$0xff] }
 0x157   : > { %876 = vmatprep.mubr.f32.mxu1 %v2917_v32  ;;  %v1199_v32 = vld [vmem:[#allocation7 + $0x220] sm:$0xff] }
 0x15a   : > { %877 = vmatmul.mubr.f32.gmra.mrb[86].mxu1 %v2922_v52  ;;  %v1201_v52 = vld [vmem:[#allocation7 + $0x230] sm:$0xff] }
 0x15b   : > { %882 = vmatprep.mubr.f32.mxu1 %v2925_v53 }
 0x15e   : > { %883 = vmatmul.mubr.f32.gmra.mrb[88].mxu1 %v2930_v8  ;;  %v1204_v8 = vld [vmem:[#allocation7 + $0x248] sm:$0xff] }
 0x15f   : > { %888 = vmatprep.mubr.f32.mxu1 %v2933_v10  ;;  %v1206_v10 = vld [vmem:[#allocation7 + $0x258] sm:$0xff] }
 0x162   : > { %889 = vmatmul.mubr.f32.gmra.mrb[90].mxu1 %v2938_v30 }
 0x163   : > { %894 = vmatprep.mubr.f32.mxu1 %v2941_v33 }
 0x166   : > { %895 = vmatmul.mubr.f32.gmra.mrb[92].mxu1 %v2946_v55  ;;  %v2178_v55 = vpack.c.bf16 %v1201_v52, %v1199_v32 }
 0x167   : > { %900 = vmatprep.mubr.f32.mxu1 %v2949_v62 }
 0x16a   : > { %901 = vmatmul.mubr.f32.gmra.mrb[94].mxu1 %v2954_v15 }
 0x16b   : > { %906 = vmatprep.mubr.f32.mxu1 %v2957_v20 }
 0x16e   : > { %907 = vmatmul.mubr.f32.gmra.mrb[96].mxu1 %v2962_v28  ;;  %v2180_v28 = vpack.c.bf16 %v1206_v10, %v1204_v8  ;;  %v1217_v8 = vld [vmem:[#allocation7 + $0x2b0] sm:$0xff] }
 0x16f   : > { %912 = vmatprep.mubr.f32.mxu1 %v2965_v34  ;;  %v1203_v34 = vld [vmem:[#allocation7 + $0x240] sm:$0xff] }
 0x172   : > { %913 = vmatmul.mubr.f32.gmra.mrb[98].mxu1 %v2970_v45  ;;  %v1205_v45 = vld [vmem:[#allocation7 + $0x250] sm:$0xff] }
 0x173   : > { %918 = vmatprep.mubr.f32.mxu1 %v2973_v47 }
 0x176   : > { %919 = vmatmul.mubr.f32.gmra.mrb[100].mxu1 %v2978_v63  ;;  %v1208_v63 = vld [vmem:[#allocation7 + $0x268] sm:$0xff] }
 0x177   : > { %924 = vmatprep.mubr.f32.mxu1 %v2981_v2  ;;  %v1210_v2 = vld [vmem:[#allocation7 + $0x278] sm:$0xff] }
 0x17a   : > { %925 = vmatmul.mubr.f32.gmra.mrb[102].mxu1 %v2986_v16 }
 0x17b   : > { %930 = vmatprep.mubr.f32.mxu1 %v2989_v21 }
 0x17e   : > { %931 = vmatmul.mubr.f32.gmra.mrb[104].mxu1 %v2994_v35  ;;  %v2182_v35 = vpack.c.bf16 %v1205_v45, %v1203_v34  ;;  %v1219_v34 = vld [vmem:[#allocation7 + $0x2c0] sm:$0xff]  ;;  %v1221_v45 = vld [vmem:[#allocation7 + $0x2d0] sm:$0xff] }
 0x17f   : > { %936 = vmatprep.mubr.f32.mxu1 %v2997_v37 }
 0x181   : > { %v555_v1 = vpop.f32.mrb[0].mxu1 }
 0x182   : > { %v556_v3 = vadd.f32 %v555_v1, %v3139_v57  ;;  %v557_v9 = vpop.f32.mrb[1].mxu1  ;;  %937 = vmatmul.mubr.f32.gmra.mrb[106].mxu1 %v3002_v54  ;;  %v1214_v1 = vld [vmem:[#allocation7 + $0x298] sm:$0xff] }
 0x183   : > { %942 = vmatprep.mubr.f32.mxu1 %v3005_v61  ;;  %v558_v19 = vadd.f32 %v557_v9, %v3145_v59 }
 0x184   : > { %v1003_v60 = vmax.f32 %v556_v3, 0.0 }
 0x185   : > { %v561_v38 = vpop.f32.mrb[2].mxu1  ;;  %v1004_v39 = vmax.f32 %v558_v19, 0.0 }
 0x186   : > { %v562_v13 = vadd.f32 %v561_v38, %v3139_v57  ;;  %v563_v14 = vpop.f32.mrb[3].mxu1  ;;  %943 = vmatmul.mubr.f32.gmra.mrb[108].mxu1 %v3010_v12  ;;  %v2184_v12 = vpack.c.bf16 %v1210_v2, %v1208_v63  ;;  %v1213_v38 = vld [vmem:[#allocation7 + $0x290] sm:$0xff]  ;;  %v1226_v63 = vld [vmem:[#allocation7 + $0x2f8] sm:$0xff] }
 0x187   : > { %v564_v53 = vadd.f32 %v563_v14, %v3145_v59  ;;  %1335 = vmatprep.mubr.f32.mxu0 %v1004_v39  ;;  %948 = vmatprep.mubr.f32.mxu1 %v3013_v22  ;;  %v1207_v22 = vld [vmem:[#allocation7 + $0x260] sm:$0xff]  ;;  %v2190_v14 = vpack.c.bf16 %v1213_v38, %v1211_v26 }
 0x188   : > { %1336 = vmatmul.mubr.f32.vlgmr.msra.gmra.mrb[0].mxu0 %v1003_v60  ;;  %v1007_v62 = vmax.f32 %v562_v13, 0.0 }
 0x189   : > { %v1008_v30 = vmax.f32 %v564_v53, 0.0  ;;  %v567_v33 = vpop.f32.mrb[4].mxu1  ;;  %2175 = vmatpush1.bf16.msra.mxu0 %v2174_v58  ;;  %v1218_v58 = vld [vmem:[#allocation7 + $0x2b8] sm:$0xff]  ;;  %v1215_v53 = vld [vmem:[#allocation7 + $0x2a0] sm:$0xff] }
 0x18a   : > { %v568_v15 = vadd.f32 %v567_v33, %v3139_v57  ;;  %v569_v20 = vpop.f32.mrb[5].mxu1  ;;  %949 = vmatmul.mubr.f32.gmra.mrb[110].mxu1 %v3018_v23  ;;  %2177 = vmatprep.subr.bf16.mxu0 %v2176_v31  ;;  %v1209_v23 = vld [vmem:[#allocation7 + $0x270] sm:$0xff] }
 0x18b   : > { %v570_v47 = vadd.f32 %v569_v20, %v3145_v59  ;;  %1341 = vmatprep.mubr.f32.mxu0 %v1008_v30  ;;  %954 = vmatprep.mubr.f32.mxu1 %v3021_v24  ;;  %v1212_v24 = vld [vmem:[#allocation7 + $0x288] sm:$0xff]  ;;  %v2186_v11 = vpack.c.bf16 %v1209_v23, %v1207_v22  ;;  %v1222_v30 = vld [vmem:[#allocation7 + $0x2d8] sm:$0xff] }
 0x18c   : > { %1342 = vmatmul.mubr.f32.gmra.mrb[2].mxu0 %v1007_v62  ;;  %v1011_v37 = vmax.f32 %v568_v15, 0.0  ;;  %v2188_v25 = vpack.c.bf16 %v1214_v1, %v1212_v24  ;;  %v2194_v62 = vpack.c.bf16 %v1217_v8, %v1215_v53  ;;  %v1230_v23 = vld [vmem:[#allocation7 + $0x318] sm:$0xff] }
 0x18d   : > { %v1012_v16 = vmax.f32 %v570_v47, 0.0  ;;  %v573_v21 = vpop.f32.mrb[6].mxu1  ;;  %2179 = vmatpush1.bf16.msra.mxu0 %v2178_v55 }
 0x18e   : > { %v574_v54 = vadd.f32 %v573_v21, %v3139_v57  ;;  %v575_v61 = vpop.f32.mrb[7].mxu1  ;;  %955 = vmatmul.mubr.f32.gmra.mrb[112].mxu1 %v3026_v42  ;;  %2181 = vmatprep.subr.bf16.mxu0 %v2180_v28  ;;  %v2198_v21 = vpack.c.bf16 %v1221_v45, %v1219_v34 }
 0x18f   : > { %v576_v41 = vadd.f32 %v575_v61, %v3145_v59  ;;  %1347 = vmatprep.mubr.f32.mxu0 %v1012_v16  ;;  %960 = vmatprep.mubr.f32.mxu1 %v3029_v44  ;;  %v1216_v44 = vld [vmem:[#allocation7 + $0x2a8] sm:$0xff]  ;;  %v1223_v61 = vld [vmem:[#allocation7 + $0x2e0] sm:$0xff] }
 0x190   : > { %1348 = vmatmul.mubr.f32.gmra.mrb[4].mxu0 %v1011_v37  ;;  %v1015_v17 = vmax.f32 %v574_v54, 0.0  ;;  %v2192_v52 = vpack.c.bf16 %v1218_v58, %v1216_v44 }
 0x191   : > { %v1016_v3 = vmax.f32 %v576_v41, 0.0  ;;  %v579_v9 = vpop.f32.mrb[8].mxu1  ;;  %2183 = vmatpush1.bf16.msra.mxu0 %v2182_v35 }
 0x192   : > { %v580_v19 = vadd.f32 %v579_v9, %v3139_v57  ;;  %v581_v42 = vpop.f32.mrb[9].mxu1  ;;  %961 = vmatmul.mubr.f32.gmra.mrb[114].mxu1 %v3034_v46  ;;  %2185 = vmatprep.subr.bf16.mxu0 %v2184_v12  ;;  %v1225_v12 = vld [vmem:[#allocation7 + $0x2f0] sm:$0xff] }
 0x193   : > { %v582_v39 = vadd.f32 %v581_v42, %v3145_v59  ;;  %1353 = vmatprep.mubr.f32.mxu0 %v1016_v3  ;;  %966 = vmatprep.mubr.f32.mxu1 %v3037_v48  ;;  %v1220_v48 = vld [vmem:[#allocation7 + $0x2c8] sm:$0xff]  ;;  %v2202_v1 = vpack.c.bf16 %v1225_v12, %v1223_v61 }
 0x194   : > { %1354 = vmatmul.mubr.f32.gmra.mrb[6].mxu0 %v1015_v17  ;;  %v1019_v31 = vmax.f32 %v580_v19, 0.0  ;;  %v2196_v28 = vpack.c.bf16 %v1222_v30, %v1220_v48  ;;  %v1227_v17 = vld [vmem:[#allocation7 + $0x300] sm:$0xff]  ;;  %v1229_v19 = vld [vmem:[#allocation7 + $0x310] sm:$0xff] }
 0x195   : > { %v1020_v60 = vmax.f32 %v582_v39, 0.0  ;;  %v585_v13 = vpop.f32.mrb[10].mxu1  ;;  %2187 = vmatpush1.bf16.msra.mxu0 %v2186_v11  ;;  %v2206_v39 = vpack.c.bf16 %v1229_v19, %v1227_v17  ;;  %v1235_v30 = vld [vmem:[#allocation7 + $0x340] sm:$0xff] }
 0x196   : > { %v586_v32 = vadd.f32 %v585_v13, %v3139_v57  ;;  %v587_v46 = vpop.f32.mrb[11].mxu1  ;;  %967 = vmatmul.mubr.f32.gmra.mrb[116].mxu1 %v3042_v50  ;;  %2189 = vmatprep.subr.bf16.mxu0 %v2188_v25  ;;  %v1234_v25 = vld [vmem:[#allocation7 + $0x338] sm:$0xff]  ;;  %v1231_v13 = vld [vmem:[#allocation7 + $0x320] sm:$0xff] }
 0x197   : > { %v588_v10 = vadd.f32 %v587_v46, %v3145_v59  ;;  %1359 = vmatprep.mubr.f32.mxu0 %v1020_v60  ;;  %972 = vmatprep.mubr.f32.mxu1 %v3045_v56  ;;  %v1224_v56 = vld [vmem:[#allocation7 + $0x2e8] sm:$0xff] }
 0x198   : > { %1360 = vmatmul.mubr.f32.gmra.mrb[8].mxu0 %v1019_v31  ;;  %v1023_v15 = vmax.f32 %v586_v32, 0.0  ;;  %v2200_v54 = vpack.c.bf16 %v1226_v63, %v1224_v56  ;;  %v1238_v32 = vld [vmem:[#allocation7 + $0x358] sm:$0xff]  ;;  %v1241_v56 = vld [vmem:[#allocation7 + $0x370] sm:$0xff] }
 0x199   : > { %v1024_v33 = vmax.f32 %v588_v10, 0.0  ;;  %v591_v55 = vpop.f32.mrb[12].mxu1  ;;  %2191 = vmatpush1.bf16.msra.mxu0 %v2190_v14  ;;  %v1233_v14 = vld [vmem:[#allocation7 + $0x330] sm:$0xff] }
 0x19a   : > { %v592_v20 = vadd.f32 %v591_v55, %v3139_v57  ;;  %v593_v50 = vpop.f32.mrb[13].mxu1  ;;  %973 = vmatmul.mubr.f32.gmra.mrb[118].mxu1 %v3050_v0  ;;  %2193 = vmatprep.subr.bf16.mxu0 %v2192_v52  ;;  %v2210_v53 = vpack.c.bf16 %v1233_v14, %v1231_v13 }
 0x19b   : > { %v594_v47 = vadd.f32 %v593_v50, %v3145_v59  ;;  %1365 = vmatprep.mubr.f32.mxu0 %v1024_v33  ;;  %978 = vmatprep.mubr.f32.mxu1 %v3053_v4  ;;  %v1228_v4 = vld [vmem:[#allocation7 + $0x308] sm:$0xff]  ;;  %v1237_v33 = vld [vmem:[#allocation7 + $0x350] sm:$0xff] }
 0x19c   : > { %1366 = vmatmul.mubr.f32.gmra.mrb[10].mxu0 %v1023_v15  ;;  %v1027_v35 = vmax.f32 %v592_v20, 0.0  ;;  %v2204_v11 = vpack.c.bf16 %v1230_v23, %v1228_v4  ;;  %v2214_v50 = vpack.c.bf16 %v1237_v33, %v1235_v30  ;;  %v1245_v4 = vld [vmem:[#allocation7 + $0x390] sm:$0xff] }
 0x19d   : > { %v1028_v2 = vmax.f32 %v594_v47, 0.0  ;;  %v597_v16 = vpop.f32.mrb[14].mxu1  ;;  %2195 = vmatpush1.bf16.msra.mxu0 %v2194_v62  ;;  %v1242_v62 = vld [vmem:[#allocation7 + $0x378] sm:$0xff]  ;;  %v1239_v47 = vld [vmem:[#allocation7 + $0x360] sm:$0xff] }
 0x19e   : > { %v598_v37 = vadd.f32 %v597_v16, %v3139_v57  ;;  %v599_v0 = vpop.f32.mrb[15].mxu1  ;;  %979 = vmatmul.mubr.f32.gmra.mrb[120].mxu1 %v3058_v5  ;;  %2197 = vmatprep.subr.bf16.mxu0 %v2196_v28  ;;  %v1246_v16 = vld [vmem:[#allocation7 + $0x398] sm:$0xff] }
 0x19f   : > { %v600_v22 = vadd.f32 %v599_v0, %v3145_v59  ;;  %1371 = vmatprep.mubr.f32.mxu0 %v1028_v2  ;;  %984 = vmatprep.mubr.f32.mxu1 %v3061_v6  ;;  %v1232_v6 = vld [vmem:[#allocation7 + $0x328] sm:$0xff] }
 0x1a0   : > { %1372 = vmatmul.mubr.f32.gmra.mrb[12].mxu0 %v1027_v35  ;;  %v1031_v3 = vmax.f32 %v598_v37, 0.0  ;;  %v2208_v60 = vpack.c.bf16 %v1234_v25, %v1232_v6  ;;  %v1244_v2 = vld [vmem:[#allocation7 + $0x388] sm:$0xff]  ;;  %v2218_v37 = vpack.c.bf16 %v1241_v56, %v1239_v47  ;;  %v1249_v6 = vld [vmem:[#allocation7 + $0x3b0] sm:$0xff] }
 0x1a1   : > { %v1032_v41 = vmax.f32 %v600_v22, 0.0  ;;  %v603_v24 = vpop.f32.mrb[16].mxu1  ;;  %2199 = vmatpush1.bf16.msra.mxu0 %v2198_v21  ;;  %v2220_v12 = vpack.c.bf16 %v1246_v16, %v1244_v2  ;;  %v1243_v22 = vld [vmem:[#allocation7 + $0x380] sm:$0xff] }
 0x1a2   : > { %v604_v9 = vadd.f32 %v603_v24, %v3139_v57  ;;  %v605_v5 = vpop.f32.mrb[17].mxu1  ;;  %985 = vmatmul.mubr.f32.gmra.mrb[122].mxu1 %v3066_v7  ;;  %2201 = vmatprep.subr.bf16.mxu0 %v2200_v54  ;;  %v1250_v24 = vld [vmem:[#allocation7 + $0x3b8] sm:$0xff] }
 0x1a3   : > { %v606_v42 = vadd.f32 %v605_v5, %v3145_v59  ;;  %1377 = vmatprep.mubr.f32.mxu0 %v1032_v41  ;;  %990 = vmatprep.mubr.f32.mxu1 %v3069_v18  ;;  %v1236_v18 = vld [vmem:[#allocation7 + $0x348] sm:$0xff] }
 0x1a4   : > { %1378 = vmatmul.mubr.f32.gmra.mrb[14].mxu0 %v1031_v3  ;;  %v1035_v44 = vmax.f32 %v604_v9, 0.0  ;;  %v2212_v48 = vpack.c.bf16 %v1238_v32, %v1236_v18  ;;  %v1248_v41 = vld [vmem:[#allocation7 + $0x3a8] sm:$0xff]  ;;  %v2222_v9 = vpack.c.bf16 %v1245_v4, %v1243_v22  ;;  %v1253_v18 = vld [vmem:[#allocation7 + $0x3d0] sm:$0xff] }
 0x1a5   : > { %v1036_v26 = vmax.f32 %v606_v42, 0.0  ;;  %v609_v38 = vpop.f32.mrb[18].mxu1  ;;  %2203 = vmatpush1.bf16.msra.mxu0 %v2202_v1  ;;  %v2224_v19 = vpack.c.bf16 %v1250_v24, %v1248_v41  ;;  %v1247_v42 = vld [vmem:[#allocation7 + $0x3a0] sm:$0xff] }
 0x1a6   : > { %v610_v58 = vadd.f32 %v609_v38, %v3139_v57  ;;  %v611_v7 = vpop.f32.mrb[19].mxu1  ;;  %991 = vmatmul.mubr.f32.gmra.mrb[124].mxu1 %v3074_v27  ;;  %2205 = vmatprep.subr.bf16.mxu0 %v2204_v11  ;;  %v1254_v38 = vld [vmem:[#allocation7 + $0x3d8] sm:$0xff] }
 0x1a7   : > { %v612_v31 = vadd.f32 %v611_v7, %v3145_v59  ;;  %1383 = vmatprep.mubr.f32.mxu0 %v1036_v26  ;;  %996 = vmatprep.mubr.f32.mxu1 %v3077_v29  ;;  %v1240_v29 = vld [vmem:[#allocation7 + $0x368] sm:$0xff] }
 0x1a8   : > { %1384 = vmatmul.mubr.f32.gmra.mrb[16].mxu0 %v1035_v44  ;;  %v1039_v8 = vmax.f32 %v610_v58, 0.0  ;;  %v1252_v26 = vld [vmem:[#allocation7 + $0x3c8] sm:$0xff]  ;;  %v2226_v58 = vpack.c.bf16 %v1249_v6, %v1247_v42 }
 0x1a9   : > { %v1040_v46 = vmax.f32 %v612_v31, 0.0  ;;  %v615_v52 = vpop.f32.mrb[20].mxu1  ;;  %2207 = vmatpush1.bf16.msra.mxu0 %v2206_v39  ;;  %v2228_v14 = vpack.c.bf16 %v1254_v38, %v1252_v26  ;;  %v1251_v31 = vld [vmem:[#allocation7 + $0x3c0] sm:$0xff] }
 0x1aa   : > { %v616_v10 = vadd.f32 %v615_v52, %v3139_v57  ;;  %v617_v27 = vpop.f32.mrb[21].mxu1  ;;  %997 = vmatmul.mubr.f32.gmra.mrb[126].mxu1 %v3082_v36  ;;  %2209 = vmatprep.subr.bf16.mxu0 %v2208_v60  ;;  %v2216_v36 = vpack.c.bf16 %v1242_v62, %v1240_v29  ;;  %v1258_v52 = vld [vmem:[#allocation7 + $0x3f8] sm:$0xff]  ;;  %v1257_v29 = vld [vmem:[#allocation7 + $0x3f0] sm:$0xff] }
 0x1ab   : > { %v618_v55 = vadd.f32 %v617_v27, %v3145_v59  ;;  %1389 = vmatprep.mubr.f32.mxu0 %v1040_v46  ;;  %v1256_v46 = vld [vmem:[#allocation7 + $0x3e8] sm:$0xff] }
 0x1ac   : > { %1390 = vmatmul.mubr.f32.gmra.mrb[18].mxu0 %v1039_v8  ;;  %v1043_v28 = vmax.f32 %v616_v10, 0.0  ;;  %v2230_v10 = vpack.c.bf16 %v1253_v18, %v1251_v31  ;;  %v2232_v33 = vpack.c.bf16 %v1258_v52, %v1256_v46 }
 0x1ad   : > { %v1044_v15 = vmax.f32 %v618_v55, 0.0  ;;  %v621_v20 = vpop.f32.mrb[22].mxu1  ;;  %2211 = vmatpush1.bf16.msra.mxu0 %v2210_v53  ;;  %v1255_v55 = vld [vmem:[#allocation7 + $0x3e0] sm:$0xff] }
 0x1ae   : > { %v622_v34 = vadd.f32 %v621_v20, %v3139_v57  ;;  %v623_v45 = vpop.f32.mrb[23].mxu1  ;;  %2213 = vmatprep.subr.bf16.mxu0 %v2212_v48 }
 0x1af   : > { %v624_v63 = vadd.f32 %v623_v45, %v3145_v59  ;;  %1395 = vmatprep.mubr.f32.mxu0 %v1044_v15 }
 0x1b0   : > { %1396 = vmatmul.mubr.f32.gmra.mrb[20].mxu0 %v1043_v28  ;;  %v1047_v0 = vmax.f32 %v622_v34, 0.0 }
 0x1b1   : > { %v1048_v21 = vmax.f32 %v624_v63, 0.0  ;;  %v627_v35 = vpop.f32.mrb[24].mxu1  ;;  %2215 = vmatpush1.bf16.msra.mxu0 %v2214_v50  ;;  %v2234_v50 = vpack.c.bf16 %v1257_v29, %v1255_v55 }
 0x1b2   : > { %v628_v54 = vadd.f32 %v627_v35, %v3139_v57  ;;  %v629_v61 = vpop.f32.mrb[25].mxu1  ;;  %2217 = vmatprep.subr.bf16.mxu0 %v2216_v36 }
 0x1b3   : > { %v630_v23 = vadd.f32 %v629_v61, %v3145_v59  ;;  %1401 = vmatprep.mubr.f32.mxu0 %v1048_v21 }
 0x1b4   : > { %1402 = vmatmul.mubr.f32.gmra.mrb[22].mxu0 %v1047_v0  ;;  %v1051_v5 = vmax.f32 %v628_v54, 0.0 }
 0x1b5   : > { %v1052_v1 = vmax.f32 %v630_v23, 0.0  ;;  %v633_v3 = vpop.f32.mrb[26].mxu1  ;;  %2219 = vmatpush1.bf16.msra.mxu0 %v2218_v37 }
 0x1b6   : > { %v634_v11 = vadd.f32 %v633_v3, %v3139_v57  ;;  %v635_v17 = vpop.f32.mrb[27].mxu1  ;;  %2221 = vmatprep.subr.bf16.mxu0 %v2220_v12 }
 0x1b7   : > { %v636_v25 = vadd.f32 %v635_v17, %v3145_v59  ;;  %1407 = vmatprep.mubr.f32.mxu0 %v1052_v1 }
 0x1b8   : > { %1408 = vmatmul.mubr.f32.gmra.mrb[24].mxu0 %v1051_v5  ;;  %v1055_v7 = vmax.f32 %v634_v11, 0.0 }
 0x1b9   : > { %v1056_v39 = vmax.f32 %v636_v25, 0.0  ;;  %v639_v44 = vpop.f32.mrb[28].mxu1  ;;  %2223 = vmatpush1.bf16.msra.mxu0 %v2222_v9 }
 0x1ba   : > { %v640_v60 = vadd.f32 %v639_v44, %v3139_v57  ;;  %v641_v13 = vpop.f32.mrb[29].mxu1  ;;  %2225 = vmatprep.subr.bf16.mxu0 %v2224_v19 }
 0x1bb   : > { %v642_v32 = vadd.f32 %v641_v13, %v3145_v59  ;;  %1413 = vmatprep.mubr.f32.mxu0 %v1056_v39 }
 0x1bc   : > { %1414 = vmatmul.mubr.f32.gmra.mrb[26].mxu0 %v1055_v7  ;;  %v1059_v27 = vmax.f32 %v640_v60, 0.0 }
 0x1bd   : > { %v1060_v53 = vmax.f32 %v642_v32, 0.0  ;;  %v645_v8 = vpop.f32.mrb[30].mxu1  ;;  %2227 = vmatpush1.bf16.msra.mxu0 %v2226_v58 }
 0x1be   : > { %v646_v48 = vadd.f32 %v645_v8, %v3139_v57  ;;  %v647_v30 = vpop.f32.mrb[31].mxu1  ;;  %2229 = vmatprep.subr.bf16.mxu0 %v2228_v14 }
 0x1bf   : > { %v648_v62 = vadd.f32 %v647_v30, %v3145_v59  ;;  %1419 = vmatprep.mubr.f32.mxu0 %v1060_v53 }
 0x1c0   : > { %1420 = vmatmul.mubr.f32.gmra.mrb[28].mxu0 %v1059_v27  ;;  %v1063_v28 = vmax.f32 %v646_v48, 0.0 }
 0x1c1   : > { %v1064_v15 = vmax.f32 %v648_v62, 0.0  ;;  %v651_v20 = vpop.f32.mrb[32].mxu1  ;;  %2231 = vmatpush1.bf16.msra.mxu0 %v2230_v10 }
 0x1c2   : > { %v652_v34 = vadd.f32 %v651_v20, %v3139_v57  ;;  %v653_v45 = vpop.f32.mrb[33].mxu1  ;;  %2233 = vmatprep.subr.bf16.mxu0 %v2232_v33 }
 0x1c3   : > { %v654_v36 = vadd.f32 %v653_v45, %v3145_v59  ;;  %1425 = vmatprep.mubr.f32.mxu0 %v1064_v15 }
 0x1c4   : > { %1426 = vmatmul.mubr.f32.gmra.mrb[30].mxu0 %v1063_v28  ;;  %v1067_v63 = vmax.f32 %v652_v34, 0.0 }
 0x1c5   : > { %v1068_v47 = vmax.f32 %v654_v36, 0.0  ;;  %v657_v56 = vpop.f32.mrb[34].mxu1  ;;  %2235 = vmatpush1.bf16.msra.mxu0 %v2234_v50 }
 0x1c6   : > { %v658_v2 = vadd.f32 %v657_v56, %v3139_v57  ;;  %v659_v16 = vpop.f32.mrb[35].mxu1 }
 0x1c7   : > { %v660_v21 = vadd.f32 %v659_v16, %v3145_v59  ;;  %1431 = vmatprep.mubr.f32.mxu0 %v1068_v47 }
 0x1c8   : > { %1432 = vmatmul.mubr.f32.gmra.mrb[32].mxu0 %v1067_v63  ;;  %v1071_v0 = vmax.f32 %v658_v2, 0.0 }
 0x1c9   : > { %v1072_v35 = vmax.f32 %v660_v21, 0.0  ;;  %v663_v37 = vpop.f32.mrb[36].mxu1 }
 0x1ca   : > { %v664_v54 = vadd.f32 %v663_v37, %v3139_v57  ;;  %v665_v61 = vpop.f32.mrb[37].mxu1 }
 0x1cb   : > { %v666_v12 = vadd.f32 %v665_v61, %v3145_v59  ;;  %1437 = vmatprep.mubr.f32.mxu0 %v1072_v35 }
 0x1cc   : > { %1438 = vmatmul.mubr.f32.gmra.mrb[34].mxu0 %v1071_v0  ;;  %v1075_v23 = vmax.f32 %v664_v54, 0.0 }
 0x1cd   : > { %v1076_v22 = vmax.f32 %v666_v12, 0.0  ;;  %v669_v4 = vpop.f32.mrb[38].mxu1 }
 0x1ce   : > { %v670_v41 = vadd.f32 %v669_v4, %v3139_v57  ;;  %v671_v24 = vpop.f32.mrb[39].mxu1 }
 0x1cf   : > { %v672_v1 = vadd.f32 %v671_v24, %v3145_v59  ;;  %1443 = vmatprep.mubr.f32.mxu0 %v1076_v22 }
 0x1d0   : > { %1444 = vmatmul.mubr.f32.gmra.mrb[36].mxu0 %v1075_v23  ;;  %v1079_v5 = vmax.f32 %v670_v41, 0.0 }
 0x1d1   : > { %v1080_v3 = vmax.f32 %v672_v1, 0.0  ;;  %v675_v9 = vpop.f32.mrb[40].mxu1 }
 0x1d2   : > { %v676_v11 = vadd.f32 %v675_v9, %v3139_v57  ;;  %v677_v17 = vpop.f32.mrb[41].mxu1 }
 0x1d3   : > { %v678_v19 = vadd.f32 %v677_v17, %v3145_v59  ;;  %1449 = vmatprep.mubr.f32.mxu0 %v1080_v3 }
 0x1d4   : > { %1450 = vmatmul.mubr.f32.gmra.mrb[38].mxu0 %v1079_v5  ;;  %v1083_v25 = vmax.f32 %v676_v11, 0.0 }
 0x1d5   : > { %v1084_v42 = vmax.f32 %v678_v19, 0.0  ;;  %v681_v6 = vpop.f32.mrb[42].mxu1 }
 0x1d6   : > { %v682_v26 = vadd.f32 %v681_v6, %v3139_v57  ;;  %v683_v38 = vpop.f32.mrb[43].mxu1  ;;  %v479_v6 = vsub.s32 2, %v3123_v40 }
 0x1d7   : > { %v684_v39 = vadd.f32 %v683_v38, %v3145_v59  ;;  %1455 = vmatprep.mubr.f32.mxu0 %v1084_v42 }
 0x1d8   : > { %1456 = vmatmul.mubr.f32.gmra.mrb[40].mxu0 %v1083_v25  ;;  %v1087_v7 = vmax.f32 %v682_v26, 0.0  ;;  %v483_v26 = vsub.s32 3, %v3123_v40 }
 0x1d9   : > { %v1088_v44 = vmax.f32 %v684_v39, 0.0  ;;  %v687_v58 = vpop.f32.mrb[44].mxu1 }
 0x1da   : > { %v688_v60 = vadd.f32 %v687_v58, %v3139_v57  ;;  %v689_v13 = vpop.f32.mrb[45].mxu1 }
 0x1db   : > { %v690_v14 = vadd.f32 %v689_v13, %v3145_v59  ;;  %1461 = vmatprep.mubr.f32.mxu0 %v1088_v44 }
 0x1dc   : > { %1462 = vmatmul.mubr.f32.gmra.mrb[42].mxu0 %v1087_v7  ;;  %v1091_v32 = vmax.f32 %v688_v60, 0.0  ;;  %v3234_v60 = vrot.slane %v3132_v49, %v479_v6 }
 0x1dd   : > { %v1092_v31 = vmax.f32 %v690_v14, 0.0  ;;  %v693_v18 = vpop.f32.mrb[46].mxu1  ;;  %v3238_v14 = vrot.slane %v3132_v49, %v483_v26 }
 0x1de   : > { %v694_v46 = vadd.f32 %v693_v18, %v3139_v57  ;;  %v695_v52 = vpop.f32.mrb[47].mxu1 }
 0x1df   : > { %v696_v53 = vadd.f32 %v695_v52, %v3145_v59  ;;  %1467 = vmatprep.mubr.f32.mxu0 %v1092_v31 }
 0x1e0   : > { %1468 = vmatmul.mubr.f32.gmra.mrb[44].mxu0 %v1091_v32  ;;  %v1095_v27 = vmax.f32 %v694_v46, 0.0 }
 0x1e1   : > { %v1096_v8 = vmax.f32 %v696_v53, 0.0  ;;  %v699_v10 = vpop.f32.mrb[48].mxu1 }
 0x1e2   : > { %v700_v48 = vadd.f32 %v699_v10, %v3139_v57  ;;  %v701_v30 = vpop.f32.mrb[49].mxu1 }
 0x1e3   : > { %v702_v33 = vadd.f32 %v701_v30, %v3145_v59  ;;  %1473 = vmatprep.mubr.f32.mxu0 %v1096_v8 }
 0x1e4   : > { %1474 = vmatmul.mubr.f32.gmra.mrb[46].mxu0 %v1095_v27  ;;  %v1099_v62 = vmax.f32 %v700_v48, 0.0 }
 0x1e5   : > { %v1100_v55 = vmax.f32 %v702_v33, 0.0  ;;  %v705_v29 = vpop.f32.mrb[50].mxu1 }
 0x1e6   : > { %v706_v15 = vadd.f32 %v705_v29, %v3139_v57  ;;  %v707_v20 = vpop.f32.mrb[51].mxu1 }
 0x1e7   : > { %v708_v50 = vadd.f32 %v707_v20, %v3145_v59  ;;  %1479 = vmatprep.mubr.f32.mxu0 %v1100_v55 }
 0x1e8   : > { %1480 = vmatmul.mubr.f32.gmra.mrb[48].mxu0 %v1099_v62  ;;  %v1103_v45 = vmax.f32 %v706_v15, 0.0 }
 0x1e9   : > { %v1104_v28 = vmax.f32 %v708_v50, 0.0  ;;  %v711_v34 = vpop.f32.mrb[52].mxu1 }
 0x1ea   : > { %v712_v36 = vadd.f32 %v711_v34, %v3139_v57  ;;  %v713_v47 = vpop.f32.mrb[53].mxu1 }
 0x1eb   : > { %v714_v56 = vadd.f32 %v713_v47, %v3145_v59  ;;  %1485 = vmatprep.mubr.f32.mxu0 %v1104_v28 }
 0x1ec   : > { %1486 = vmatmul.mubr.f32.gmra.mrb[50].mxu0 %v1103_v45  ;;  %v1107_v16 = vmax.f32 %v712_v36, 0.0 }
 0x1ed   : > { %v1108_v63 = vmax.f32 %v714_v56, 0.0  ;;  %v717_v2 = vpop.f32.mrb[54].mxu1 }
 0x1ee   : > { %v718_v21 = vadd.f32 %v717_v2, %v3139_v57  ;;  %v719_v35 = vpop.f32.mrb[55].mxu1 }
 0x1ef   : > { %v720_v37 = vadd.f32 %v719_v35, %v3145_v59  ;;  %1491 = vmatprep.mubr.f32.mxu0 %v1108_v63 }
 0x1f0   : > { %1492 = vmatmul.mubr.f32.gmra.mrb[52].mxu0 %v1107_v16  ;;  %v1111_v61 = vmax.f32 %v718_v21, 0.0 }
 0x1f1   : > { %v1112_v0 = vmax.f32 %v720_v37, 0.0  ;;  %v723_v54 = vpop.f32.mrb[56].mxu1 }
 0x1f2   : > { %v724_v12 = vadd.f32 %v723_v54, %v3139_v57  ;;  %v725_v22 = vpop.f32.mrb[57].mxu1 }
 0x1f3   : > { %v726_v4 = vadd.f32 %v725_v22, %v3145_v59  ;;  %1497 = vmatprep.mubr.f32.mxu0 %v1112_v0 }
 0x1f4   : > { %1498 = vmatmul.mubr.f32.gmra.mrb[54].mxu0 %v1111_v61  ;;  %v1115_v24 = vmax.f32 %v724_v12, 0.0 }
 0x1f5   : > { %v1116_v23 = vmax.f32 %v726_v4, 0.0  ;;  %v729_v41 = vpop.f32.mrb[58].mxu1 }
 0x1f6   : > { %v730_v1 = vadd.f32 %v729_v41, %v3139_v57  ;;  %v731_v3 = vpop.f32.mrb[59].mxu1 }
 0x1f7   : > { %v732_v9 = vadd.f32 %v731_v3, %v3145_v59  ;;  %1503 = vmatprep.mubr.f32.mxu0 %v1116_v23 }
 0x1f8   : > { %1504 = vmatmul.mubr.f32.gmra.mrb[56].mxu0 %v1115_v24  ;;  %v1119_v17 = vmax.f32 %v730_v1, 0.0 }
 0x1f9   : > { %v1120_v5 = vmax.f32 %v732_v9, 0.0  ;;  %v735_v11 = vpop.f32.mrb[60].mxu1 }
 0x1fa   : > { %v736_v19 = vadd.f32 %v735_v11, %v3139_v57  ;;  %v737_v42 = vpop.f32.mrb[61].mxu1 }
 0x1fb   : > { %v738_v25 = vadd.f32 %v737_v42, %v3145_v59  ;;  %1509 = vmatprep.mubr.f32.mxu0 %v1120_v5 }
 0x1fc   : > { %1510 = vmatmul.mubr.f32.gmra.mrb[58].mxu0 %v1119_v17  ;;  %v1123_v44 = vmax.f32 %v736_v19, 0.0 }
 0x1fd   : > { %v1124_v38 = vmax.f32 %v738_v25, 0.0  ;;  %v741_v39 = vpop.f32.mrb[62].mxu1 }
 0x1fe   : > { %v742_v58 = vadd.f32 %v741_v39, %v3139_v57  ;;  %v743_v7 = vpop.f32.mrb[63].mxu1 }
 0x1ff   : > { %v744_v13 = vadd.f32 %v743_v7, %v3145_v59  ;;  %1515 = vmatprep.mubr.f32.mxu0 %v1124_v38 }
 0x200   : > { %1516 = vmatmul.mubr.f32.gmra.mrb[60].mxu0 %v1123_v44  ;;  %v1127_v32 = vmax.f32 %v742_v58, 0.0 }
 0x201   : > { %v1128_v31 = vmax.f32 %v744_v13, 0.0  ;;  %v812_v18 = vpop.f32.mrb[64].mxu1 }
 0x202   : > { %v813_v46 = vadd.f32 %v812_v18, %v3234_v60  ;;  %v814_v52 = vpop.f32.mrb[65].mxu1 }
 0x203   : > { %v815_v53 = vadd.f32 %v814_v52, %v3238_v14  ;;  %1521 = vmatprep.mubr.f32.mxu0 %v1128_v31 }
 0x204   : > { %1522 = vmatmul.mubr.f32.gmra.mrb[62].mxu0 %v1127_v32  ;;  %v1005_v10 = vmax.f32 %v813_v46, 0.0 }
 0x205   : > { %v1006_v57 = vmax.f32 %v815_v53, 0.0  ;;  %v818_v8 = vpop.f32.mrb[66].mxu1 }
 0x206   : > { %v819_v59 = vadd.f32 %v818_v8, %v3234_v60  ;;  %v820_v27 = vpop.f32.mrb[67].mxu1 }
 0x207   : > { %v821_v49 = vadd.f32 %v820_v27, %v3238_v14  ;;  %1592 = vmatprep.mubr.f32.mxu0 %v1006_v57 }
 0x208   : > { %1593 = vmatmul.mubr.f32.vlgmr.msra.gmra.mrb[0].mxu0 %v1005_v10  ;;  %v1009_v33 = vmax.f32 %v819_v59, 0.0 }
 0x209   : > { %v1010_v48 = vmax.f32 %v821_v49, 0.0  ;;  %v824_v30 = vpop.f32.mrb[68].mxu1 }
 0x20a   : > { %v825_v55 = vadd.f32 %v824_v30, %v3234_v60  ;;  %v826_v29 = vpop.f32.mrb[69].mxu1 }
 0x20b   : > { %v827_v62 = vadd.f32 %v826_v29, %v3238_v14  ;;  %1598 = vmatprep.mubr.f32.mxu0 %v1010_v48 }
 0x20c   : > { %1599 = vmatmul.mubr.f32.gmra.mrb[2].mxu0 %v1009_v33  ;;  %v1013_v50 = vmax.f32 %v825_v55, 0.0 }
 0x20d   : > { %v1014_v15 = vmax.f32 %v827_v62, 0.0  ;;  %v830_v20 = vpop.f32.mrb[70].mxu1 }
 0x20e   : > { %v831_v28 = vadd.f32 %v830_v20, %v3234_v60  ;;  %v832_v34 = vpop.f32.mrb[71].mxu1 }
 0x20f   : > { %v833_v45 = vadd.f32 %v832_v34, %v3238_v14  ;;  %1604 = vmatprep.mubr.f32.mxu0 %v1014_v15 }
 0x210   : > { %1605 = vmatmul.mubr.f32.gmra.mrb[4].mxu0 %v1013_v50  ;;  %v1017_v56 = vmax.f32 %v831_v28, 0.0 }
 0x211   : > { %v1018_v36 = vmax.f32 %v833_v45, 0.0  ;;  %v836_v47 = vpop.f32.mrb[72].mxu1 }
 0x212   : > { %v837_v63 = vadd.f32 %v836_v47, %v3234_v60  ;;  %v838_v2 = vpop.f32.mrb[73].mxu1 }
 0x213   : > { %v839_v16 = vadd.f32 %v838_v2, %v3238_v14  ;;  %1610 = vmatprep.mubr.f32.mxu0 %v1018_v36 }
 0x214   : > { %1611 = vmatmul.mubr.f32.gmra.mrb[6].mxu0 %v1017_v56  ;;  %v1021_v37 = vmax.f32 %v837_v63, 0.0 }
 0x215   : > { %v1022_v21 = vmax.f32 %v839_v16, 0.0  ;;  %v842_v35 = vpop.f32.mrb[74].mxu1 }
 0x216   : > { %v843_v0 = vadd.f32 %v842_v35, %v3234_v60  ;;  %v844_v54 = vpop.f32.mrb[75].mxu1 }
 0x217   : > { %v845_v61 = vadd.f32 %v844_v54, %v3238_v14  ;;  %1616 = vmatprep.mubr.f32.mxu0 %v1022_v21 }
 0x218   : > { %1617 = vmatmul.mubr.f32.gmra.mrb[8].mxu0 %v1021_v37  ;;  %v1025_v4 = vmax.f32 %v843_v0, 0.0 }
 0x219   : > { %v1026_v12 = vmax.f32 %v845_v61, 0.0  ;;  %v848_v22 = vpop.f32.mrb[76].mxu1 }
 0x21a   : > { %v849_v23 = vadd.f32 %v848_v22, %v3234_v60  ;;  %v850_v41 = vpop.f32.mrb[77].mxu1 }
 0x21b   : > { %v851_v24 = vadd.f32 %v850_v41, %v3238_v14  ;;  %1622 = vmatprep.mubr.f32.mxu0 %v1026_v12 }
 0x21c   : > { %1623 = vmatmul.mubr.f32.gmra.mrb[10].mxu0 %v1025_v4  ;;  %v1029_v9 = vmax.f32 %v849_v23, 0.0 }
 0x21d   : > { %v1030_v1 = vmax.f32 %v851_v24, 0.0  ;;  %v854_v3 = vpop.f32.mrb[78].mxu1 }
 0x21e   : > { %v855_v5 = vadd.f32 %v854_v3, %v3234_v60  ;;  %v856_v11 = vpop.f32.mrb[79].mxu1 }
 0x21f   : > { %v857_v17 = vadd.f32 %v856_v11, %v3238_v14  ;;  %1628 = vmatprep.mubr.f32.mxu0 %v1030_v1 }
 0x220   : > { %1629 = vmatmul.mubr.f32.gmra.mrb[12].mxu0 %v1029_v9  ;;  %v1033_v6 = vmax.f32 %v855_v5, 0.0 }
 0x221   : > { %v1034_v19 = vmax.f32 %v857_v17, 0.0  ;;  %v860_v42 = vpop.f32.mrb[80].mxu1 }
 0x222   : > { %v861_v25 = vadd.f32 %v860_v42, %v3234_v60  ;;  %v862_v26 = vpop.f32.mrb[81].mxu1 }
 0x223   : > { %v863_v38 = vadd.f32 %v862_v26, %v3238_v14  ;;  %1634 = vmatprep.mubr.f32.mxu0 %v1034_v19 }
 0x224   : > { %1635 = vmatmul.mubr.f32.gmra.mrb[14].mxu0 %v1033_v6  ;;  %v1037_v58 = vmax.f32 %v861_v25, 0.0 }
 0x225   : > { %v1038_v39 = vmax.f32 %v863_v38, 0.0  ;;  %v866_v44 = vpop.f32.mrb[82].mxu1 }
 0x226   : > { %v867_v7 = vadd.f32 %v866_v44, %v3234_v60  ;;  %v868_v13 = vpop.f32.mrb[83].mxu1 }
 0x227   : > { %v869_v31 = vadd.f32 %v868_v13, %v3238_v14  ;;  %1640 = vmatprep.mubr.f32.mxu0 %v1038_v39 }
 0x228   : > { %1641 = vmatmul.mubr.f32.gmra.mrb[16].mxu0 %v1037_v58  ;;  %v1041_v46 = vmax.f32 %v867_v7, 0.0 }
 0x229   : > { %v1042_v18 = vmax.f32 %v869_v31, 0.0  ;;  %v872_v32 = vpop.f32.mrb[84].mxu1 }
 0x22a   : > { %v873_v52 = vadd.f32 %v872_v32, %v3234_v60  ;;  %v874_v53 = vpop.f32.mrb[85].mxu1 }
 0x22b   : > { %v875_v57 = vadd.f32 %v874_v53, %v3238_v14  ;;  %1646 = vmatprep.mubr.f32.mxu0 %v1042_v18 }
 0x22c   : > { %1647 = vmatmul.mubr.f32.gmra.mrb[18].mxu0 %v1041_v46  ;;  %v1045_v59 = vmax.f32 %v873_v52, 0.0 }
 0x22d   : > { %v1046_v8 = vmax.f32 %v875_v57, 0.0  ;;  %v878_v10 = vpop.f32.mrb[86].mxu1 }
 0x22e   : > { %v879_v27 = vadd.f32 %v878_v10, %v3234_v60  ;;  %v880_v49 = vpop.f32.mrb[87].mxu1 }
 0x22f   : > { %v881_v48 = vadd.f32 %v880_v49, %v3238_v14  ;;  %1652 = vmatprep.mubr.f32.mxu0 %v1046_v8 }
 0x230   : > { %1653 = vmatmul.mubr.f32.gmra.mrb[20].mxu0 %v1045_v59  ;;  %v1049_v55 = vmax.f32 %v879_v27, 0.0 }
 0x231   : > { %v1050_v30 = vmax.f32 %v881_v48, 0.0  ;;  %v884_v33 = vpop.f32.mrb[88].mxu1 }
 0x232   : > { %v885_v29 = vadd.f32 %v884_v33, %v3234_v60  ;;  %v886_v62 = vpop.f32.mrb[89].mxu1 }
 0x233   : > { %v887_v15 = vadd.f32 %v886_v62, %v3238_v14  ;;  %1658 = vmatprep.mubr.f32.mxu0 %v1050_v30 }
 0x234   : > { %1659 = vmatmul.mubr.f32.gmra.mrb[22].mxu0 %v1049_v55  ;;  %v1053_v28 = vmax.f32 %v885_v29, 0.0 }
 0x235   : > { %v1054_v20 = vmax.f32 %v887_v15, 0.0  ;;  %v890_v50 = vpop.f32.mrb[90].mxu1 }
 0x236   : > { %v891_v34 = vadd.f32 %v890_v50, %v3234_v60  ;;  %v892_v45 = vpop.f32.mrb[91].mxu1 }
 0x237   : > { %v893_v36 = vadd.f32 %v892_v45, %v3238_v14  ;;  %1664 = vmatprep.mubr.f32.mxu0 %v1054_v20 }
 0x238   : > { %1665 = vmatmul.mubr.f32.gmra.mrb[24].mxu0 %v1053_v28  ;;  %v1057_v63 = vmax.f32 %v891_v34, 0.0 }
 0x239   : > { %v1058_v47 = vmax.f32 %v893_v36, 0.0  ;;  %v896_v56 = vpop.f32.mrb[92].mxu1 }
 0x23a   : > { %v897_v2 = vadd.f32 %v896_v56, %v3234_v60  ;;  %v898_v16 = vpop.f32.mrb[93].mxu1 }
 0x23b   : > { %v899_v21 = vadd.f32 %v898_v16, %v3238_v14  ;;  %1670 = vmatprep.mubr.f32.mxu0 %v1058_v47 }
 0x23c   : > { %1671 = vmatmul.mubr.f32.gmra.mrb[26].mxu0 %v1057_v63  ;;  %v1061_v0 = vmax.f32 %v897_v2, 0.0 }
 0x23d   : > { %v1062_v35 = vmax.f32 %v899_v21, 0.0  ;;  %v902_v37 = vpop.f32.mrb[94].mxu1 }
 0x23e   : > { %v903_v54 = vadd.f32 %v902_v37, %v3234_v60  ;;  %v904_v61 = vpop.f32.mrb[95].mxu1 }
 0x23f   : > { %v905_v12 = vadd.f32 %v904_v61, %v3238_v14  ;;  %1676 = vmatprep.mubr.f32.mxu0 %v1062_v35 }
 0x240   : > { %1677 = vmatmul.mubr.f32.gmra.mrb[28].mxu0 %v1061_v0  ;;  %v1065_v23 = vmax.f32 %v903_v54, 0.0 }
 0x241   : > { %v1066_v22 = vmax.f32 %v905_v12, 0.0  ;;  %v908_v4 = vpop.f32.mrb[96].mxu1 }
 0x242   : > { %v909_v41 = vadd.f32 %v908_v4, %v3234_v60  ;;  %v910_v24 = vpop.f32.mrb[97].mxu1 }
 0x243   : > { %v911_v1 = vadd.f32 %v910_v24, %v3238_v14  ;;  %1682 = vmatprep.mubr.f32.mxu0 %v1066_v22 }
 0x244   : > { %1683 = vmatmul.mubr.f32.gmra.mrb[30].mxu0 %v1065_v23  ;;  %v1069_v5 = vmax.f32 %v909_v41, 0.0 }
 0x245   : > { %v1070_v3 = vmax.f32 %v911_v1, 0.0  ;;  %v914_v9 = vpop.f32.mrb[98].mxu1 }
 0x246   : > { %v915_v11 = vadd.f32 %v914_v9, %v3234_v60  ;;  %v916_v17 = vpop.f32.mrb[99].mxu1 }
 0x247   : > { %v917_v19 = vadd.f32 %v916_v17, %v3238_v14  ;;  %1688 = vmatprep.mubr.f32.mxu0 %v1070_v3 }
 0x248   : > { %1689 = vmatmul.mubr.f32.gmra.mrb[32].mxu0 %v1069_v5  ;;  %v1073_v25 = vmax.f32 %v915_v11, 0.0 }
 0x249   : > { %v1074_v42 = vmax.f32 %v917_v19, 0.0  ;;  %v920_v6 = vpop.f32.mrb[100].mxu1 }
 0x24a   : > { %v921_v26 = vadd.f32 %v920_v6, %v3234_v60  ;;  %v922_v38 = vpop.f32.mrb[101].mxu1 }
 0x24b   : > { %v923_v39 = vadd.f32 %v922_v38, %v3238_v14  ;;  %1694 = vmatprep.mubr.f32.mxu0 %v1074_v42 }
 0x24c   : > { %1695 = vmatmul.mubr.f32.gmra.mrb[34].mxu0 %v1073_v25  ;;  %v1077_v7 = vmax.f32 %v921_v26, 0.0 }
 0x24d   : > { %v1078_v44 = vmax.f32 %v923_v39, 0.0  ;;  %v926_v58 = vpop.f32.mrb[102].mxu1 }
 0x24e   : > { %v927_v13 = vadd.f32 %v926_v58, %v3234_v60  ;;  %v928_v31 = vpop.f32.mrb[103].mxu1 }
 0x24f   : > { %v929_v18 = vadd.f32 %v928_v31, %v3238_v14  ;;  %1700 = vmatprep.mubr.f32.mxu0 %v1078_v44 }
 0x250   : > { %1701 = vmatmul.mubr.f32.gmra.mrb[36].mxu0 %v1077_v7  ;;  %v1081_v52 = vmax.f32 %v927_v13, 0.0 }
 0x251   : > { %v1082_v32 = vmax.f32 %v929_v18, 0.0  ;;  %v932_v46 = vpop.f32.mrb[104].mxu1 }
 0x252   : > { %v933_v53 = vadd.f32 %v932_v46, %v3234_v60  ;;  %v934_v57 = vpop.f32.mrb[105].mxu1 }
 0x253   : > { %v935_v8 = vadd.f32 %v934_v57, %v3238_v14  ;;  %1706 = vmatprep.mubr.f32.mxu0 %v1082_v32 }
 0x254   : > { %1707 = vmatmul.mubr.f32.gmra.mrb[38].mxu0 %v1081_v52  ;;  %v1085_v27 = vmax.f32 %v933_v53, 0.0 }
 0x255   : > { %v1086_v10 = vmax.f32 %v935_v8, 0.0  ;;  %v938_v59 = vpop.f32.mrb[106].mxu1 }
 0x256   : > { %v939_v49 = vadd.f32 %v938_v59, %v3234_v60  ;;  %v940_v48 = vpop.f32.mrb[107].mxu1 }
 0x257   : > { %v941_v30 = vadd.f32 %v940_v48, %v3238_v14  ;;  %1712 = vmatprep.mubr.f32.mxu0 %v1086_v10 }
 0x258   : > { %1713 = vmatmul.mubr.f32.gmra.mrb[40].mxu0 %v1085_v27  ;;  %v1089_v29 = vmax.f32 %v939_v49, 0.0 }
 0x259   : > { %v1090_v33 = vmax.f32 %v941_v30, 0.0  ;;  %v944_v55 = vpop.f32.mrb[108].mxu1 }
 0x25a   : > { %v945_v62 = vadd.f32 %v944_v55, %v3234_v60  ;;  %v946_v15 = vpop.f32.mrb[109].mxu1 }
 0x25b   : > { %v947_v20 = vadd.f32 %v946_v15, %v3238_v14  ;;  %1718 = vmatprep.mubr.f32.mxu0 %v1090_v33 }
 0x25c   : > { %1719 = vmatmul.mubr.f32.gmra.mrb[42].mxu0 %v1089_v29  ;;  %v1093_v34 = vmax.f32 %v945_v62, 0.0  ;;  %v1259_v62 = vld [vmem:[%s3502_s4] sm:$0x3] }
 0x25d   : > { %v1094_v50 = vmax.f32 %v947_v20, 0.0  ;;  %v950_v28 = vpop.f32.mrb[110].mxu1  ;;  %v3309_v15 = vrot.slane %v1259_v62, %v471_v43 }
 0x25e   : > { %v951_v45 = vadd.f32 %v950_v28, %v3234_v60  ;;  %v952_v36 = vpop.f32.mrb[111].mxu1 }
 0x25f   : > { %v953_v47 = vadd.f32 %v952_v36, %v3238_v14  ;;  %1724 = vmatprep.mubr.f32.mxu0 %v1094_v50 }
 0x260   : > { %1725 = vmatmul.mubr.f32.gmra.mrb[44].mxu0 %v1093_v34  ;;  %v1097_v2 = vmax.f32 %v951_v45, 0.0 }
 0x261   : > { %v1098_v56 = vmax.f32 %v953_v47, 0.0  ;;  %v956_v63 = vpop.f32.mrb[112].mxu1 }
 0x262   : > { %v957_v16 = vadd.f32 %v956_v63, %v3234_v60  ;;  %v958_v21 = vpop.f32.mrb[113].mxu1 }
 0x263   : > { %v959_v35 = vadd.f32 %v958_v21, %v3238_v14  ;;  %1730 = vmatprep.mubr.f32.mxu0 %v1098_v56 }
 0x264   : > { %1731 = vmatmul.mubr.f32.gmra.mrb[46].mxu0 %v1097_v2  ;;  %v1101_v54 = vmax.f32 %v957_v16, 0.0 }
 0x265   : > { %v1102_v37 = vmax.f32 %v959_v35, 0.0  ;;  %v962_v0 = vpop.f32.mrb[114].mxu1 }
 0x266   : > { %v963_v61 = vadd.f32 %v962_v0, %v3234_v60  ;;  %v964_v12 = vpop.f32.mrb[115].mxu1 }
 0x267   : > { %v965_v22 = vadd.f32 %v964_v12, %v3238_v14  ;;  %1736 = vmatprep.mubr.f32.mxu0 %v1102_v37 }
 0x268   : > { %1737 = vmatmul.mubr.f32.gmra.mrb[48].mxu0 %v1101_v54  ;;  %v1105_v41 = vmax.f32 %v963_v61, 0.0 }
 0x269   : > { %v1106_v4 = vmax.f32 %v965_v22, 0.0  ;;  %v968_v23 = vpop.f32.mrb[116].mxu1 }
 0x26a   : > { %v969_v24 = vadd.f32 %v968_v23, %v3234_v60  ;;  %v970_v1 = vpop.f32.mrb[117].mxu1 }
 0x26b   : > { %v971_v3 = vadd.f32 %v970_v1, %v3238_v14  ;;  %1742 = vmatprep.mubr.f32.mxu0 %v1106_v4 }
 0x26c   : > { %1743 = vmatmul.mubr.f32.gmra.mrb[50].mxu0 %v1105_v41  ;;  %v1109_v11 = vmax.f32 %v969_v24, 0.0 }
 0x26d   : > { %v1110_v9 = vmax.f32 %v971_v3, 0.0  ;;  %v974_v5 = vpop.f32.mrb[118].mxu1 }
 0x26e   : > { %v975_v17 = vadd.f32 %v974_v5, %v3234_v60  ;;  %v976_v19 = vpop.f32.mrb[119].mxu1 }
 0x26f   : > { %v977_v42 = vadd.f32 %v976_v19, %v3238_v14  ;;  %1748 = vmatprep.mubr.f32.mxu0 %v1110_v9 }
 0x270   : > { %1749 = vmatmul.mubr.f32.gmra.mrb[52].mxu0 %v1109_v11  ;;  %v1113_v26 = vmax.f32 %v975_v17, 0.0 }
 0x271   : > { %v1114_v6 = vmax.f32 %v977_v42, 0.0  ;;  %v980_v25 = vpop.f32.mrb[120].mxu1 }
 0x272   : > { %v981_v38 = vadd.f32 %v980_v25, %v3234_v60  ;;  %v982_v39 = vpop.f32.mrb[121].mxu1 }
 0x273   : > { %v983_v44 = vadd.f32 %v982_v39, %v3238_v14  ;;  %1754 = vmatprep.mubr.f32.mxu0 %v1114_v6 }
 0x274   : > { %1755 = vmatmul.mubr.f32.gmra.mrb[54].mxu0 %v1113_v26  ;;  %v1117_v13 = vmax.f32 %v981_v38, 0.0 }
 0x275   : > { %v1118_v58 = vmax.f32 %v983_v44, 0.0  ;;  %v986_v7 = vpop.f32.mrb[122].mxu1 }
 0x276   : > { %v987_v31 = vadd.f32 %v986_v7, %v3234_v60  ;;  %v988_v18 = vpop.f32.mrb[123].mxu1 }
 0x277   : > { %v989_v32 = vadd.f32 %v988_v18, %v3238_v14  ;;  %1760 = vmatprep.mubr.f32.mxu0 %v1118_v58 }
 0x278   : > { %1761 = vmatmul.mubr.f32.gmra.mrb[56].mxu0 %v1117_v13  ;;  %v1121_v53 = vmax.f32 %v987_v31, 0.0 }
 0x279   : > { %v1122_v46 = vmax.f32 %v989_v32, 0.0  ;;  %v992_v52 = vpop.f32.mrb[124].mxu1 }
 0x27a   : > { %v993_v57 = vadd.f32 %v992_v52, %v3234_v60  ;;  %v994_v8 = vpop.f32.mrb[125].mxu1 }
 0x27b   : > { %v995_v10 = vadd.f32 %v994_v8, %v3238_v14  ;;  %1766 = vmatprep.mubr.f32.mxu0 %v1122_v46 }
 0x27c   : > { %1767 = vmatmul.mubr.f32.gmra.mrb[58].mxu0 %v1121_v53  ;;  %v1125_v49 = vmax.f32 %v993_v57, 0.0 }
 0x27d   : > { %v1126_v59 = vmax.f32 %v995_v10, 0.0  ;;  %v998_v27 = vpop.f32.mrb[126].mxu1 }
 0x27e   : > { %v999_v48 = vadd.f32 %v998_v27, %v3234_v60  ;;  %v1000_v30 = vpop.f32.mrb[127].mxu1  ;;  %v3313_v60 = vrot.slane %v1259_v62, %v475_v51 }
 0x27f   : > { %v1001_v33 = vadd.f32 %v1000_v30, %v3238_v14  ;;  %1772 = vmatprep.mubr.f32.mxu0 %v1126_v59 }
 0x280   : > { %1773 = vmatmul.mubr.f32.gmra.mrb[60].mxu0 %v1125_v49  ;;  %v1129_v29 = vmax.f32 %v999_v48, 0.0 }
 0x281   : > { %v1130_v55 = vmax.f32 %v1001_v33, 0.0 }
 0x283   : > { %1778 = vmatprep.mubr.f32.mxu0 %v1130_v55 }
 0x284   : > { %1779 = vmatmul.mubr.f32.gmra.mrb[62].mxu0 %v1129_v29 }
 0x2db   : > { %v1594_v20 = vpop.f32.mrb[0].mxu0 }
 0x2dc   : > { %v2236_v14 = vadd.f32 %v1594_v20, %v3309_v15  ;;  %v1596_v50 = vpop.f32.mrb[1].mxu0 }
 0x2dd   : > { %v2237_v28 = vadd.f32 %v1596_v50, %v3313_v60 }
 0x2de   : > { %1785 = vst [vmem:[%s3319_s10] sm:$0xff] %v2236_v14 }
 0x2df   : > { %1786 = vst [vmem:[%s3319_s10 + $0x8] sm:$0xff] %v2237_v28  ;;  %v1600_v40 = vpop.f32.mrb[2].mxu0 }
 0x2e0   : > { %v2238_v43 = vadd.f32 %v1600_v40, %v3309_v15  ;;  %v1602_v51 = vpop.f32.mrb[3].mxu0 }
 0x2e1   : > { %v2239_v34 = vadd.f32 %v1602_v51, %v3313_v60 }
 0x2e2   : > { %1787 = vst [vmem:[%s3319_s10 + $0x10] sm:$0xff] %v2238_v43 }
 0x2e3   : > { %1788 = vst [vmem:[%s3319_s10 + $0x18] sm:$0xff] %v2239_v34  ;;  %v1606_v45 = vpop.f32.mrb[4].mxu0 }
 0x2e4   : > { %v2240_v36 = vadd.f32 %v1606_v45, %v3309_v15  ;;  %v1608_v47 = vpop.f32.mrb[5].mxu0 }
 0x2e5   : > { %v2241_v56 = vadd.f32 %v1608_v47, %v3313_v60 }
 0x2e6   : > { %1789 = vst [vmem:[%s3319_s10 + $0x20] sm:$0xff] %v2240_v36 }
 0x2e7   : > { %1790 = vst [vmem:[%s3319_s10 + $0x28] sm:$0xff] %v2241_v56  ;;  %v1612_v63 = vpop.f32.mrb[6].mxu0 }
 0x2e8   : > { %v2242_v2 = vadd.f32 %v1612_v63, %v3309_v15  ;;  %v1614_v16 = vpop.f32.mrb[7].mxu0 }
 0x2e9   : > { %v2243_v21 = vadd.f32 %v1614_v16, %v3313_v60 }
 0x2ea   : > { %1791 = vst [vmem:[%s3319_s10 + $0x30] sm:$0xff] %v2242_v2 }
 0x2eb   : > { %1792 = vst [vmem:[%s3319_s10 + $0x38] sm:$0xff] %v2243_v21  ;;  %v1618_v35 = vpop.f32.mrb[8].mxu0 }
 0x2ec   : > { %v2244_v37 = vadd.f32 %v1618_v35, %v3309_v15  ;;  %v1620_v0 = vpop.f32.mrb[9].mxu0 }
 0x2ed   : > { %v2245_v54 = vadd.f32 %v1620_v0, %v3313_v60 }
 0x2ee   : > { %1793 = vst [vmem:[%s3319_s10 + $0x40] sm:$0xff] %v2244_v37 }
 0x2ef   : > { %1794 = vst [vmem:[%s3319_s10 + $0x48] sm:$0xff] %v2245_v54  ;;  %v1624_v61 = vpop.f32.mrb[10].mxu0 }
 0x2f0   : > { %v2246_v12 = vadd.f32 %v1624_v61, %v3309_v15  ;;  %v1626_v22 = vpop.f32.mrb[11].mxu0 }
 0x2f1   : > { %v2247_v4 = vadd.f32 %v1626_v22, %v3313_v60 }
 0x2f2   : > { %1795 = vst [vmem:[%s3319_s10 + $0x50] sm:$0xff] %v2246_v12 }
 0x2f3   : > { %1796 = vst [vmem:[%s3319_s10 + $0x58] sm:$0xff] %v2247_v4  ;;  %v1630_v23 = vpop.f32.mrb[12].mxu0 }
 0x2f4   : > { %v2248_v41 = vadd.f32 %v1630_v23, %v3309_v15  ;;  %v1632_v24 = vpop.f32.mrb[13].mxu0 }
 0x2f5   : > { %v2249_v1 = vadd.f32 %v1632_v24, %v3313_v60 }
 0x2f6   : > { %1797 = vst [vmem:[%s3319_s10 + $0x60] sm:$0xff] %v2248_v41 }
 0x2f7   : > { %1798 = vst [vmem:[%s3319_s10 + $0x68] sm:$0xff] %v2249_v1  ;;  %v1636_v3 = vpop.f32.mrb[14].mxu0 }
 0x2f8   : > { %v2250_v9 = vadd.f32 %v1636_v3, %v3309_v15  ;;  %v1638_v5 = vpop.f32.mrb[15].mxu0 }
 0x2f9   : > { %v2251_v11 = vadd.f32 %v1638_v5, %v3313_v60 }
 0x2fa   : > { %1799 = vst [vmem:[%s3319_s10 + $0x70] sm:$0xff] %v2250_v9 }
 0x2fb   : > { %1800 = vst [vmem:[%s3319_s10 + $0x78] sm:$0xff] %v2251_v11  ;;  %v1642_v17 = vpop.f32.mrb[16].mxu0 }
 0x2fc   : > { %v2252_v19 = vadd.f32 %v1642_v17, %v3309_v15  ;;  %v1644_v42 = vpop.f32.mrb[17].mxu0 }
 0x2fd   : > { %v2253_v6 = vadd.f32 %v1644_v42, %v3313_v60 }
 0x2fe   : > { %1801 = vst [vmem:[%s3319_s10 + $0x80] sm:$0xff] %v2252_v19 }
 0x2ff   : > { %1802 = vst [vmem:[%s3319_s10 + $0x88] sm:$0xff] %v2253_v6  ;;  %v1648_v25 = vpop.f32.mrb[18].mxu0 }
 0x300   : > { %v2254_v26 = vadd.f32 %v1648_v25, %v3309_v15  ;;  %v1650_v38 = vpop.f32.mrb[19].mxu0 }
 0x301   : > { %v2255_v39 = vadd.f32 %v1650_v38, %v3313_v60 }
 0x302   : > { %1803 = vst [vmem:[%s3319_s10 + $0x90] sm:$0xff] %v2254_v26 }
 0x303   : > { %1804 = vst [vmem:[%s3319_s10 + $0x98] sm:$0xff] %v2255_v39  ;;  %v1654_v44 = vpop.f32.mrb[20].mxu0 }
 0x304   : > { %v2256_v58 = vadd.f32 %v1654_v44, %v3309_v15  ;;  %v1656_v7 = vpop.f32.mrb[21].mxu0 }
 0x305   : > { %v2257_v13 = vadd.f32 %v1656_v7, %v3313_v60 }
 0x306   : > { %1805 = vst [vmem:[%s3319_s10 + $0xa0] sm:$0xff] %v2256_v58 }
 0x307   : > { %1806 = vst [vmem:[%s3319_s10 + $0xa8] sm:$0xff] %v2257_v13  ;;  %v1660_v31 = vpop.f32.mrb[22].mxu0 }
 0x308   : > { %v2258_v18 = vadd.f32 %v1660_v31, %v3309_v15  ;;  %v1662_v32 = vpop.f32.mrb[23].mxu0 }
 0x309   : > { %v2259_v46 = vadd.f32 %v1662_v32, %v3313_v60 }
 0x30a   : > { %1807 = vst [vmem:[%s3319_s10 + $0xb0] sm:$0xff] %v2258_v18 }
 0x30b   : > { %1808 = vst [vmem:[%s3319_s10 + $0xb8] sm:$0xff] %v2259_v46  ;;  %v1666_v52 = vpop.f32.mrb[24].mxu0 }
 0x30c   : > { %v2260_v53 = vadd.f32 %v1666_v52, %v3309_v15  ;;  %v1668_v57 = vpop.f32.mrb[25].mxu0 }
 0x30d   : > { %v2261_v8 = vadd.f32 %v1668_v57, %v3313_v60 }
 0x30e   : > { %1809 = vst [vmem:[%s3319_s10 + $0xc0] sm:$0xff] %v2260_v53 }
 0x30f   : > { %1810 = vst [vmem:[%s3319_s10 + $0xc8] sm:$0xff] %v2261_v8  ;;  %v1672_v10 = vpop.f32.mrb[26].mxu0 }
 0x310   : > { %v2262_v59 = vadd.f32 %v1672_v10, %v3309_v15  ;;  %v1674_v27 = vpop.f32.mrb[27].mxu0 }
 0x311   : > { %v2263_v49 = vadd.f32 %v1674_v27, %v3313_v60 }
 0x312   : > { %1811 = vst [vmem:[%s3319_s10 + $0xd0] sm:$0xff] %v2262_v59 }
 0x313   : > { %1812 = vst [vmem:[%s3319_s10 + $0xd8] sm:$0xff] %v2263_v49  ;;  %v1678_v48 = vpop.f32.mrb[28].mxu0 }
 0x314   : > { %v2264_v30 = vadd.f32 %v1678_v48, %v3309_v15  ;;  %v1680_v33 = vpop.f32.mrb[29].mxu0 }
 0x315   : > { %v2265_v55 = vadd.f32 %v1680_v33, %v3313_v60 }
 0x316   : > { %1813 = vst [vmem:[%s3319_s10 + $0xe0] sm:$0xff] %v2264_v30 }
 0x317   : > { %1814 = vst [vmem:[%s3319_s10 + $0xe8] sm:$0xff] %v2265_v55  ;;  %v1684_v29 = vpop.f32.mrb[30].mxu0 }
 0x318   : > { %v2266_v62 = vadd.f32 %v1684_v29, %v3309_v15  ;;  %v1686_v20 = vpop.f32.mrb[31].mxu0 }
 0x319   : > { %v2267_v14 = vadd.f32 %v1686_v20, %v3313_v60 }
 0x31a   : > { %1815 = vst [vmem:[%s3319_s10 + $0xf0] sm:$0xff] %v2266_v62 }
 0x31b   : > { %1816 = vst [vmem:[%s3319_s10 + $0xf8] sm:$0xff] %v2267_v14  ;;  %v1690_v50 = vpop.f32.mrb[32].mxu0 }
 0x31c   : > { %v2268_v28 = vadd.f32 %v1690_v50, %v3309_v15  ;;  %v1692_v40 = vpop.f32.mrb[33].mxu0 }
 0x31d   : > { %v2269_v43 = vadd.f32 %v1692_v40, %v3313_v60 }
 0x31e   : > { %1817 = vst [vmem:[%s3319_s10 + $0x100] sm:$0xff] %v2268_v28 }
 0x31f   : > { %1818 = vst [vmem:[%s3319_s10 + $0x108] sm:$0xff] %v2269_v43  ;;  %v1696_v51 = vpop.f32.mrb[34].mxu0 }
 0x320   : > { %v2270_v34 = vadd.f32 %v1696_v51, %v3309_v15  ;;  %v1698_v45 = vpop.f32.mrb[35].mxu0 }
 0x321   : > { %v2271_v36 = vadd.f32 %v1698_v45, %v3313_v60 }
 0x322   : > { %1819 = vst [vmem:[%s3319_s10 + $0x110] sm:$0xff] %v2270_v34 }
 0x323   : > { %1820 = vst [vmem:[%s3319_s10 + $0x118] sm:$0xff] %v2271_v36  ;;  %v1702_v47 = vpop.f32.mrb[36].mxu0 }
 0x324   : > { %v2272_v56 = vadd.f32 %v1702_v47, %v3309_v15  ;;  %v1704_v63 = vpop.f32.mrb[37].mxu0 }
 0x325   : > { %v2273_v2 = vadd.f32 %v1704_v63, %v3313_v60 }
 0x326   : > { %1821 = vst [vmem:[%s3319_s10 + $0x120] sm:$0xff] %v2272_v56 }
 0x327   : > { %1822 = vst [vmem:[%s3319_s10 + $0x128] sm:$0xff] %v2273_v2  ;;  %v1708_v16 = vpop.f32.mrb[38].mxu0 }
 0x328   : > { %v2274_v21 = vadd.f32 %v1708_v16, %v3309_v15  ;;  %v1710_v35 = vpop.f32.mrb[39].mxu0 }
 0x329   : > { %v2275_v37 = vadd.f32 %v1710_v35, %v3313_v60 }
 0x32a   : > { %1823 = vst [vmem:[%s3319_s10 + $0x130] sm:$0xff] %v2274_v21 }
 0x32b   : > { %1824 = vst [vmem:[%s3319_s10 + $0x138] sm:$0xff] %v2275_v37  ;;  %v1714_v0 = vpop.f32.mrb[40].mxu0 }
 0x32c   : > { %v2276_v54 = vadd.f32 %v1714_v0, %v3309_v15  ;;  %v1716_v61 = vpop.f32.mrb[41].mxu0 }
 0x32d   : > { %v2277_v12 = vadd.f32 %v1716_v61, %v3313_v60 }
 0x32e   : > { %1825 = vst [vmem:[%s3319_s10 + $0x140] sm:$0xff] %v2276_v54 }
 0x32f   : > { %1826 = vst [vmem:[%s3319_s10 + $0x148] sm:$0xff] %v2277_v12  ;;  %v1720_v22 = vpop.f32.mrb[42].mxu0 }
 0x330   : > { %v2278_v4 = vadd.f32 %v1720_v22, %v3309_v15  ;;  %v1722_v23 = vpop.f32.mrb[43].mxu0 }
 0x331   : > { %v2279_v41 = vadd.f32 %v1722_v23, %v3313_v60 }
 0x332   : > { %1827 = vst [vmem:[%s3319_s10 + $0x150] sm:$0xff] %v2278_v4 }
 0x333   : > { %1828 = vst [vmem:[%s3319_s10 + $0x158] sm:$0xff] %v2279_v41  ;;  %v1726_v24 = vpop.f32.mrb[44].mxu0 }
 0x334   : > { %v2280_v1 = vadd.f32 %v1726_v24, %v3309_v15  ;;  %v1728_v3 = vpop.f32.mrb[45].mxu0 }
 0x335   : > { %v2281_v9 = vadd.f32 %v1728_v3, %v3313_v60 }
 0x336   : > { %1829 = vst [vmem:[%s3319_s10 + $0x160] sm:$0xff] %v2280_v1 }
 0x337   : > { %1830 = vst [vmem:[%s3319_s10 + $0x168] sm:$0xff] %v2281_v9  ;;  %v1732_v5 = vpop.f32.mrb[46].mxu0 }
 0x338   : > { %v2282_v11 = vadd.f32 %v1732_v5, %v3309_v15  ;;  %v1734_v17 = vpop.f32.mrb[47].mxu0 }
 0x339   : > { %v2283_v19 = vadd.f32 %v1734_v17, %v3313_v60 }
 0x33a   : > { %1831 = vst [vmem:[%s3319_s10 + $0x170] sm:$0xff] %v2282_v11 }
 0x33b   : > { %1832 = vst [vmem:[%s3319_s10 + $0x178] sm:$0xff] %v2283_v19  ;;  %v1738_v42 = vpop.f32.mrb[48].mxu0 }
 0x33c   : > { %v2284_v6 = vadd.f32 %v1738_v42, %v3309_v15  ;;  %v1740_v25 = vpop.f32.mrb[49].mxu0 }
 0x33d   : > { %v2285_v26 = vadd.f32 %v1740_v25, %v3313_v60 }
 0x33e   : > { %1833 = vst [vmem:[%s3319_s10 + $0x180] sm:$0xff] %v2284_v6 }
 0x33f   : > { %1834 = vst [vmem:[%s3319_s10 + $0x188] sm:$0xff] %v2285_v26  ;;  %v1744_v38 = vpop.f32.mrb[50].mxu0 }
 0x340   : > { %v2286_v39 = vadd.f32 %v1744_v38, %v3309_v15  ;;  %v1746_v44 = vpop.f32.mrb[51].mxu0 }
 0x341   : > { %v2287_v58 = vadd.f32 %v1746_v44, %v3313_v60 }
 0x342   : > { %1835 = vst [vmem:[%s3319_s10 + $0x190] sm:$0xff] %v2286_v39 }
 0x343   : > { %1836 = vst [vmem:[%s3319_s10 + $0x198] sm:$0xff] %v2287_v58  ;;  %v1750_v7 = vpop.f32.mrb[52].mxu0 }
 0x344   : > { %v2288_v13 = vadd.f32 %v1750_v7, %v3309_v15  ;;  %v1752_v31 = vpop.f32.mrb[53].mxu0 }
 0x345   : > { %v2289_v18 = vadd.f32 %v1752_v31, %v3313_v60 }
 0x346   : > { %1837 = vst [vmem:[%s3319_s10 + $0x1a0] sm:$0xff] %v2288_v13 }
 0x347   : > { %1838 = vst [vmem:[%s3319_s10 + $0x1a8] sm:$0xff] %v2289_v18  ;;  %v1756_v32 = vpop.f32.mrb[54].mxu0 }
 0x348   : > { %v2290_v46 = vadd.f32 %v1756_v32, %v3309_v15  ;;  %v1758_v52 = vpop.f32.mrb[55].mxu0 }
 0x349   : > { %v2291_v53 = vadd.f32 %v1758_v52, %v3313_v60 }
 0x34a   : > { %1839 = vst [vmem:[%s3319_s10 + $0x1b0] sm:$0xff] %v2290_v46 }
 0x34b   : > { %1840 = vst [vmem:[%s3319_s10 + $0x1b8] sm:$0xff] %v2291_v53  ;;  %v1762_v57 = vpop.f32.mrb[56].mxu0 }
 0x34c   : > { %v2292_v8 = vadd.f32 %v1762_v57, %v3309_v15  ;;  %v1764_v10 = vpop.f32.mrb[57].mxu0 }
 0x34d   : > { %v2293_v59 = vadd.f32 %v1764_v10, %v3313_v60 }
 0x34e   : > { %1841 = vst [vmem:[%s3319_s10 + $0x1c0] sm:$0xff] %v2292_v8 }
 0x34f   : > { %1842 = vst [vmem:[%s3319_s10 + $0x1c8] sm:$0xff] %v2293_v59  ;;  %v1768_v27 = vpop.f32.mrb[58].mxu0 }
 0x350   : > { %v2294_v49 = vadd.f32 %v1768_v27, %v3309_v15  ;;  %v1770_v48 = vpop.f32.mrb[59].mxu0 }
 0x351   : > { %v2295_v30 = vadd.f32 %v1770_v48, %v3313_v60 }
 0x352   : > { %1843 = vst [vmem:[%s3319_s10 + $0x1d0] sm:$0xff] %v2294_v49 }
 0x353   : > { %1844 = vst [vmem:[%s3319_s10 + $0x1d8] sm:$0xff] %v2295_v30  ;;  %v1774_v33 = vpop.f32.mrb[60].mxu0 }
 0x354   : > { %v2296_v55 = vadd.f32 %v1774_v33, %v3309_v15  ;;  %v1776_v29 = vpop.f32.mrb[61].mxu0 }
 0x355   : > { %v2297_v62 = vadd.f32 %v1776_v29, %v3313_v60 }
 0x356   : > { %1845 = vst [vmem:[%s3319_s10 + $0x1e0] sm:$0xff] %v2296_v55 }
 0x357   : > { %1846 = vst [vmem:[%s3319_s10 + $0x1e8] sm:$0xff] %v2297_v62  ;;  %v1780_v20 = vpop.f32.mrb[62].mxu0 }
 0x358   : > { %v2298_v14 = vadd.f32 %v1780_v20, %v3309_v15  ;;  %v1782_v50 = vpop.f32.mrb[63].mxu0 }
 0x359   : > { %v2299_v28 = vadd.f32 %v1782_v50, %v3313_v60 }
 0x35a   : > { %1847 = vst [vmem:[%s3319_s10 + $0x1f0] sm:$0xff] %v2298_v14 }
 0x35b   : > { %1848 = vst [vmem:[%s3319_s10 + $0x1f8] sm:$0xff] %v2299_v28 }
 0x35c   : > { %2536 = shalt.err (!%p2533_p2)
}
 0x35d   : > { %s2537_s14 = scalar_lea.hbm %s3449_s11, 8192  ;;  %s2541_s12 = scalar_lea.hbm %s3503_s5, 16384 }
 0x35e   : > { %p2538_p13 = scmp.ne.s32.totalorder %s3449_s11, %s2537_s14  ;;  %p2542_p4 = scmp.lt.u32.totalorder %s3449_s11, %s3503_s5 }
 0x35f   : > { %p2543_p7 = scmp.lt.u32.totalorder %s2541_s12, %s2537_s14  ;;  %p2545_p11 = scmp.lt.u32.totalorder %s2537_s14, %s3449_s11 }
 0x360   : > { %p2539_p6 = pnand %p2538_p13, %p3517_p0 }
 0x361   : > { %p2544_p8 = por %p2543_p7, %p2542_p4 }
 0x362   : > { %p2540_p10 = pneg %p2539_p6 }
 0x363   : > { %p2546_p1 = por %p2545_p11, %p2544_p8 }
 0x365   : > { %p2547_p3 = pnand %p2546_p1, %p2540_p10 }
 0x367   : > { %2550 = shalt.err (!%p2547_p3)
}
 0x368   : > { %s2603_s28 = smov 256   ;;  %s2604_s9 = smov 16  }
 0x369   : > { %2374 = dma.vmem_to_hbm [thread:$0]  (%p3517_p0), %s3451_s15, 8192, %s3449_s11, %s1850_s22, %s2603_s28, %s2603_s28, %s2604_s9  }
 0x36a PF: > { %s1879_s30 = sand.u32 1, %s2581_s18   ;;  %p3518_p5 = scmp.ne.s32.totalorder %s3508_s25, 0 }
 0x36b   : > { %p3519_p9 = scmp.ge.s32.totalorder %s2593_s21, 2  ;;  %s1880_s23 = scalar_lea.sflag [#allocation4], %s1879_s30 }
 0x36d   : > { %p2388_p12 = pnand %p3519_p9, %p3518_p5 }
 0x36f   : > { %2576 = dma.done.wait (!%p2388_p12), %s1880_s23, 8192  }
 0x370   : > { %2578 = vsyncadd (!%p2388_p12), %s1880_s23, 4294959104  ;;  %p19_p2 = scmp.ge.s32.totalorder %s2748_s16, 4   ;;  %s3520_s18 = smov %s2585_s19 }
 0x371   : > { %s3521_s19 = smov %s2589_s20  ;;  %s3522_s20 = smov %s2757_s27 }
 0x372   : > { %s3523_s21 = smov %s2748_s16  ;;  %21 = sbr.rel (!%p19_p2) target bundleno = 6 (0x6), region = 93 }
 0x379   :  { %1885 = vsyncpa [#allocation3], 1 }
 0x37a   :  { %1887 = vsyncpa [#allocation3 + $0x1], 1 }
 0x37b   :  { %1888 = vsyncpa [#allocation6], 1 }
 0x37c   :  { %1889 = vsyncpa [#allocation4], 1 }
 0x37d   :  { %1891 = vsyncpa [#allocation4 + $0x1], 1 }

// kernel: tpu_custom_call.1
= control target key start
LH: loop header
LB: loop body
LE: loop exit
PB: predicated region body
PF: predicated region fallthrough
CT: control target
= control target key end

     0   :  { %10 = vsyncpa [#allocation3], 0  ;;  %s3498_s0 = inlined_call_operand.hbm [shape: f32[512,256], index: 0, kind: input, shape index: {}]   ;;  %s3499_s1 = inlined_call_operand.hbm [shape: f32[256,512], index: 1, kind: input, shape index: {}]   ;;  %s3500_s2 = inlined_call_operand.vmem [shape: f32[1,512], index: 2, kind: input, shape index: {}]   ;;  %s3501_s3 = inlined_call_operand.hbm [shape: f32[512,256], index: 3, kind: input, shape index: {}]   ;;  %s3502_s4 = inlined_call_operand.vmem [shape: f32[1,256], index: 4, kind: input, shape index: {}]   ;;  %s3503_s5 = inlined_call_operand.hbm [shape: f32[512,256], index: 5, kind: output, shape index: {}]  }
   0x1   :  { %12 = vsyncpa [#allocation3 + $0x1], 0 }
   0x2   :  { %13 = vsyncpa [#allocation6], 0 }
   0x3   :  { %14 = vsyncpa [#allocation4], 0 }
   0x4   :  { %16 = vsyncpa [#allocation4 + $0x1], 0  ;;  %s2635_s18 = smov 0   ;;  %s2637_s19 = smov 0  }
   0x5   :  { %s2639_s20 = smov 0   ;;  %s2641_s21 = smov 0  }
   0x6 LB: > { %s2656_s22 = sadd.s32 4294967295, %s2593_s21   ;;  %s1956_s23 = sadd.s32 4294967294, %s2593_s21   ;;  %s2593_s21 = sphi %s2641_s21, %s3523_s21   ;;  %s2589_s20 = sphi %s2639_s20, %s3522_s20   ;;  %s2585_s19 = sphi %s2637_s19, %s3521_s19   ;;  %s2581_s18 = sphi %s2635_s18, %s3520_s18  }
   0x7   : > { %p42_p0 = scmp.ne.s32.totalorder %s2585_s19, %s2581_s18  ;;  %p3504_p1 = scmp.eq.s32.totalorder %s2656_s22, 0 }
   0x8   : > { %p156_p3 = scmp.eq.s32.totalorder %s1956_s23, 1  ;;  %p1957_p5 = scmp.ge.s32.totalorder %s2593_s21, 1 }
   0x9   : > { %p2665_p4 = por %p3504_p1, %p42_p0  ;;  %p163_p7 = scmp.lt.s32.totalorder %s2593_s21, 3 }
   0xa   : > { %p2670_p6 = por %p156_p3, %p42_p0  ;;  %s2595_s27 = smov [#allocation5]  }
   0xb   : > { %s3507_s24 = scalar_select %p2665_p4, 1, 0 }
   0xc   : > { %s3508_s25 = scalar_select %p2670_p6, 1, 0 }
   0xd   : > { %p2675_p8 = pnand %p1957_p5, %p163_p7  ;;  %s175_s28 = sshll.u32 %s2595_s27, 4  ;;  %s2679_s28 = int_to_ptr.vmem [resolvable:$true] %s175_s28 }
   0xe   : > { %s2596_s30 = smov [#allocation7]   ;;  %s2437_s9 = scalar_lea.hbm %s3499_s1, 16384 }
   0xf   : > { %p2376_p9 = pneg %p2675_p8  ;;  %s191_s6 = sshll.u32 %s2596_s30, 4  ;;  %s2690_s6 = int_to_ptr.vmem [resolvable:$true] %s191_s6 }
  0x10   : > { %p2438_p12 = scmp.ne.s32.totalorder %s3499_s1, %s2437_s9  ;;  %p2444_p5 = scmp.lt.u32.totalorder %s2437_s9, %s3499_s1 }
  0x11   : > { %p2686_p11 = pnand %p2376_p9, %p3504_p1 }
  0x13   : > { %p2439_p13 = pneg %p2686_p11 }
  0x15   : > { %p2440_p0 = pnand %p2439_p13, %p2438_p12 }
  0x17   : > { %p2441_p3 = pneg %p2440_p0 }
  0x19   : > { %p2446_p7 = pnand %p2444_p5, %p2441_p3 }
  0x1b   : > { %2449 = shalt.err (!%p2446_p7)
}
  0x1c   : > { %s2450_s14 = scalar_lea.vmem %s2679_s28, 16384  ;;  %p2458_p2 = scmp.lt.s32.totalorder %s2679_s28, %s2679_s28 }
  0x1d   : > { %p2451_p9 = scmp.ne.s32.totalorder %s2679_s28, %s2450_s14  ;;  %p2459_p12 = scmp.lt.s32.totalorder %s2450_s14, %s2450_s14 }
  0x1f   : > { %p2453_p10 = pnand %p2451_p9, %p2439_p13  ;;  %p2460_p0 = por %p2459_p12, %p2458_p2 }
  0x21   : > { %p2454_p1 = pneg %p2453_p10 }
  0x23   : > { %p2461_p6 = pnand %p2460_p0, %p2454_p1 }
  0x25   : > { %2464 = shalt.err (!%p2461_p6)
}
  0x26   : > { %s2597_s15 = smov 512   ;;  %s2598_s16 = smov 32  }
  0x27   : > { %2379 = dma.hbm_to_vmem [thread:$0]  (!%p2686_p11), %s3499_s1, 16384, %s2679_s28, [#allocation6], %s2597_s15, %s2597_s15, %s2598_s16  }
  0x28   : > { %s2465_s7 = scalar_lea.hbm %s3501_s3, 16384 }
  0x29   : > { %p2466_p2 = scmp.ne.s32.totalorder %s3501_s3, %s2465_s7  ;;  %p2472_p10 = scmp.lt.u32.totalorder %s2465_s7, %s3501_s3 }
  0x2b   : > { %p2468_p1 = pnand %p2466_p2, %p2439_p13 }
  0x2d   : > { %p2469_p6 = pneg %p2468_p1 }
  0x2f   : > { %p2474_p3 = pnand %p2472_p10, %p2469_p6 }
  0x31   : > { %2477 = shalt.err (!%p2474_p3)
}
  0x32   : > { %s2478_s28 = scalar_lea.vmem %s2690_s6, 16384  ;;  %p2486_p12 = scmp.lt.s32.totalorder %s2690_s6, %s2690_s6 }
  0x33   : > { %p2479_p5 = scmp.ne.s32.totalorder %s2690_s6, %s2478_s28  ;;  %p2487_p0 = scmp.lt.s32.totalorder %s2478_s28, %s2478_s28 }
  0x35   : > { %p2481_p7 = pnand %p2479_p5, %p2439_p13  ;;  %p2488_p2 = por %p2487_p0, %p2486_p12 }
  0x37   : > { %p2482_p9 = pneg %p2481_p7 }
  0x39   : > { %p2489_p1 = pnand %p2488_p2, %p2482_p9 }
  0x3b   : > { %2492 = shalt.err (!%p2489_p1)
}
  0x3c   : > { %s2599_s12 = smov 256   ;;  %s2600_s13 = smov 16  }
  0x3d   : > { %2382 = dma.hbm_to_vmem [thread:$0]  (!%p2686_p11), %s3501_s3, 16384, %s2690_s6, [#allocation6], %s2599_s12, %s2599_s12, %s2600_s13  }
  0x3e   : > { %s2748_s16 = sadd.s32 1, %s2593_s21   ;;  %s29_s23 = sadd.s32 1, %s2589_s20 }
  0x3f   : > { %s26_s17 = ssub.s32 %s2593_s21, %s2748_s16  ;;  %p36_p6 = scmp.ne.s32.totalorder %s2589_s20, %s2585_s19 }
  0x40   : > { %p27_p13 = scmp.eq.s32.totalorder %s26_s17, 0  ;;  %p37_p10 = scmp.eq.s32.totalorder %s2593_s21, 0 }
  0x41   : > { %p3511_p5 = scmp.eq.s32.totalorder %s2656_s22, 1  ;;  %p2393_p9 = scmp.lt.s32.totalorder %s2593_s21, 2 }
  0x42   : > { %s2757_s27 = scalar_select %p27_p13, %s2589_s20, %s29_s23  }
  0x43   : > { %p38_p3 = por %p37_p10, %p36_p6  ;;  %p2761_p7 = por %p3511_p5, %p36_p6 }
  0x44   : > { %s208_s30 = sand.u32 1, %s2589_s20   ;;  %s1977_s6 = sshll.u32 %s2593_s21, 13 }
  0x45   : > { %s3512_s29 = scalar_select %p2761_p7, 1, 0 }
  0x46   : > { %s1961_s7 = sshll.u32 %s208_s30, 9  ;;  %s2771_s10 = scalar_lea.hbm %s3498_s0, %s1977_s6 }
  0x47   : > { %s212_s11 = scalar_lea.vmem [#allocation2], %s1961_s7  ;;  %p2775_p11 = pnand %p2393_p9, %p38_p3 }
  0x48   : > { %s220_s28 = sshll.u32 %s212_s11, 4  ;;  %s2779_s15 = scalar_lea.sflag [#allocation3], %s208_s30  ;;  %s2773_s28 = int_to_ptr.vmem [resolvable:$true] %s220_s28 }
  0x49   : > { %s2493_s17 = scalar_lea.hbm %s2771_s10, 8192  ;;  %p2495_p0 = pneg %p2775_p11 }
  0x4a   : > { %p2494_p12 = scmp.ne.s32.totalorder %s2771_s10, %s2493_s17  ;;  %s2498_s6 = scalar_lea.hbm %s3498_s0, 16384 }
  0x4b   : > { %p2499_p13 = scmp.lt.u32.totalorder %s2771_s10, %s3498_s0  ;;  %p2500_p6 = scmp.lt.u32.totalorder %s2498_s6, %s2493_s17 }
  0x4c   : > { %p2496_p2 = pnand %p2495_p0, %p2494_p12  ;;  %p2502_p3 = scmp.lt.u32.totalorder %s2493_s17, %s2771_s10 }
  0x4d   : > { %p2501_p10 = por %p2500_p6, %p2499_p13 }
  0x4e   : > { %p2497_p1 = pneg %p2496_p2 }
  0x4f   : > { %p2503_p5 = por %p2502_p3, %p2501_p10 }
  0x51   : > { %p2504_p9 = pnand %p2503_p5, %p2497_p1 }
  0x53   : > { %2507 = shalt.err (!%p2504_p9)
}
  0x54   : > { %s2508_s30 = scalar_lea.vmem %s2773_s28, 8192  ;;  %s2601_s11 = smov [#allocation2]  }
  0x55   : > { %p2509_p12 = scmp.ne.s32.totalorder %s2773_s28, %s2508_s30  ;;  %s2513_s23 = sshll.u32 %s2601_s11, 4  ;;  %s2514_s23 = int_to_ptr.vmem [resolvable:$false] %s2513_s23 }
  0x56   : > { %s2515_s7 = scalar_lea.vmem %s2514_s23, 16384  ;;  %p2516_p4 = scmp.lt.s32.totalorder %s2773_s28, %s2514_s23 }
  0x57   : > { %p2511_p2 = pnand %p2509_p12, %p2495_p0  ;;  %p2517_p13 = scmp.lt.s32.totalorder %s2515_s7, %s2508_s30 }
  0x59   : > { %p2512_p7 = pneg %p2511_p2  ;;  %p2518_p6 = por %p2517_p13, %p2516_p4 }
  0x5b   : > { %p2519_p10 = pnand %p2518_p6, %p2512_p7 }
  0x5d   : > { %2522 = shalt.err (!%p2519_p10)
}
  0x5e   : > { %2386 = dma.hbm_to_vmem [thread:$0]  (!%p2775_p11), %s2771_s10, 8192, %s2773_s28, %s2779_s15, %s2599_s12, %s2599_s12, %s2600_s13  }
  0x5f   : > { %232 = sbr.rel (%p2675_p8) target bundleno = 874 (0x36a), region = 40  ;;  %s2813_s17 = sand.u32 (!%p2675_p8), 1, %s2585_s19  }
  0x60   : > { %s1966_s6 = sshll.u32 (!%p2675_p8), %s2813_s17, 9  ;;  %s235_s8 = scalar_lea.sflag (!%p2675_p8), [#allocation3], %s2813_s17 }
  0x61   : > { %s2819_s14 = scalar_lea.vmem (!%p2675_p8), [#allocation2], %s1966_s6  ;;  %p3514_p4 = scmp.ne.s32.totalorder (!%p2675_p8), %s3507_s24, 0 }
  0x66   : > { %2568 = dma.done.wait (%p3514_p4), %s235_s8, 8192  }
  0x67   : > { %2570 = vsyncadd (%p3514_p4), %s235_s8, 4294959104  ;;  %p3515_p7 = scmp.eq.s32.totalorder %s2656_s22, 0 }
  0x69   : > { %2572 = dma.done.wait (%p3515_p7), [#allocation6], 32768   ;;  %p3516_p8 = pmov %p3515_p7 }
  0x6a   : > { %v340_v0 = vld [vmem:[#allocation5 + $0x8] sm:$0xff]  ;;  %v339_v2 = vld [vmem:[#allocation5] sm:$0xff]  ;;  %s3319_s10 = scalar_lea.vmem [#allocation8], %s1966_s6  ;;  %s1979_s28 = sshll.u32 %s2656_s22, 13 }
  0x6b   : > { %2574 = vsyncadd (%p3516_p8), [#allocation6], 4294934528  ;;  %v344_v1 = vld [vmem:[#allocation5 + $0x28] sm:$0xff]  ;;  %v343_v4 = vld [vmem:[#allocation5 + $0x20] sm:$0xff]  ;;  %s1864_s15 = sshll.u32 %s3319_s10, 4  ;;  %s3449_s11 = scalar_lea.hbm %s3503_s5, %s1979_s28  ;;  %s3451_s15 = int_to_ptr.vmem [resolvable:$true] %s1864_s15 }
  0x6c   : > { %v1980_v3 = vpack.c.bf16 %v344_v1, %v340_v0  ;;  %v348_v5 = vld [vmem:[#allocation5 + $0x48] sm:$0xff]  ;;  %v1982_v7 = vpack.c.bf16 %v343_v4, %v339_v2  ;;  %v347_v9 = vld [vmem:[#allocation5 + $0x40] sm:$0xff]  ;;  %s1850_s22 = scalar_lea.sflag [#allocation4], %s2813_s17  ;;  %s2523_s23 = scalar_lea.vmem %s3451_s15, 8192 }
  0x6d   : > { %v352_v6 = vld [vmem:[#allocation5 + $0x68] sm:$0xff]  ;;  %v351_v10 = vld [vmem:[#allocation5 + $0x60] sm:$0xff]  ;;  %p2524_p11 = scmp.ne.s32.totalorder %s3451_s15, %s2523_s23  ;;  %p3517_p0 = scmp.ne.s32.totalorder %s3512_s29, 0 }
  0x6e   : > { %v1984_v8 = vpack.c.bf16 %v352_v6, %v348_v5  ;;  %v356_v11 = vld [vmem:[#allocation5 + $0x88] sm:$0xff]  ;;  %1981 = vmatprep.subr.bf16.mxu1 %v1980_v3  ;;  %v1986_v13 = vpack.c.bf16 %v351_v10, %v347_v9  ;;  %v355_v15 = vld [vmem:[#allocation5 + $0x80] sm:$0xff]  ;;  %s2602_s7 = smov [#allocation8]  }
  0x6f   : > { %v360_v12 = vld [vmem:[#allocation5 + $0xa8] sm:$0xff]  ;;  %1983 = vmatpush1.bf16.msra.mxu1 %v1982_v7  ;;  %v359_v16 = vld [vmem:[#allocation5 + $0xa0] sm:$0xff]  ;;  %p2525_p1 = pnand %p2524_p11, %p3517_p0  ;;  %s2527_s6 = sshll.u32 %s2602_s7, 4  ;;  %s2528_s6 = int_to_ptr.vmem [resolvable:$false] %s2527_s6 }
  0x70   : > { %1985 = vmatprep.subr.bf16.mxu1 %v1984_v8  ;;  %v1988_v14 = vpack.c.bf16 %v360_v12, %v356_v11  ;;  %v364_v17 = vld [vmem:[#allocation5 + $0xc8] sm:$0xff]  ;;  %v1990_v19 = vpack.c.bf16 %v359_v16, %v355_v15  ;;  %v363_v21 = vld [vmem:[#allocation5 + $0xc0] sm:$0xff]  ;;  %s2529_s8 = scalar_lea.vmem %s2528_s6, 16384  ;;  %p2530_p5 = scmp.lt.s32.totalorder %s3451_s15, %s2528_s6 }
  0x71   : > { %v368_v18 = vld [vmem:[#allocation5 + $0xe8] sm:$0xff]  ;;  %v367_v22 = vld [vmem:[#allocation5 + $0xe0] sm:$0xff]  ;;  %p2526_p3 = pneg %p2525_p1  ;;  %p2531_p9 = scmp.lt.s32.totalorder %s2529_s8, %s2523_s23 }
  0x72   : > { %v1992_v20 = vpack.c.bf16 %v368_v18, %v364_v17  ;;  %v372_v23 = vld [vmem:[#allocation5 + $0x108] sm:$0xff]  ;;  %v1994_v25 = vpack.c.bf16 %v367_v22, %v363_v21  ;;  %v371_v27 = vld [vmem:[#allocation5 + $0x100] sm:$0xff] }
  0x73   : > { %1987 = vmatpush1.bf16.msra.mxu1 %v1986_v13  ;;  %v376_v24 = vld [vmem:[#allocation5 + $0x128] sm:$0xff]  ;;  %v375_v28 = vld [vmem:[#allocation5 + $0x120] sm:$0xff]  ;;  %p2532_p12 = por %p2531_p9, %p2530_p5 }
  0x74   : > { %1989 = vmatprep.subr.bf16.mxu1 %v1988_v14  ;;  %v1996_v26 = vpack.c.bf16 %v376_v24, %v372_v23  ;;  %v380_v29 = vld [vmem:[#allocation5 + $0x148] sm:$0xff]  ;;  %v1998_v31 = vpack.c.bf16 %v375_v28, %v371_v27  ;;  %v379_v33 = vld [vmem:[#allocation5 + $0x140] sm:$0xff] }
  0x75   : > { %v384_v30 = vld [vmem:[#allocation5 + $0x168] sm:$0xff]  ;;  %v383_v34 = vld [vmem:[#allocation5 + $0x160] sm:$0xff]  ;;  %p2533_p2 = pnand %p2532_p12, %p2526_p3 }
  0x76   : > { %v2000_v32 = vpack.c.bf16 %v384_v30, %v380_v29  ;;  %v388_v35 = vld [vmem:[#allocation5 + $0x188] sm:$0xff]  ;;  %v2002_v37 = vpack.c.bf16 %v383_v34, %v379_v33  ;;  %v387_v39 = vld [vmem:[#allocation5 + $0x180] sm:$0xff]  ;;  %v346_v33 = vld [vmem:[#allocation5 + $0x38] sm:$0xff] }
  0x77   : > { %1991 = vmatpush1.bf16.msra.mxu1 %v1990_v19  ;;  %v392_v36 = vld [vmem:[#allocation5 + $0x1a8] sm:$0xff]  ;;  %v391_v40 = vld [vmem:[#allocation5 + $0x1a0] sm:$0xff] }
  0x78   : > { %1993 = vmatprep.subr.bf16.mxu1 %v1992_v20  ;;  %v2004_v38 = vpack.c.bf16 %v392_v36, %v388_v35  ;;  %v2830_v41 = vld [vmem:[%s2819_s14 + $0x8] sm:$0xff]  ;;  %v2006_v44 = vpack.c.bf16 %v391_v40, %v387_v39  ;;  %v395_v46 = vld [vmem:[#allocation5 + $0x1c0] sm:$0xff]  ;;  %v341_v36 = vld [vmem:[#allocation5 + $0x10] sm:$0xff] }
  0x79   : > { %v396_v42 = vld [vmem:[#allocation5 + $0x1c8] sm:$0xff]  ;;  %553 = vmatprep.mubr.f32.mxu1 %v2830_v41  ;;  %v399_v47 = vld [vmem:[#allocation5 + $0x1e0] sm:$0xff]  ;;  %v354_v39 = vld [vmem:[#allocation5 + $0x78] sm:$0xff] }
  0x7a   : > { %v400_v43 = vld [vmem:[#allocation5 + $0x1e8] sm:$0xff]  ;;  %v2010_v50 = vpack.c.bf16 %v399_v47, %v395_v46  ;;  %v403_v52 = vld [vmem:[#allocation5 + $0x200] sm:$0xff]  ;;  %v353_v46 = vld [vmem:[#allocation5 + $0x70] sm:$0xff] }
  0x7b   : > { %1995 = vmatpush1.bf16.msra.mxu1 %v1994_v25  ;;  %v2008_v45 = vpack.c.bf16 %v400_v43, %v396_v42  ;;  %v404_v48 = vld [vmem:[#allocation5 + $0x208] sm:$0xff]  ;;  %v407_v53 = vld [vmem:[#allocation5 + $0x220] sm:$0xff]  ;;  %v2837_v43 = vld [vmem:[%s2819_s14 + $0x18] sm:$0xff] }
  0x7c   : > { %1997 = vmatprep.subr.bf16.mxu1 %v1996_v26  ;;  %v408_v49 = vld [vmem:[#allocation5 + $0x228] sm:$0xff]  ;;  %v2014_v56 = vpack.c.bf16 %v407_v53, %v403_v52  ;;  %v411_v58 = vld [vmem:[#allocation5 + $0x240] sm:$0xff]  ;;  %v358_v47 = vld [vmem:[#allocation5 + $0x98] sm:$0xff] }
  0x7d   : > { %v2012_v51 = vpack.c.bf16 %v408_v49, %v404_v48  ;;  %v412_v54 = vld [vmem:[#allocation5 + $0x248] sm:$0xff]  ;;  %v415_v59 = vld [vmem:[#allocation5 + $0x260] sm:$0xff]  ;;  %v362_v48 = vld [vmem:[#allocation5 + $0xb8] sm:$0xff] }
  0x7e   : > { %v416_v55 = vld [vmem:[#allocation5 + $0x268] sm:$0xff]  ;;  %v2018_v62 = vpack.c.bf16 %v415_v59, %v411_v58  ;;  %v419_v0 = vld [vmem:[#allocation5 + $0x280] sm:$0xff]  ;;  %v2842_v49 = vld [vmem:[%s2819_s14 + $0x10] sm:$0xff]  ;;  %v2052_v52 = vpack.c.bf16 %v362_v48, %v358_v47 }
  0x7f   : > { %1999 = vmatpush1.bf16.msra.mxu1 %v1998_v31  ;;  %v2016_v57 = vpack.c.bf16 %v416_v55, %v412_v54  ;;  %v420_v60 = vld [vmem:[#allocation5 + $0x288] sm:$0xff]  ;;  %v423_v1 = vld [vmem:[#allocation5 + $0x2a0] sm:$0xff]  ;;  %v357_v53 = vld [vmem:[#allocation5 + $0x90] sm:$0xff] }
  0x80   : > { %2001 = vmatprep.subr.bf16.mxu1 %v2000_v32  ;;  %v424_v61 = vld [vmem:[#allocation5 + $0x2a8] sm:$0xff]  ;;  %v2022_v4 = vpack.c.bf16 %v423_v1, %v419_v0  ;;  %v427_v6 = vld [vmem:[#allocation5 + $0x2c0] sm:$0xff]  ;;  %v342_v32 = vld [vmem:[#allocation5 + $0x18] sm:$0xff] }
  0x81   : > { %v2020_v63 = vpack.c.bf16 %v424_v61, %v420_v60  ;;  %v428_v2 = vld [vmem:[#allocation5 + $0x2c8] sm:$0xff]  ;;  %v431_v7 = vld [vmem:[#allocation5 + $0x2e0] sm:$0xff]  ;;  %v2044_v35 = vpack.c.bf16 %v346_v33, %v342_v32  ;;  %v361_v54 = vld [vmem:[#allocation5 + $0xb0] sm:$0xff] }
  0x82   : > { %v432_v3 = vld [vmem:[#allocation5 + $0x2e8] sm:$0xff]  ;;  %v2026_v10 = vpack.c.bf16 %v431_v7, %v427_v6  ;;  %v435_v12 = vld [vmem:[#allocation5 + $0x300] sm:$0xff]  ;;  %v366_v55 = vld [vmem:[#allocation5 + $0xd8] sm:$0xff]  ;;  %v2054_v58 = vpack.c.bf16 %v361_v54, %v357_v53 }
  0x83   : > { %2003 = vmatpush1.bf16.msra.mxu1 %v2002_v37  ;;  %v2024_v5 = vpack.c.bf16 %v432_v3, %v428_v2  ;;  %v436_v8 = vld [vmem:[#allocation5 + $0x308] sm:$0xff]  ;;  %v439_v13 = vld [vmem:[#allocation5 + $0x320] sm:$0xff]  ;;  %v345_v37 = vld [vmem:[#allocation5 + $0x30] sm:$0xff] }
  0x84   : > { %2005 = vmatprep.subr.bf16.mxu1 %v2004_v38  ;;  %v440_v9 = vld [vmem:[#allocation5 + $0x328] sm:$0xff]  ;;  %v2030_v16 = vpack.c.bf16 %v439_v13, %v435_v12  ;;  %v443_v18 = vld [vmem:[#allocation5 + $0x340] sm:$0xff]  ;;  %v350_v38 = vld [vmem:[#allocation5 + $0x58] sm:$0xff]  ;;  %v2046_v42 = vpack.c.bf16 %v345_v37, %v341_v36 }
  0x85   : > { %v2028_v11 = vpack.c.bf16 %v440_v9, %v436_v8  ;;  %v444_v14 = vld [vmem:[#allocation5 + $0x348] sm:$0xff]  ;;  %v447_v19 = vld [vmem:[#allocation5 + $0x360] sm:$0xff]  ;;  %v2853_v59 = vld [vmem:[%s2819_s14 + $0x38] sm:$0xff] }
  0x86   : > { %v448_v15 = vld [vmem:[#allocation5 + $0x368] sm:$0xff]  ;;  %v2034_v22 = vpack.c.bf16 %v447_v19, %v443_v18  ;;  %v451_v24 = vld [vmem:[#allocation5 + $0x380] sm:$0xff]  ;;  %v365_v61 = vld [vmem:[#allocation5 + $0xd0] sm:$0xff] }
  0x87   : > { %2007 = vmatpush1.bf16.msra.mxu1 %v2006_v44  ;;  %v2032_v17 = vpack.c.bf16 %v448_v15, %v444_v14  ;;  %v452_v20 = vld [vmem:[#allocation5 + $0x388] sm:$0xff]  ;;  %v455_v25 = vld [vmem:[#allocation5 + $0x3a0] sm:$0xff]  ;;  %v2048_v44 = vpack.c.bf16 %v354_v39, %v350_v38  ;;  %v378_v0 = vld [vmem:[#allocation5 + $0x138] sm:$0xff] }
  0x88   : > { %2009 = vmatprep.subr.bf16.mxu1 %v2008_v45  ;;  %v456_v21 = vld [vmem:[#allocation5 + $0x3a8] sm:$0xff]  ;;  %v2038_v28 = vpack.c.bf16 %v455_v25, %v451_v24  ;;  %v459_v30 = vld [vmem:[#allocation5 + $0x3c0] sm:$0xff]  ;;  %v349_v45 = vld [vmem:[#allocation5 + $0x50] sm:$0xff] }
  0x89   : > { %v2036_v23 = vpack.c.bf16 %v456_v21, %v452_v20  ;;  %v460_v26 = vld [vmem:[#allocation5 + $0x3c8] sm:$0xff]  ;;  %v463_v31 = vld [vmem:[#allocation5 + $0x3e0] sm:$0xff]  ;;  %v2858_v1 = vld [vmem:[%s2819_s14 + $0x30] sm:$0xff] }
  0x8a   : > { %v464_v27 = vld [vmem:[#allocation5 + $0x3e8] sm:$0xff]  ;;  %v2042_v34 = vpack.c.bf16 %v463_v31, %v459_v30  ;;  %v2834_v40 = vld [vmem:[%s2819_s14] sm:$0xff]  ;;  %v377_v6 = vld [vmem:[#allocation5 + $0x130] sm:$0xff] }
  0x8b   : > { %2011 = vmatpush1.bf16.msra.mxu1 %v2010_v50  ;;  %v2040_v29 = vpack.c.bf16 %v464_v27, %v460_v26  ;;  %v2050_v50 = vpack.c.bf16 %v353_v46, %v349_v45  ;;  %v2861_v3 = vld [vmem:[%s2819_s14 + $0x48] sm:$0xff]  ;;  %v382_v7 = vld [vmem:[#allocation5 + $0x158] sm:$0xff]  ;;  %v2866_v9 = vld [vmem:[%s2819_s14 + $0x40] sm:$0xff] }
  0x8c   : > { %2013 = vmatprep.subr.bf16.mxu1 %v2012_v51  ;;  %v2845_v51 = vld [vmem:[%s2819_s14 + $0x28] sm:$0xff]  ;;  %v386_v8 = vld [vmem:[#allocation5 + $0x178] sm:$0xff]  ;;  %v381_v13 = vld [vmem:[#allocation5 + $0x150] sm:$0xff] }
  0x8d   : > { %v2064_v12 = vpack.c.bf16 %v386_v8, %v382_v7  ;;  %v385_v14 = vld [vmem:[#allocation5 + $0x170] sm:$0xff]  ;;  %v390_v15 = vld [vmem:[#allocation5 + $0x198] sm:$0xff]  ;;  %v2877_v19 = vld [vmem:[%s2819_s14 + $0x68] sm:$0xff] }
  0x8e   : > { %v2066_v18 = vpack.c.bf16 %v385_v14, %v381_v13  ;;  %v389_v21 = vld [vmem:[#allocation5 + $0x190] sm:$0xff]  ;;  %v402_v24 = vld [vmem:[#allocation5 + $0x1f8] sm:$0xff]  ;;  %v2882_v25 = vld [vmem:[%s2819_s14 + $0x60] sm:$0xff] }
  0x8f   : > { %2015 = vmatpush1.bf16.msra.mxu1 %v2014_v56  ;;  %v370_v56 = vld [vmem:[#allocation5 + $0xf8] sm:$0xff]  ;;  %v401_v30 = vld [vmem:[#allocation5 + $0x1f0] sm:$0xff]  ;;  %v1132_v33 = vld [vmem:[#allocation7 + $0x8] sm:$0xff] }
  0x90   : > { %2017 = vmatprep.subr.bf16.mxu1 %v2016_v57  ;;  %v2850_v57 = vld [vmem:[%s2819_s14 + $0x20] sm:$0xff]  ;;  %v2056_v60 = vpack.c.bf16 %v370_v56, %v366_v55  ;;  %v2885_v26 = vld [vmem:[%s2819_s14 + $0x78] sm:$0xff]  ;;  %v1133_v37 = vld [vmem:[#allocation7 + $0x10] sm:$0xff] }
  0x91   : > { %v406_v31 = vld [vmem:[#allocation5 + $0x218] sm:$0xff]  ;;  %v1131_v36 = vld [vmem:[#allocation7] sm:$0xff]  ;;  %v2890_v38 = vld [vmem:[%s2819_s14 + $0x70] sm:$0xff] }
  0x92   : > { %v410_v32 = vld [vmem:[#allocation5 + $0x238] sm:$0xff]  ;;  %v2893_v39 = vld [vmem:[%s2819_s14 + $0x88] sm:$0xff]  ;;  %v405_v46 = vld [vmem:[#allocation5 + $0x210] sm:$0xff] }
  0x93   : > { %2019 = vmatpush1.bf16.msra.mxu1 %v2018_v62  ;;  %v369_v62 = vld [vmem:[#allocation5 + $0xf0] sm:$0xff]  ;;  %v2076_v45 = vpack.c.bf16 %v410_v32, %v406_v31  ;;  %v414_v48 = vld [vmem:[#allocation5 + $0x258] sm:$0xff]  ;;  %v1135_v55 = vld [vmem:[#allocation7 + $0x20] sm:$0xff] }
  0x94   : > { %2021 = vmatprep.subr.bf16.mxu1 %v2020_v63  ;;  %v374_v63 = vld [vmem:[#allocation5 + $0x118] sm:$0xff]  ;;  %v2058_v2 = vpack.c.bf16 %v369_v62, %v365_v61  ;;  %v409_v47 = vld [vmem:[#allocation5 + $0x230] sm:$0xff]  ;;  %v2909_v14 = vld [vmem:[%s2819_s14 + $0xa8] sm:$0xff] }
  0x95   : > { %v1138_v53 = vld [vmem:[#allocation7 + $0x38] sm:$0xff]  ;;  %v1137_v56 = vld [vmem:[#allocation7 + $0x30] sm:$0xff]  ;;  %v2078_v61 = vpack.c.bf16 %v409_v47, %v405_v46  ;;  %v2914_v31 = vld [vmem:[%s2819_s14 + $0xa0] sm:$0xff] }
  0x96   : > { %v2114_v62 = vpack.c.bf16 %v1137_v56, %v1135_v55  ;;  %v1142_v7 = vld [vmem:[#allocation7 + $0x58] sm:$0xff]  ;;  %v2906_v13 = vld [vmem:[%s2819_s14 + $0x90] sm:$0xff] }
  0x97   : > { %2023 = vmatpush1.bf16.msra.mxu1 %v2022_v4  ;;  %v2060_v4 = vpack.c.bf16 %v378_v0, %v374_v63  ;;  %v413_v0 = vld [vmem:[#allocation5 + $0x250] sm:$0xff]  ;;  %v2917_v32 = vld [vmem:[%s2819_s14 + $0xb8] sm:$0xff] }
  0x98   : > { %2025 = vmatprep.subr.bf16.mxu1 %v2024_v5  ;;  %v373_v5 = vld [vmem:[#allocation5 + $0x110] sm:$0xff]  ;;  %v1150_v46 = vld [vmem:[#allocation7 + $0x98] sm:$0xff] }
  0x9b   : > { %2027 = vmatpush1.bf16.msra.mxu1 %v2026_v10  ;;  %v2062_v10 = vpack.c.bf16 %v377_v6, %v373_v5  ;;  %v426_v5 = vld [vmem:[#allocation5 + $0x2b8] sm:$0xff]  ;;  %v1140_v6 = vld [vmem:[#allocation7 + $0x48] sm:$0xff] }
  0x9c   : > { %2029 = vmatprep.subr.bf16.mxu1 %v2028_v11  ;;  %v2869_v11 = vld [vmem:[%s2819_s14 + $0x58] sm:$0xff]  ;;  %v2116_v8 = vpack.c.bf16 %v1142_v7, %v1140_v6  ;;  %v1151_v6 = vld [vmem:[#allocation7 + $0xa0] sm:$0xff]  ;;  %v1153_v7 = vld [vmem:[#allocation7 + $0xb0] sm:$0xff] }
  0x9f   : > { %2031 = vmatpush1.bf16.msra.mxu1 %v2030_v16  ;;  %v394_v16 = vld [vmem:[#allocation5 + $0x1b8] sm:$0xff] }
  0xa0   : > { %2033 = vmatprep.subr.bf16.mxu1 %v2032_v17  ;;  %v2874_v17 = vld [vmem:[%s2819_s14 + $0x50] sm:$0xff]  ;;  %v2068_v20 = vpack.c.bf16 %v394_v16, %v390_v15 }
  0xa3   : > { %2035 = vmatpush1.bf16.msra.mxu1 %v2034_v22  ;;  %v393_v22 = vld [vmem:[#allocation5 + $0x1b0] sm:$0xff] }
  0xa4   : > { %2037 = vmatprep.subr.bf16.mxu1 %v2036_v23  ;;  %v398_v23 = vld [vmem:[#allocation5 + $0x1d8] sm:$0xff]  ;;  %v2070_v27 = vpack.c.bf16 %v393_v22, %v389_v21  ;;  %v425_v21 = vld [vmem:[#allocation5 + $0x2b0] sm:$0xff] }
  0xa5   : > { %v430_v22 = vld [vmem:[#allocation5 + $0x2d8] sm:$0xff] }
  0xa7   : > { %2039 = vmatpush1.bf16.msra.mxu1 %v2038_v28  ;;  %v2072_v28 = vpack.c.bf16 %v402_v24, %v398_v23  ;;  %v434_v23 = vld [vmem:[#allocation5 + $0x2f8] sm:$0xff]  ;;  %v1144_v24 = vld [vmem:[#allocation7 + $0x68] sm:$0xff] }
  0xa8   : > { %2041 = vmatprep.subr.bf16.mxu1 %v2040_v29  ;;  %v397_v29 = vld [vmem:[#allocation5 + $0x1d0] sm:$0xff] }
  0xab   : > { %2043 = vmatpush1.bf16.msra.mxu1 %v2042_v34  ;;  %v1134_v34 = vld [vmem:[#allocation7 + $0x18] sm:$0xff] }
  0xac   : > { %2045 = vmatprep.subr.bf16.mxu1 %v2044_v35  ;;  %v2108_v35 = vpack.c.bf16 %v1134_v34, %v1132_v33 }
  0xae   : > { %554 = vmatmul.mubr.f32.vlgmr.msra.gmra.mrb[0].mxu1 %v2834_v40  ;;  %2109 = vmatprep.subr.bf16.mxu0 %v2108_v35  ;;  %v2088_v35 = vpack.c.bf16 %v434_v23, %v430_v22  ;;  %v458_v22 = vld [vmem:[#allocation5 + $0x3b8] sm:$0xff]  ;;  %v1156_v23 = vld [vmem:[#allocation7 + $0xc8] sm:$0xff] }
  0xaf   : > { %2047 = vmatpush1.bf16.msra.mxu1 %v2046_v42  ;;  %559 = vmatprep.mubr.f32.mxu1 %v2837_v43  ;;  %v2074_v42 = vpack.c.bf16 %v401_v30, %v397_v29  ;;  %v1143_v29 = vld [vmem:[#allocation7 + $0x60] sm:$0xff]  ;;  %v1145_v30 = vld [vmem:[#allocation7 + $0x70] sm:$0xff] }
  0xb0   : > { %2049 = vmatprep.subr.bf16.mxu1 %v2048_v44  ;;  %v2110_v44 = vpack.c.bf16 %v1133_v37, %v1131_v36  ;;  %v2122_v34 = vpack.c.bf16 %v1145_v30, %v1143_v29  ;;  %v429_v36 = vld [vmem:[#allocation5 + $0x2d0] sm:$0xff] }
  0xb1   : > { %v433_v37 = vld [vmem:[#allocation5 + $0x2f0] sm:$0xff] }
  0xb2   : > { %560 = vmatmul.mubr.f32.gmra.mrb[2].mxu1 %v2842_v49  ;;  %2111 = vmatpush1.bf16.msra.mxu0 %v2110_v44  ;;  %v442_v44 = vld [vmem:[#allocation5 + $0x338] sm:$0xff]  ;;  %v1157_v29 = vld [vmem:[#allocation7 + $0xd0] sm:$0xff] }
  0xb3   : > { %565 = vmatprep.mubr.f32.mxu1 %v2845_v51  ;;  %2051 = vmatpush1.bf16.msra.mxu1 %v2050_v50  ;;  %v418_v50 = vld [vmem:[#allocation5 + $0x278] sm:$0xff]  ;;  %v2938_v30 = vld [vmem:[%s2819_s14 + $0xd0] sm:$0xff] }
  0xb4   : > { %2053 = vmatprep.subr.bf16.mxu1 %v2052_v52  ;;  %v1136_v52 = vld [vmem:[#allocation7 + $0x28] sm:$0xff]  ;;  %v2080_v63 = vpack.c.bf16 %v418_v50, %v414_v48  ;;  %v1147_v48 = vld [vmem:[#allocation7 + $0x80] sm:$0xff]  ;;  %v1149_v50 = vld [vmem:[#allocation7 + $0x90] sm:$0xff] }
  0xb5   : > { %v2112_v54 = vpack.c.bf16 %v1138_v53, %v1136_v52  ;;  %v2922_v52 = vld [vmem:[%s2819_s14 + $0xb0] sm:$0xff]  ;;  %v2925_v53 = vld [vmem:[%s2819_s14 + $0xc8] sm:$0xff]  ;;  %v2126_v55 = vpack.c.bf16 %v1149_v50, %v1147_v48  ;;  %v1159_v50 = vld [vmem:[#allocation7 + $0xe0] sm:$0xff] }
  0xb6   : > { %566 = vmatmul.mubr.f32.gmra.mrb[4].mxu1 %v2850_v57 }
  0xb7   : > { %571 = vmatprep.mubr.f32.mxu1 %v2853_v59  ;;  %2055 = vmatpush1.bf16.msra.mxu1 %v2054_v58  ;;  %v2898_v58 = vld [vmem:[%s2819_s14 + $0x80] sm:$0xff] }
  0xb8   : > { %2057 = vmatprep.subr.bf16.mxu1 %v2056_v60  ;;  %v2901_v60 = vld [vmem:[%s2819_s14 + $0x98] sm:$0xff]  ;;  %2113 = vmatprep.subr.bf16.mxu0 %v2112_v54  ;;  %v2090_v54 = vpack.c.bf16 %v433_v37, %v429_v36  ;;  %v453_v37 = vld [vmem:[#allocation5 + $0x390] sm:$0xff] }
  0xb9   : > { %2115 = vmatpush1.bf16.msra.mxu0 %v2114_v62  ;;  %v441_v62 = vld [vmem:[#allocation5 + $0x330] sm:$0xff] }
  0xba   : > { %572 = vmatmul.mubr.f32.gmra.mrb[6].mxu1 %v2858_v1  ;;  %2117 = vmatprep.subr.bf16.mxu0 %v2116_v8  ;;  %v2930_v8 = vld [vmem:[%s2819_s14 + $0xc0] sm:$0xff] }
  0xbb   : > { %577 = vmatprep.mubr.f32.mxu1 %v2861_v3  ;;  %2059 = vmatpush1.bf16.msra.mxu1 %v2058_v2  ;;  %v417_v2 = vld [vmem:[#allocation5 + $0x270] sm:$0xff] }
  0xbc   : > { %2061 = vmatprep.subr.bf16.mxu1 %v2060_v4  ;;  %v422_v4 = vld [vmem:[#allocation5 + $0x298] sm:$0xff]  ;;  %v2082_v15 = vpack.c.bf16 %v417_v2, %v413_v0  ;;  %v1152_v2 = vld [vmem:[#allocation7 + $0xa8] sm:$0xff] }
  0xbd   : > { %v450_v0 = vld [vmem:[#allocation5 + $0x378] sm:$0xff] }
  0xbe   : > { %578 = vmatmul.mubr.f32.gmra.mrb[8].mxu1 %v2866_v9 }
  0xbf   : > { %583 = vmatprep.mubr.f32.mxu1 %v2869_v11  ;;  %2063 = vmatpush1.bf16.msra.mxu1 %v2062_v10  ;;  %v1139_v10 = vld [vmem:[#allocation7 + $0x40] sm:$0xff] }
  0xc0   : > { %2065 = vmatprep.subr.bf16.mxu1 %v2064_v12  ;;  %v1141_v12 = vld [vmem:[#allocation7 + $0x50] sm:$0xff] }
  0xc1   : > { %v2118_v16 = vpack.c.bf16 %v1141_v12, %v1139_v10  ;;  %v2933_v10 = vld [vmem:[%s2819_s14 + $0xd8] sm:$0xff] }
  0xc2   : > { %584 = vmatmul.mubr.f32.gmra.mrb[10].mxu1 %v2874_v17 }
  0xc3   : > { %589 = vmatprep.mubr.f32.mxu1 %v2877_v19  ;;  %2067 = vmatpush1.bf16.msra.mxu1 %v2066_v18  ;;  %v2084_v18 = vpack.c.bf16 %v426_v5, %v422_v4  ;;  %v1154_v4 = vld [vmem:[#allocation7 + $0xb8] sm:$0xff] }
  0xc4   : > { %2069 = vmatprep.subr.bf16.mxu1 %v2068_v20  ;;  %v421_v20 = vld [vmem:[#allocation5 + $0x290] sm:$0xff]  ;;  %2119 = vmatpush1.bf16.msra.mxu0 %v2118_v16  ;;  %v2128_v5 = vpack.c.bf16 %v1154_v4, %v1152_v2  ;;  %v1164_v4 = vld [vmem:[#allocation7 + $0x108] sm:$0xff] }
  0xc5   : > { %v2086_v33 = vpack.c.bf16 %v425_v21, %v421_v20  ;;  %v449_v20 = vld [vmem:[#allocation5 + $0x370] sm:$0xff]  ;;  %v454_v21 = vld [vmem:[#allocation5 + $0x398] sm:$0xff] }
  0xc6   : > { %590 = vmatmul.mubr.f32.gmra.mrb[12].mxu1 %v2882_v25  ;;  %v2100_v36 = vpack.c.bf16 %v458_v22, %v454_v21  ;;  %v465_v2 = vld [vmem:[#allocation5 + $0x3f0] sm:$0xff]  ;;  %v1168_v21 = vld [vmem:[#allocation7 + $0x128] sm:$0xff]  ;;  %v1170_v22 = vld [vmem:[#allocation7 + $0x138] sm:$0xff] }
  0xc7   : > { %595 = vmatprep.mubr.f32.mxu1 %v2885_v26  ;;  %2071 = vmatpush1.bf16.msra.mxu1 %v2070_v27  ;;  %v1146_v27 = vld [vmem:[#allocation7 + $0x78] sm:$0xff] }
  0xc8   : > { %2073 = vmatprep.subr.bf16.mxu1 %v2072_v28  ;;  %v2120_v28 = vpack.c.bf16 %v1146_v27, %v1144_v24  ;;  %v1158_v24 = vld [vmem:[#allocation7 + $0xd8] sm:$0xff] }
  0xc9   : > { %v2132_v27 = vpack.c.bf16 %v1158_v24, %v1156_v23  ;;  %v2144_v23 = vpack.c.bf16 %v1170_v22, %v1168_v21  ;;  %v1167_v24 = vld [vmem:[#allocation7 + $0x120] sm:$0xff]  ;;  %v2989_v21 = vld [vmem:[%s2819_s14 + $0x148] sm:$0xff] }
  0xca   : > { %596 = vmatmul.mubr.f32.gmra.mrb[14].mxu1 %v2890_v38  ;;  %2121 = vmatprep.subr.bf16.mxu0 %v2120_v28  ;;  %v1155_v28 = vld [vmem:[#allocation7 + $0xc0] sm:$0xff]  ;;  %v1184_v22 = vld [vmem:[#allocation7 + $0x1a8] sm:$0xff] }
  0xcb   : > { %601 = vmatprep.mubr.f32.mxu1 %v2893_v39  ;;  %2075 = vmatpush1.bf16.msra.mxu1 %v2074_v42  ;;  %v438_v42 = vld [vmem:[#allocation5 + $0x318] sm:$0xff] }
  0xcc   : > { %2077 = vmatprep.subr.bf16.mxu1 %v2076_v45  ;;  %2123 = vmatpush1.bf16.msra.mxu0 %v2122_v34  ;;  %v1148_v45 = vld [vmem:[#allocation7 + $0x88] sm:$0xff]  ;;  %v2092_v56 = vpack.c.bf16 %v442_v44, %v438_v42  ;;  %v457_v42 = vld [vmem:[#allocation5 + $0x3b0] sm:$0xff]  ;;  %v462_v44 = vld [vmem:[#allocation5 + $0x3d8] sm:$0xff] }
  0xcd   : > { %v2124_v47 = vpack.c.bf16 %v1150_v46, %v1148_v45  ;;  %v466_v45 = vld [vmem:[#allocation5 + $0x3f8] sm:$0xff]  ;;  %v1160_v46 = vld [vmem:[#allocation7 + $0xe8] sm:$0xff] }
  0xce   : > { %602 = vmatmul.mubr.f32.gmra.mrb[16].mxu1 %v2898_v58 }
  0xcf   : > { %607 = vmatprep.mubr.f32.mxu1 %v2901_v60  ;;  %2079 = vmatpush1.bf16.msra.mxu1 %v2078_v61  ;;  %v437_v61 = vld [vmem:[#allocation5 + $0x310] sm:$0xff] }
  0xd0   : > { %2081 = vmatprep.subr.bf16.mxu1 %v2080_v63  ;;  %v446_v63 = vld [vmem:[#allocation5 + $0x358] sm:$0xff]  ;;  %2125 = vmatprep.subr.bf16.mxu0 %v2124_v47  ;;  %v2094_v12 = vpack.c.bf16 %v441_v62, %v437_v61 }
  0xd1   : > { %2127 = vmatpush1.bf16.msra.mxu0 %v2126_v55  ;;  %v2096_v16 = vpack.c.bf16 %v450_v0, %v446_v63  ;;  %v1162_v47 = vld [vmem:[#allocation7 + $0xf8] sm:$0xff]  ;;  %v2946_v55 = vld [vmem:[%s2819_s14 + $0xe0] sm:$0xff]  ;;  %v2104_v63 = vpack.c.bf16 %v466_v45, %v462_v44  ;;  %v461_v0 = vld [vmem:[#allocation5 + $0x3d0] sm:$0xff] }
  0xd2   : > { %608 = vmatmul.mubr.f32.gmra.mrb[18].mxu1 %v2906_v13  ;;  %2129 = vmatprep.subr.bf16.mxu0 %v2128_v5  ;;  %v2136_v48 = vpack.c.bf16 %v1162_v47, %v1160_v46  ;;  %v2949_v62 = vld [vmem:[%s2819_s14 + $0xf8] sm:$0xff]  ;;  %v1173_v44 = vld [vmem:[#allocation7 + $0x150] sm:$0xff]  ;;  %v2973_v47 = vld [vmem:[%s2819_s14 + $0x128] sm:$0xff] }
  0xd3   : > { %613 = vmatprep.mubr.f32.mxu1 %v2909_v14  ;;  %2083 = vmatpush1.bf16.msra.mxu1 %v2082_v15  ;;  %v2130_v15 = vpack.c.bf16 %v1153_v7, %v1151_v6  ;;  %v1166_v5 = vld [vmem:[#allocation7 + $0x118] sm:$0xff]  ;;  %v1163_v7 = vld [vmem:[#allocation7 + $0x100] sm:$0xff]  ;;  %v2970_v45 = vld [vmem:[%s2819_s14 + $0x110] sm:$0xff] }
  0xd4   : > { %2085 = vmatprep.subr.bf16.mxu1 %v2084_v18  ;;  %v445_v18 = vld [vmem:[#allocation5 + $0x350] sm:$0xff]  ;;  %v2140_v6 = vpack.c.bf16 %v1166_v5, %v1164_v4  ;;  %v1180_v4 = vld [vmem:[#allocation7 + $0x188] sm:$0xff]  ;;  %v1182_v5 = vld [vmem:[#allocation7 + $0x198] sm:$0xff] }
  0xd5   : > { %2131 = vmatpush1.bf16.msra.mxu0 %v2130_v15  ;;  %v2098_v34 = vpack.c.bf16 %v449_v20, %v445_v18  ;;  %v2954_v15 = vld [vmem:[%s2819_s14 + $0xf0] sm:$0xff]  ;;  %v2957_v20 = vld [vmem:[%s2819_s14 + $0x108] sm:$0xff] }
  0xd6   : > { %614 = vmatmul.mubr.f32.gmra.mrb[20].mxu1 %v2914_v31  ;;  %2133 = vmatprep.subr.bf16.mxu0 %v2132_v27  ;;  %v1169_v27 = vld [vmem:[#allocation7 + $0x130] sm:$0xff] }
  0xd7   : > { %619 = vmatprep.mubr.f32.mxu1 %v2917_v32  ;;  %2087 = vmatpush1.bf16.msra.mxu1 %v2086_v33  ;;  %v2941_v33 = vld [vmem:[%s2819_s14 + $0xe8] sm:$0xff] }
  0xd8   : > { %2089 = vmatprep.subr.bf16.mxu1 %v2088_v35  ;;  %v2134_v35 = vpack.c.bf16 %v1157_v29, %v1155_v28  ;;  %v2962_v28 = vld [vmem:[%s2819_s14 + $0x100] sm:$0xff]  ;;  %v2146_v29 = vpack.c.bf16 %v1169_v27, %v1167_v24 }
  0xd9   : > { %v1183_v27 = vld [vmem:[#allocation7 + $0x1a0] sm:$0xff] }
  0xda   : > { %620 = vmatmul.mubr.f32.gmra.mrb[22].mxu1 %v2922_v52  ;;  %2135 = vmatpush1.bf16.msra.mxu0 %v2134_v35  ;;  %v1172_v35 = vld [vmem:[#allocation7 + $0x148] sm:$0xff] }
  0xdb   : > { %625 = vmatprep.mubr.f32.mxu1 %v2925_v53  ;;  %2091 = vmatpush1.bf16.msra.mxu1 %v2090_v54  ;;  %v1161_v54 = vld [vmem:[#allocation7 + $0xf0] sm:$0xff] }
  0xdc   : > { %2093 = vmatprep.subr.bf16.mxu1 %v2092_v56  ;;  %v2102_v56 = vpack.c.bf16 %v457_v42, %v453_v37  ;;  %v2138_v61 = vpack.c.bf16 %v1161_v54, %v1159_v50  ;;  %2137 = vmatprep.subr.bf16.mxu0 %v2136_v48  ;;  %v1171_v42 = vld [vmem:[#allocation7 + $0x140] sm:$0xff]  ;;  %v1176_v48 = vld [vmem:[#allocation7 + $0x168] sm:$0xff]  ;;  %v1178_v50 = vld [vmem:[#allocation7 + $0x178] sm:$0xff] }
  0xdd   : > { %v2150_v46 = vpack.c.bf16 %v1173_v44, %v1171_v42  ;;  %v2152_v54 = vpack.c.bf16 %v1178_v50, %v1176_v48  ;;  %v1188_v42 = vld [vmem:[#allocation7 + $0x1c8] sm:$0xff]  ;;  %v1190_v44 = vld [vmem:[#allocation7 + $0x1d8] sm:$0xff]  ;;  %v1187_v48 = vld [vmem:[#allocation7 + $0x1c0] sm:$0xff] }
  0xde   : > { %626 = vmatmul.mubr.f32.gmra.mrb[24].mxu1 %v2930_v8  ;;  %2139 = vmatpush1.bf16.msra.mxu0 %v2138_v61  ;;  %v1177_v61 = vld [vmem:[#allocation7 + $0x170] sm:$0xff] }
  0xdf   : > { %631 = vmatprep.mubr.f32.mxu1 %v2933_v10  ;;  %2095 = vmatpush1.bf16.msra.mxu1 %v2094_v12  ;;  %v1165_v12 = vld [vmem:[#allocation7 + $0x110] sm:$0xff] }
  0xe0   : > { %2097 = vmatprep.subr.bf16.mxu1 %v2096_v16  ;;  %v2106_v16 = vpack.c.bf16 %v465_v2, %v461_v0  ;;  %v2142_v18 = vpack.c.bf16 %v1165_v12, %v1163_v7  ;;  %2141 = vmatprep.subr.bf16.mxu0 %v2140_v6  ;;  %v2981_v2 = vld [vmem:[%s2819_s14 + $0x138] sm:$0xff]  ;;  %v2156_v6 = vpack.c.bf16 %v1182_v5, %v1180_v4  ;;  %v1179_v7 = vld [vmem:[#allocation7 + $0x180] sm:$0xff]  ;;  %v1181_v12 = vld [vmem:[#allocation7 + $0x190] sm:$0xff] }
  0xe1   : > { %v1189_v50 = vld [vmem:[#allocation7 + $0x1d0] sm:$0xff]  ;;  %v1194_v4 = vld [vmem:[#allocation7 + $0x1f8] sm:$0xff] }
  0xe2   : > { %632 = vmatmul.mubr.f32.gmra.mrb[26].mxu1 %v2938_v30  ;;  %2143 = vmatpush1.bf16.msra.mxu0 %v2142_v18  ;;  %v2158_v18 = vpack.c.bf16 %v1181_v12, %v1179_v7  ;;  %v1193_v7 = vld [vmem:[#allocation7 + $0x1f0] sm:$0xff]  ;;  %v3010_v12 = vld [vmem:[%s2819_s14 + $0x160] sm:$0xff] }
  0xe3   : > { %637 = vmatprep.mubr.f32.mxu1 %v2941_v33  ;;  %2099 = vmatpush1.bf16.msra.mxu1 %v2098_v34  ;;  %v2965_v34 = vld [vmem:[%s2819_s14 + $0x118] sm:$0xff] }
  0xe4   : > { %2101 = vmatprep.subr.bf16.mxu1 %v2100_v36  ;;  %2145 = vmatprep.subr.bf16.mxu0 %v2144_v23  ;;  %v1174_v36 = vld [vmem:[#allocation7 + $0x158] sm:$0xff] }
  0xe5   : > { %v2148_v37 = vpack.c.bf16 %v1174_v36, %v1172_v35  ;;  %v1186_v23 = vld [vmem:[#allocation7 + $0x1b8] sm:$0xff]  ;;  %v2994_v35 = vld [vmem:[%s2819_s14 + $0x140] sm:$0xff] }
  0xe6   : > { %638 = vmatmul.mubr.f32.gmra.mrb[28].mxu1 %v2946_v55  ;;  %2147 = vmatpush1.bf16.msra.mxu0 %v2146_v29  ;;  %v2160_v24 = vpack.c.bf16 %v1186_v23, %v1184_v22  ;;  %v1185_v29 = vld [vmem:[#allocation7 + $0x1b0] sm:$0xff]  ;;  %v3013_v22 = vld [vmem:[%s2819_s14 + $0x178] sm:$0xff] }
  0xe7   : > { %643 = vmatprep.mubr.f32.mxu1 %v2949_v62  ;;  %2103 = vmatpush1.bf16.msra.mxu1 %v2102_v56  ;;  %v1175_v56 = vld [vmem:[#allocation7 + $0x160] sm:$0xff]  ;;  %v2162_v36 = vpack.c.bf16 %v1185_v29, %v1183_v27  ;;  %v3018_v23 = vld [vmem:[%s2819_s14 + $0x170] sm:$0xff]  ;;  %v1196_v27 = vld [vmem:[#allocation7 + $0x208] sm:$0xff] }
  0xe8   : > { %2105 = vmatprep.subr.bf16.mxu1 %v2104_v63  ;;  %2149 = vmatprep.subr.bf16.mxu0 %v2148_v37  ;;  %v2978_v63 = vld [vmem:[%s2819_s14 + $0x120] sm:$0xff]  ;;  %v2154_v0 = vpack.c.bf16 %v1177_v61, %v1175_v56  ;;  %v2997_v37 = vld [vmem:[%s2819_s14 + $0x158] sm:$0xff]  ;;  %v2166_v56 = vpack.c.bf16 %v1189_v50, %v1187_v48  ;;  %v3005_v61 = vld [vmem:[%s2819_s14 + $0x168] sm:$0xff] }
  0xe9   : > { %v1198_v29 = vld [vmem:[#allocation7 + $0x218] sm:$0xff]  ;;  %v3037_v48 = vld [vmem:[%s2819_s14 + $0x1a8] sm:$0xff]  ;;  %v3042_v50 = vld [vmem:[%s2819_s14 + $0x1a0] sm:$0xff] }
  0xea   : > { %644 = vmatmul.mubr.f32.gmra.mrb[30].mxu1 %v2954_v15  ;;  %2151 = vmatpush1.bf16.msra.mxu0 %v2150_v46  ;;  %v2164_v46 = vpack.c.bf16 %v1190_v44, %v1188_v42  ;;  %v3026_v42 = vld [vmem:[%s2819_s14 + $0x180] sm:$0xff]  ;;  %v3029_v44 = vld [vmem:[%s2819_s14 + $0x198] sm:$0xff] }
  0xeb   : > { %649 = vmatprep.mubr.f32.mxu1 %v2957_v20  ;;  %2107 = vmatpush1.bf16.msra.mxu1 %v2106_v16  ;;  %v2986_v16 = vld [vmem:[%s2819_s14 + $0x130] sm:$0xff] }
  0xec   : > { %2153 = vmatprep.subr.bf16.mxu0 %v2152_v54  ;;  %v3002_v54 = vld [vmem:[%s2819_s14 + $0x150] sm:$0xff] }
  0xee   : > { %650 = vmatmul.mubr.f32.gmra.mrb[32].mxu1 %v2962_v28  ;;  %2155 = vmatpush1.bf16.msra.mxu0 %v2154_v0  ;;  %v1192_v0 = vld [vmem:[#allocation7 + $0x1e8] sm:$0xff] }
  0xef   : > { %655 = vmatprep.mubr.f32.mxu1 %v2965_v34  ;;  %2157 = vmatprep.subr.bf16.mxu0 %v2156_v6  ;;  %v2168_v5 = vpack.c.bf16 %v1194_v4, %v1192_v0  ;;  %v1191_v6 = vld [vmem:[#allocation7 + $0x1e0] sm:$0xff]  ;;  %v3050_v0 = vld [vmem:[%s2819_s14 + $0x1b0] sm:$0xff]  ;;  %v3053_v4 = vld [vmem:[%s2819_s14 + $0x1c8] sm:$0xff] }
  0xf2   : > { %656 = vmatmul.mubr.f32.gmra.mrb[34].mxu1 %v2970_v45  ;;  %2159 = vmatpush1.bf16.msra.mxu0 %v2158_v18  ;;  %v2170_v18 = vpack.c.bf16 %v1193_v7, %v1191_v6  ;;  %v3061_v6 = vld [vmem:[%s2819_s14 + $0x1d8] sm:$0xff]  ;;  %v3066_v7 = vld [vmem:[%s2819_s14 + $0x1d0] sm:$0xff] }
  0xf3   : > { %661 = vmatprep.mubr.f32.mxu1 %v2973_v47  ;;  %2161 = vmatprep.subr.bf16.mxu0 %v2160_v24  ;;  %v3021_v24 = vld [vmem:[%s2819_s14 + $0x188] sm:$0xff] }
  0xf6   : > { %662 = vmatmul.mubr.f32.gmra.mrb[36].mxu1 %v2978_v63  ;;  %2163 = vmatpush1.bf16.msra.mxu0 %v2162_v36  ;;  %v2172_v36 = vpack.c.bf16 %v1198_v29, %v1196_v27  ;;  %v3074_v27 = vld [vmem:[%s2819_s14 + $0x1e0] sm:$0xff]  ;;  %v3077_v29 = vld [vmem:[%s2819_s14 + $0x1f8] sm:$0xff] }
  0xf7   : > { %667 = vmatprep.mubr.f32.mxu1 %v2981_v2  ;;  %2165 = vmatprep.subr.bf16.mxu0 %v2164_v46  ;;  %v3034_v46 = vld [vmem:[%s2819_s14 + $0x190] sm:$0xff] }
  0xfa   : > { %668 = vmatmul.mubr.f32.gmra.mrb[38].mxu1 %v2986_v16  ;;  %2167 = vmatpush1.bf16.msra.mxu0 %v2166_v56  ;;  %v3045_v56 = vld [vmem:[%s2819_s14 + $0x1b8] sm:$0xff] }
  0xfb   : > { %673 = vmatprep.mubr.f32.mxu1 %v2989_v21  ;;  %2169 = vmatprep.subr.bf16.mxu0 %v2168_v5  ;;  %v3058_v5 = vld [vmem:[%s2819_s14 + $0x1c0] sm:$0xff] }
  0xfe   : > { %674 = vmatmul.mubr.f32.gmra.mrb[40].mxu1 %v2994_v35  ;;  %2171 = vmatpush1.bf16.msra.mxu0 %v2170_v18  ;;  %v3069_v18 = vld [vmem:[%s2819_s14 + $0x1e8] sm:$0xff] }
  0xff   : > { %679 = vmatprep.mubr.f32.mxu1 %v2997_v37  ;;  %2173 = vmatprep.subr.bf16.mxu0 %v2172_v36  ;;  %v3082_v36 = vld [vmem:[%s2819_s14 + $0x1f0] sm:$0xff] }
 0x102   : > { %680 = vmatmul.mubr.f32.gmra.mrb[42].mxu1 %v3002_v54 }
 0x103   : > { %685 = vmatprep.mubr.f32.mxu1 %v3005_v61 }
 0x106   : > { %686 = vmatmul.mubr.f32.gmra.mrb[44].mxu1 %v3010_v12 }
 0x107   : > { %691 = vmatprep.mubr.f32.mxu1 %v3013_v22 }
 0x10a   : > { %692 = vmatmul.mubr.f32.gmra.mrb[46].mxu1 %v3018_v23 }
 0x10b   : > { %697 = vmatprep.mubr.f32.mxu1 %v3021_v24 }
 0x10e   : > { %698 = vmatmul.mubr.f32.gmra.mrb[48].mxu1 %v3026_v42 }
 0x10f   : > { %703 = vmatprep.mubr.f32.mxu1 %v3029_v44 }
 0x112   : > { %704 = vmatmul.mubr.f32.gmra.mrb[50].mxu1 %v3034_v46 }
 0x113   : > { %709 = vmatprep.mubr.f32.mxu1 %v3037_v48 }
 0x116   : > { %710 = vmatmul.mubr.f32.gmra.mrb[52].mxu1 %v3042_v50 }
 0x117   : > { %715 = vmatprep.mubr.f32.mxu1 %v3045_v56 }
 0x11a   : > { %716 = vmatmul.mubr.f32.gmra.mrb[54].mxu1 %v3050_v0 }
 0x11b   : > { %721 = vmatprep.mubr.f32.mxu1 %v3053_v4 }
 0x11e   : > { %722 = vmatmul.mubr.f32.gmra.mrb[56].mxu1 %v3058_v5 }
 0x11f   : > { %727 = vmatprep.mubr.f32.mxu1 %v3061_v6 }
 0x122   : > { %728 = vmatmul.mubr.f32.gmra.mrb[58].mxu1 %v3066_v7 }
 0x123   : > { %733 = vmatprep.mubr.f32.mxu1 %v3069_v18 }
 0x126   : > { %734 = vmatmul.mubr.f32.gmra.mrb[60].mxu1 %v3074_v27 }
 0x127   : > { %739 = vmatprep.mubr.f32.mxu1 %v3077_v29 }
 0x12a   : > { %740 = vmatmul.mubr.f32.gmra.mrb[62].mxu1 %v3082_v36 }
 0x12b   : > { %810 = vmatprep.mubr.f32.mxu1 %v2830_v41  ;;  %v469_v41 = vlaneseq }
 0x12e   : > { %811 = vmatmul.mubr.f32.vlgmr.msra.gmra.mrb[64].mxu1 %v2834_v40  ;;  %v3123_v40 = vshrl.u32 %v469_v41, 7 }
 0x12f   : > { %816 = vmatprep.mubr.f32.mxu1 %v2837_v43 }
 0x130   : > { %v471_v43 = vsub.s32 0, %v3123_v40 }
 0x132   : > { %817 = vmatmul.mubr.f32.gmra.mrb[66].mxu1 %v2842_v49  ;;  %v3132_v49 = vld [vmem:[%s3500_s2] sm:$0xf] }
 0x133   : > { %822 = vmatprep.mubr.f32.mxu1 %v2845_v51  ;;  %v475_v51 = vsub.s32 1, %v3123_v40 }
 0x136   : > { %823 = vmatmul.mubr.f32.gmra.mrb[68].mxu1 %v2850_v57  ;;  %v3139_v57 = vrot.slane %v3132_v49, %v471_v43 }
 0x137   : > { %828 = vmatprep.mubr.f32.mxu1 %v2853_v59  ;;  %v3145_v59 = vrot.slane %v3132_v49, %v475_v51 }
 0x13a   : > { %829 = vmatmul.mubr.f32.gmra.mrb[70].mxu1 %v2858_v1 }
 0x13b   : > { %834 = vmatprep.mubr.f32.mxu1 %v2861_v3 }
 0x13e   : > { %835 = vmatmul.mubr.f32.gmra.mrb[72].mxu1 %v2866_v9 }
 0x13f   : > { %840 = vmatprep.mubr.f32.mxu1 %v2869_v11  ;;  %v1195_v11 = vld [vmem:[#allocation7 + $0x200] sm:$0xff] }
 0x142   : > { %841 = vmatmul.mubr.f32.gmra.mrb[74].mxu1 %v2874_v17  ;;  %v1197_v17 = vld [vmem:[#allocation7 + $0x210] sm:$0xff] }
 0x143   : > { %846 = vmatprep.mubr.f32.mxu1 %v2877_v19 }
 0x146   : > { %847 = vmatmul.mubr.f32.gmra.mrb[76].mxu1 %v2882_v25  ;;  %v1200_v25 = vld [vmem:[#allocation7 + $0x228] sm:$0xff] }
 0x147   : > { %852 = vmatprep.mubr.f32.mxu1 %v2885_v26  ;;  %v1202_v26 = vld [vmem:[#allocation7 + $0x238] sm:$0xff] }
 0x14a   : > { %853 = vmatmul.mubr.f32.gmra.mrb[78].mxu1 %v2890_v38 }
 0x14b   : > { %858 = vmatprep.mubr.f32.mxu1 %v2893_v39 }
 0x14e   : > { %859 = vmatmul.mubr.f32.gmra.mrb[80].mxu1 %v2898_v58  ;;  %v2174_v58 = vpack.c.bf16 %v1197_v17, %v1195_v11 }
 0x14f   : > { %864 = vmatprep.mubr.f32.mxu1 %v2901_v60 }
 0x152   : > { %865 = vmatmul.mubr.f32.gmra.mrb[82].mxu1 %v2906_v13 }
 0x153   : > { %870 = vmatprep.mubr.f32.mxu1 %v2909_v14 }
 0x156   : > { %871 = vmatmul.mubr.f32.gmra.mrb[84].mxu1 %v2914_v31  ;;  %v2176_v31 = vpack.c.bf16 %v1202_v26, %v1200_v25  ;;  %v1211_v26 = vld [vmem:[#allocation7 + $0x280] sm:$0xff] }
 0x157   : > { %876 = vmatprep.mubr.f32.mxu1 %v2917_v32  ;;  %v1199_v32 = vld [vmem:[#allocation7 + $0x220] sm:$0xff] }
 0x15a   : > { %877 = vmatmul.mubr.f32.gmra.mrb[86].mxu1 %v2922_v52  ;;  %v1201_v52 = vld [vmem:[#allocation7 + $0x230] sm:$0xff] }
 0x15b   : > { %882 = vmatprep.mubr.f32.mxu1 %v2925_v53 }
 0x15e   : > { %883 = vmatmul.mubr.f32.gmra.mrb[88].mxu1 %v2930_v8  ;;  %v1204_v8 = vld [vmem:[#allocation7 + $0x248] sm:$0xff] }
 0x15f   : > { %888 = vmatprep.mubr.f32.mxu1 %v2933_v10  ;;  %v1206_v10 = vld [vmem:[#allocation7 + $0x258] sm:$0xff] }
 0x162   : > { %889 = vmatmul.mubr.f32.gmra.mrb[90].mxu1 %v2938_v30 }
 0x163   : > { %894 = vmatprep.mubr.f32.mxu1 %v2941_v33 }
 0x166   : > { %895 = vmatmul.mubr.f32.gmra.mrb[92].mxu1 %v2946_v55  ;;  %v2178_v55 = vpack.c.bf16 %v1201_v52, %v1199_v32 }
 0x167   : > { %900 = vmatprep.mubr.f32.mxu1 %v2949_v62 }
 0x16a   : > { %901 = vmatmul.mubr.f32.gmra.mrb[94].mxu1 %v2954_v15 }
 0x16b   : > { %906 = vmatprep.mubr.f32.mxu1 %v2957_v20 }
 0x16e   : > { %907 = vmatmul.mubr.f32.gmra.mrb[96].mxu1 %v2962_v28  ;;  %v2180_v28 = vpack.c.bf16 %v1206_v10, %v1204_v8  ;;  %v1217_v8 = vld [vmem:[#allocation7 + $0x2b0] sm:$0xff] }
 0x16f   : > { %912 = vmatprep.mubr.f32.mxu1 %v2965_v34  ;;  %v1203_v34 = vld [vmem:[#allocation7 + $0x240] sm:$0xff] }
 0x172   : > { %913 = vmatmul.mubr.f32.gmra.mrb[98].mxu1 %v2970_v45  ;;  %v1205_v45 = vld [vmem:[#allocation7 + $0x250] sm:$0xff] }
 0x173   : > { %918 = vmatprep.mubr.f32.mxu1 %v2973_v47 }
 0x176   : > { %919 = vmatmul.mubr.f32.gmra.mrb[100].mxu1 %v2978_v63  ;;  %v1208_v63 = vld [vmem:[#allocation7 + $0x268] sm:$0xff] }
 0x177   : > { %924 = vmatprep.mubr.f32.mxu1 %v2981_v2  ;;  %v1210_v2 = vld [vmem:[#allocation7 + $0x278] sm:$0xff] }
 0x17a   : > { %925 = vmatmul.mubr.f32.gmra.mrb[102].mxu1 %v2986_v16 }
 0x17b   : > { %930 = vmatprep.mubr.f32.mxu1 %v2989_v21 }
 0x17e   : > { %931 = vmatmul.mubr.f32.gmra.mrb[104].mxu1 %v2994_v35  ;;  %v2182_v35 = vpack.c.bf16 %v1205_v45, %v1203_v34  ;;  %v1219_v34 = vld [vmem:[#allocation7 + $0x2c0] sm:$0xff]  ;;  %v1221_v45 = vld [vmem:[#allocation7 + $0x2d0] sm:$0xff] }
 0x17f   : > { %936 = vmatprep.mubr.f32.mxu1 %v2997_v37 }
 0x181   : > { %v555_v1 = vpop.f32.mrb[0].mxu1 }
 0x182   : > { %v556_v3 = vadd.f32 %v555_v1, %v3139_v57  ;;  %v557_v9 = vpop.f32.mrb[1].mxu1  ;;  %937 = vmatmul.mubr.f32.gmra.mrb[106].mxu1 %v3002_v54  ;;  %v1214_v1 = vld [vmem:[#allocation7 + $0x298] sm:$0xff] }
 0x183   : > { %942 = vmatprep.mubr.f32.mxu1 %v3005_v61  ;;  %v558_v19 = vadd.f32 %v557_v9, %v3145_v59 }
 0x184   : > { %v1003_v60 = vmax.f32 %v556_v3, 0.0 }
 0x185   : > { %v561_v38 = vpop.f32.mrb[2].mxu1  ;;  %v1004_v39 = vmax.f32 %v558_v19, 0.0 }
 0x186   : > { %v562_v13 = vadd.f32 %v561_v38, %v3139_v57  ;;  %v563_v14 = vpop.f32.mrb[3].mxu1  ;;  %943 = vmatmul.mubr.f32.gmra.mrb[108].mxu1 %v3010_v12  ;;  %v2184_v12 = vpack.c.bf16 %v1210_v2, %v1208_v63  ;;  %v1213_v38 = vld [vmem:[#allocation7 + $0x290] sm:$0xff]  ;;  %v1226_v63 = vld [vmem:[#allocation7 + $0x2f8] sm:$0xff] }
 0x187   : > { %v564_v53 = vadd.f32 %v563_v14, %v3145_v59  ;;  %1335 = vmatprep.mubr.f32.mxu0 %v1004_v39  ;;  %948 = vmatprep.mubr.f32.mxu1 %v3013_v22  ;;  %v1207_v22 = vld [vmem:[#allocation7 + $0x260] sm:$0xff]  ;;  %v2190_v14 = vpack.c.bf16 %v1213_v38, %v1211_v26 }
 0x188   : > { %1336 = vmatmul.mubr.f32.vlgmr.msra.gmra.mrb[0].mxu0 %v1003_v60  ;;  %v1007_v62 = vmax.f32 %v562_v13, 0.0 }
 0x189   : > { %v1008_v30 = vmax.f32 %v564_v53, 0.0  ;;  %v567_v33 = vpop.f32.mrb[4].mxu1  ;;  %2175 = vmatpush1.bf16.msra.mxu0 %v2174_v58  ;;  %v1218_v58 = vld [vmem:[#allocation7 + $0x2b8] sm:$0xff]  ;;  %v1215_v53 = vld [vmem:[#allocation7 + $0x2a0] sm:$0xff] }
 0x18a   : > { %v568_v15 = vadd.f32 %v567_v33, %v3139_v57  ;;  %v569_v20 = vpop.f32.mrb[5].mxu1  ;;  %949 = vmatmul.mubr.f32.gmra.mrb[110].mxu1 %v3018_v23  ;;  %2177 = vmatprep.subr.bf16.mxu0 %v2176_v31  ;;  %v1209_v23 = vld [vmem:[#allocation7 + $0x270] sm:$0xff] }
 0x18b   : > { %v570_v47 = vadd.f32 %v569_v20, %v3145_v59  ;;  %1341 = vmatprep.mubr.f32.mxu0 %v1008_v30  ;;  %954 = vmatprep.mubr.f32.mxu1 %v3021_v24  ;;  %v1212_v24 = vld [vmem:[#allocation7 + $0x288] sm:$0xff]  ;;  %v2186_v11 = vpack.c.bf16 %v1209_v23, %v1207_v22  ;;  %v1222_v30 = vld [vmem:[#allocation7 + $0x2d8] sm:$0xff] }
 0x18c   : > { %1342 = vmatmul.mubr.f32.gmra.mrb[2].mxu0 %v1007_v62  ;;  %v1011_v37 = vmax.f32 %v568_v15, 0.0  ;;  %v2188_v25 = vpack.c.bf16 %v1214_v1, %v1212_v24  ;;  %v2194_v62 = vpack.c.bf16 %v1217_v8, %v1215_v53  ;;  %v1230_v23 = vld [vmem:[#allocation7 + $0x318] sm:$0xff] }
 0x18d   : > { %v1012_v16 = vmax.f32 %v570_v47, 0.0  ;;  %v573_v21 = vpop.f32.mrb[6].mxu1  ;;  %2179 = vmatpush1.bf16.msra.mxu0 %v2178_v55 }
 0x18e   : > { %v574_v54 = vadd.f32 %v573_v21, %v3139_v57  ;;  %v575_v61 = vpop.f32.mrb[7].mxu1  ;;  %955 = vmatmul.mubr.f32.gmra.mrb[112].mxu1 %v3026_v42  ;;  %2181 = vmatprep.subr.bf16.mxu0 %v2180_v28  ;;  %v2198_v21 = vpack.c.bf16 %v1221_v45, %v1219_v34 }
 0x18f   : > { %v576_v41 = vadd.f32 %v575_v61, %v3145_v59  ;;  %1347 = vmatprep.mubr.f32.mxu0 %v1012_v16  ;;  %960 = vmatprep.mubr.f32.mxu1 %v3029_v44  ;;  %v1216_v44 = vld [vmem:[#allocation7 + $0x2a8] sm:$0xff]  ;;  %v1223_v61 = vld [vmem:[#allocation7 + $0x2e0] sm:$0xff] }
 0x190   : > { %1348 = vmatmul.mubr.f32.gmra.mrb[4].mxu0 %v1011_v37  ;;  %v1015_v17 = vmax.f32 %v574_v54, 0.0  ;;  %v2192_v52 = vpack.c.bf16 %v1218_v58, %v1216_v44 }
 0x191   : > { %v1016_v3 = vmax.f32 %v576_v41, 0.0  ;;  %v579_v9 = vpop.f32.mrb[8].mxu1  ;;  %2183 = vmatpush1.bf16.msra.mxu0 %v2182_v35 }
 0x192   : > { %v580_v19 = vadd.f32 %v579_v9, %v3139_v57  ;;  %v581_v42 = vpop.f32.mrb[9].mxu1  ;;  %961 = vmatmul.mubr.f32.gmra.mrb[114].mxu1 %v3034_v46  ;;  %2185 = vmatprep.subr.bf16.mxu0 %v2184_v12  ;;  %v1225_v12 = vld [vmem:[#allocation7 + $0x2f0] sm:$0xff] }
 0x193   : > { %v582_v39 = vadd.f32 %v581_v42, %v3145_v59  ;;  %1353 = vmatprep.mubr.f32.mxu0 %v1016_v3  ;;  %966 = vmatprep.mubr.f32.mxu1 %v3037_v48  ;;  %v1220_v48 = vld [vmem:[#allocation7 + $0x2c8] sm:$0xff]  ;;  %v2202_v1 = vpack.c.bf16 %v1225_v12, %v1223_v61 }
 0x194   : > { %1354 = vmatmul.mubr.f32.gmra.mrb[6].mxu0 %v1015_v17  ;;  %v1019_v31 = vmax.f32 %v580_v19, 0.0  ;;  %v2196_v28 = vpack.c.bf16 %v1222_v30, %v1220_v48  ;;  %v1227_v17 = vld [vmem:[#allocation7 + $0x300] sm:$0xff]  ;;  %v1229_v19 = vld [vmem:[#allocation7 + $0x310] sm:$0xff] }
 0x195   : > { %v1020_v60 = vmax.f32 %v582_v39, 0.0  ;;  %v585_v13 = vpop.f32.mrb[10].mxu1  ;;  %2187 = vmatpush1.bf16.msra.mxu0 %v2186_v11  ;;  %v2206_v39 = vpack.c.bf16 %v1229_v19, %v1227_v17  ;;  %v1235_v30 = vld [vmem:[#allocation7 + $0x340] sm:$0xff] }
 0x196   : > { %v586_v32 = vadd.f32 %v585_v13, %v3139_v57  ;;  %v587_v46 = vpop.f32.mrb[11].mxu1  ;;  %967 = vmatmul.mubr.f32.gmra.mrb[116].mxu1 %v3042_v50  ;;  %2189 = vmatprep.subr.bf16.mxu0 %v2188_v25  ;;  %v1234_v25 = vld [vmem:[#allocation7 + $0x338] sm:$0xff]  ;;  %v1231_v13 = vld [vmem:[#allocation7 + $0x320] sm:$0xff] }
 0x197   : > { %v588_v10 = vadd.f32 %v587_v46, %v3145_v59  ;;  %1359 = vmatprep.mubr.f32.mxu0 %v1020_v60  ;;  %972 = vmatprep.mubr.f32.mxu1 %v3045_v56  ;;  %v1224_v56 = vld [vmem:[#allocation7 + $0x2e8] sm:$0xff] }
 0x198   : > { %1360 = vmatmul.mubr.f32.gmra.mrb[8].mxu0 %v1019_v31  ;;  %v1023_v15 = vmax.f32 %v586_v32, 0.0  ;;  %v2200_v54 = vpack.c.bf16 %v1226_v63, %v1224_v56  ;;  %v1238_v32 = vld [vmem:[#allocation7 + $0x358] sm:$0xff]  ;;  %v1241_v56 = vld [vmem:[#allocation7 + $0x370] sm:$0xff] }
 0x199   : > { %v1024_v33 = vmax.f32 %v588_v10, 0.0  ;;  %v591_v55 = vpop.f32.mrb[12].mxu1  ;;  %2191 = vmatpush1.bf16.msra.mxu0 %v2190_v14  ;;  %v1233_v14 = vld [vmem:[#allocation7 + $0x330] sm:$0xff] }
 0x19a   : > { %v592_v20 = vadd.f32 %v591_v55, %v3139_v57  ;;  %v593_v50 = vpop.f32.mrb[13].mxu1  ;;  %973 = vmatmul.mubr.f32.gmra.mrb[118].mxu1 %v3050_v0  ;;  %2193 = vmatprep.subr.bf16.mxu0 %v2192_v52  ;;  %v2210_v53 = vpack.c.bf16 %v1233_v14, %v1231_v13 }
 0x19b   : > { %v594_v47 = vadd.f32 %v593_v50, %v3145_v59  ;;  %1365 = vmatprep.mubr.f32.mxu0 %v1024_v33  ;;  %978 = vmatprep.mubr.f32.mxu1 %v3053_v4  ;;  %v1228_v4 = vld [vmem:[#allocation7 + $0x308] sm:$0xff]  ;;  %v1237_v33 = vld [vmem:[#allocation7 + $0x350] sm:$0xff] }
 0x19c   : > { %1366 = vmatmul.mubr.f32.gmra.mrb[10].mxu0 %v1023_v15  ;;  %v1027_v35 = vmax.f32 %v592_v20, 0.0  ;;  %v2204_v11 = vpack.c.bf16 %v1230_v23, %v1228_v4  ;;  %v2214_v50 = vpack.c.bf16 %v1237_v33, %v1235_v30  ;;  %v1245_v4 = vld [vmem:[#allocation7 + $0x390] sm:$0xff] }
 0x19d   : > { %v1028_v2 = vmax.f32 %v594_v47, 0.0  ;;  %v597_v16 = vpop.f32.mrb[14].mxu1  ;;  %2195 = vmatpush1.bf16.msra.mxu0 %v2194_v62  ;;  %v1242_v62 = vld [vmem:[#allocation7 + $0x378] sm:$0xff]  ;;  %v1239_v47 = vld [vmem:[#allocation7 + $0x360] sm:$0xff] }
 0x19e   : > { %v598_v37 = vadd.f32 %v597_v16, %v3139_v57  ;;  %v599_v0 = vpop.f32.mrb[15].mxu1  ;;  %979 = vmatmul.mubr.f32.gmra.mrb[120].mxu1 %v3058_v5  ;;  %2197 = vmatprep.subr.bf16.mxu0 %v2196_v28  ;;  %v1246_v16 = vld [vmem:[#allocation7 + $0x398] sm:$0xff] }
 0x19f   : > { %v600_v22 = vadd.f32 %v599_v0, %v3145_v59  ;;  %1371 = vmatprep.mubr.f32.mxu0 %v1028_v2  ;;  %984 = vmatprep.mubr.f32.mxu1 %v3061_v6  ;;  %v1232_v6 = vld [vmem:[#allocation7 + $0x328] sm:$0xff] }
 0x1a0   : > { %1372 = vmatmul.mubr.f32.gmra.mrb[12].mxu0 %v1027_v35  ;;  %v1031_v3 = vmax.f32 %v598_v37, 0.0  ;;  %v2208_v60 = vpack.c.bf16 %v1234_v25, %v1232_v6  ;;  %v1244_v2 = vld [vmem:[#allocation7 + $0x388] sm:$0xff]  ;;  %v2218_v37 = vpack.c.bf16 %v1241_v56, %v1239_v47  ;;  %v1249_v6 = vld [vmem:[#allocation7 + $0x3b0] sm:$0xff] }
 0x1a1   : > { %v1032_v41 = vmax.f32 %v600_v22, 0.0  ;;  %v603_v24 = vpop.f32.mrb[16].mxu1  ;;  %2199 = vmatpush1.bf16.msra.mxu0 %v2198_v21  ;;  %v2220_v12 = vpack.c.bf16 %v1246_v16, %v1244_v2  ;;  %v1243_v22 = vld [vmem:[#allocation7 + $0x380] sm:$0xff] }
 0x1a2   : > { %v604_v9 = vadd.f32 %v603_v24, %v3139_v57  ;;  %v605_v5 = vpop.f32.mrb[17].mxu1  ;;  %985 = vmatmul.mubr.f32.gmra.mrb[122].mxu1 %v3066_v7  ;;  %2201 = vmatprep.subr.bf16.mxu0 %v2200_v54  ;;  %v1250_v24 = vld [vmem:[#allocation7 + $0x3b8] sm:$0xff] }
 0x1a3   : > { %v606_v42 = vadd.f32 %v605_v5, %v3145_v59  ;;  %1377 = vmatprep.mubr.f32.mxu0 %v1032_v41  ;;  %990 = vmatprep.mubr.f32.mxu1 %v3069_v18  ;;  %v1236_v18 = vld [vmem:[#allocation7 + $0x348] sm:$0xff] }
 0x1a4   : > { %1378 = vmatmul.mubr.f32.gmra.mrb[14].mxu0 %v1031_v3  ;;  %v1035_v44 = vmax.f32 %v604_v9, 0.0  ;;  %v2212_v48 = vpack.c.bf16 %v1238_v32, %v1236_v18  ;;  %v1248_v41 = vld [vmem:[#allocation7 + $0x3a8] sm:$0xff]  ;;  %v2222_v9 = vpack.c.bf16 %v1245_v4, %v1243_v22  ;;  %v1253_v18 = vld [vmem:[#allocation7 + $0x3d0] sm:$0xff] }
 0x1a5   : > { %v1036_v26 = vmax.f32 %v606_v42, 0.0  ;;  %v609_v38 = vpop.f32.mrb[18].mxu1  ;;  %2203 = vmatpush1.bf16.msra.mxu0 %v2202_v1  ;;  %v2224_v19 = vpack.c.bf16 %v1250_v24, %v1248_v41  ;;  %v1247_v42 = vld [vmem:[#allocation7 + $0x3a0] sm:$0xff] }
 0x1a6   : > { %v610_v58 = vadd.f32 %v609_v38, %v3139_v57  ;;  %v611_v7 = vpop.f32.mrb[19].mxu1  ;;  %991 = vmatmul.mubr.f32.gmra.mrb[124].mxu1 %v3074_v27  ;;  %2205 = vmatprep.subr.bf16.mxu0 %v2204_v11  ;;  %v1254_v38 = vld [vmem:[#allocation7 + $0x3d8] sm:$0xff] }
 0x1a7   : > { %v612_v31 = vadd.f32 %v611_v7, %v3145_v59  ;;  %1383 = vmatprep.mubr.f32.mxu0 %v1036_v26  ;;  %996 = vmatprep.mubr.f32.mxu1 %v3077_v29  ;;  %v1240_v29 = vld [vmem:[#allocation7 + $0x368] sm:$0xff] }
 0x1a8   : > { %1384 = vmatmul.mubr.f32.gmra.mrb[16].mxu0 %v1035_v44  ;;  %v1039_v8 = vmax.f32 %v610_v58, 0.0  ;;  %v1252_v26 = vld [vmem:[#allocation7 + $0x3c8] sm:$0xff]  ;;  %v2226_v58 = vpack.c.bf16 %v1249_v6, %v1247_v42 }
 0x1a9   : > { %v1040_v46 = vmax.f32 %v612_v31, 0.0  ;;  %v615_v52 = vpop.f32.mrb[20].mxu1  ;;  %2207 = vmatpush1.bf16.msra.mxu0 %v2206_v39  ;;  %v2228_v14 = vpack.c.bf16 %v1254_v38, %v1252_v26  ;;  %v1251_v31 = vld [vmem:[#allocation7 + $0x3c0] sm:$0xff] }
 0x1aa   : > { %v616_v10 = vadd.f32 %v615_v52, %v3139_v57  ;;  %v617_v27 = vpop.f32.mrb[21].mxu1  ;;  %997 = vmatmul.mubr.f32.gmra.mrb[126].mxu1 %v3082_v36  ;;  %2209 = vmatprep.subr.bf16.mxu0 %v2208_v60  ;;  %v2216_v36 = vpack.c.bf16 %v1242_v62, %v1240_v29  ;;  %v1258_v52 = vld [vmem:[#allocation7 + $0x3f8] sm:$0xff]  ;;  %v1257_v29 = vld [vmem:[#allocation7 + $0x3f0] sm:$0xff] }
 0x1ab   : > { %v618_v55 = vadd.f32 %v617_v27, %v3145_v59  ;;  %1389 = vmatprep.mubr.f32.mxu0 %v1040_v46  ;;  %v1256_v46 = vld [vmem:[#allocation7 + $0x3e8] sm:$0xff] }
 0x1ac   : > { %1390 = vmatmul.mubr.f32.gmra.mrb[18].mxu0 %v1039_v8  ;;  %v1043_v28 = vmax.f32 %v616_v10, 0.0  ;;  %v2230_v10 = vpack.c.bf16 %v1253_v18, %v1251_v31  ;;  %v2232_v33 = vpack.c.bf16 %v1258_v52, %v1256_v46 }
 0x1ad   : > { %v1044_v15 = vmax.f32 %v618_v55, 0.0  ;;  %v621_v20 = vpop.f32.mrb[22].mxu1  ;;  %2211 = vmatpush1.bf16.msra.mxu0 %v2210_v53  ;;  %v1255_v55 = vld [vmem:[#allocation7 + $0x3e0] sm:$0xff] }
 0x1ae   : > { %v622_v34 = vadd.f32 %v621_v20, %v3139_v57  ;;  %v623_v45 = vpop.f32.mrb[23].mxu1  ;;  %2213 = vmatprep.subr.bf16.mxu0 %v2212_v48 }
 0x1af   : > { %v624_v63 = vadd.f32 %v623_v45, %v3145_v59  ;;  %1395 = vmatprep.mubr.f32.mxu0 %v1044_v15 }
 0x1b0   : > { %1396 = vmatmul.mubr.f32.gmra.mrb[20].mxu0 %v1043_v28  ;;  %v1047_v0 = vmax.f32 %v622_v34, 0.0 }
 0x1b1   : > { %v1048_v21 = vmax.f32 %v624_v63, 0.0  ;;  %v627_v35 = vpop.f32.mrb[24].mxu1  ;;  %2215 = vmatpush1.bf16.msra.mxu0 %v2214_v50  ;;  %v2234_v50 = vpack.c.bf16 %v1257_v29, %v1255_v55 }
 0x1b2   : > { %v628_v54 = vadd.f32 %v627_v35, %v3139_v57  ;;  %v629_v61 = vpop.f32.mrb[25].mxu1  ;;  %2217 = vmatprep.subr.bf16.mxu0 %v2216_v36 }
 0x1b3   : > { %v630_v23 = vadd.f32 %v629_v61, %v3145_v59  ;;  %1401 = vmatprep.mubr.f32.mxu0 %v1048_v21 }
 0x1b4   : > { %1402 = vmatmul.mubr.f32.gmra.mrb[22].mxu0 %v1047_v0  ;;  %v1051_v5 = vmax.f32 %v628_v54, 0.0 }
 0x1b5   : > { %v1052_v1 = vmax.f32 %v630_v23, 0.0  ;;  %v633_v3 = vpop.f32.mrb[26].mxu1  ;;  %2219 = vmatpush1.bf16.msra.mxu0 %v2218_v37 }
 0x1b6   : > { %v634_v11 = vadd.f32 %v633_v3, %v3139_v57  ;;  %v635_v17 = vpop.f32.mrb[27].mxu1  ;;  %2221 = vmatprep.subr.bf16.mxu0 %v2220_v12 }
 0x1b7   : > { %v636_v25 = vadd.f32 %v635_v17, %v3145_v59  ;;  %1407 = vmatprep.mubr.f32.mxu0 %v1052_v1 }
 0x1b8   : > { %1408 = vmatmul.mubr.f32.gmra.mrb[24].mxu0 %v1051_v5  ;;  %v1055_v7 = vmax.f32 %v634_v11, 0.0 }
 0x1b9   : > { %v1056_v39 = vmax.f32 %v636_v25, 0.0  ;;  %v639_v44 = vpop.f32.mrb[28].mxu1  ;;  %2223 = vmatpush1.bf16.msra.mxu0 %v2222_v9 }
 0x1ba   : > { %v640_v60 = vadd.f32 %v639_v44, %v3139_v57  ;;  %v641_v13 = vpop.f32.mrb[29].mxu1  ;;  %2225 = vmatprep.subr.bf16.mxu0 %v2224_v19 }
 0x1bb   : > { %v642_v32 = vadd.f32 %v641_v13, %v3145_v59  ;;  %1413 = vmatprep.mubr.f32.mxu0 %v1056_v39 }
 0x1bc   : > { %1414 = vmatmul.mubr.f32.gmra.mrb[26].mxu0 %v1055_v7  ;;  %v1059_v27 = vmax.f32 %v640_v60, 0.0 }
 0x1bd   : > { %v1060_v53 = vmax.f32 %v642_v32, 0.0  ;;  %v645_v8 = vpop.f32.mrb[30].mxu1  ;;  %2227 = vmatpush1.bf16.msra.mxu0 %v2226_v58 }
 0x1be   : > { %v646_v48 = vadd.f32 %v645_v8, %v3139_v57  ;;  %v647_v30 = vpop.f32.mrb[31].mxu1  ;;  %2229 = vmatprep.subr.bf16.mxu0 %v2228_v14 }
 0x1bf   : > { %v648_v62 = vadd.f32 %v647_v30, %v3145_v59  ;;  %1419 = vmatprep.mubr.f32.mxu0 %v1060_v53 }
 0x1c0   : > { %1420 = vmatmul.mubr.f32.gmra.mrb[28].mxu0 %v1059_v27  ;;  %v1063_v28 = vmax.f32 %v646_v48, 0.0 }
 0x1c1   : > { %v1064_v15 = vmax.f32 %v648_v62, 0.0  ;;  %v651_v20 = vpop.f32.mrb[32].mxu1  ;;  %2231 = vmatpush1.bf16.msra.mxu0 %v2230_v10 }
 0x1c2   : > { %v652_v34 = vadd.f32 %v651_v20, %v3139_v57  ;;  %v653_v45 = vpop.f32.mrb[33].mxu1  ;;  %2233 = vmatprep.subr.bf16.mxu0 %v2232_v33 }
 0x1c3   : > { %v654_v36 = vadd.f32 %v653_v45, %v3145_v59  ;;  %1425 = vmatprep.mubr.f32.mxu0 %v1064_v15 }
 0x1c4   : > { %1426 = vmatmul.mubr.f32.gmra.mrb[30].mxu0 %v1063_v28  ;;  %v1067_v63 = vmax.f32 %v652_v34, 0.0 }
 0x1c5   : > { %v1068_v47 = vmax.f32 %v654_v36, 0.0  ;;  %v657_v56 = vpop.f32.mrb[34].mxu1  ;;  %2235 = vmatpush1.bf16.msra.mxu0 %v2234_v50 }
 0x1c6   : > { %v658_v2 = vadd.f32 %v657_v56, %v3139_v57  ;;  %v659_v16 = vpop.f32.mrb[35].mxu1 }
 0x1c7   : > { %v660_v21 = vadd.f32 %v659_v16, %v3145_v59  ;;  %1431 = vmatprep.mubr.f32.mxu0 %v1068_v47 }
 0x1c8   : > { %1432 = vmatmul.mubr.f32.gmra.mrb[32].mxu0 %v1067_v63  ;;  %v1071_v0 = vmax.f32 %v658_v2, 0.0 }
 0x1c9   : > { %v1072_v35 = vmax.f32 %v660_v21, 0.0  ;;  %v663_v37 = vpop.f32.mrb[36].mxu1 }
 0x1ca   : > { %v664_v54 = vadd.f32 %v663_v37, %v3139_v57  ;;  %v665_v61 = vpop.f32.mrb[37].mxu1 }
 0x1cb   : > { %v666_v12 = vadd.f32 %v665_v61, %v3145_v59  ;;  %1437 = vmatprep.mubr.f32.mxu0 %v1072_v35 }
 0x1cc   : > { %1438 = vmatmul.mubr.f32.gmra.mrb[34].mxu0 %v1071_v0  ;;  %v1075_v23 = vmax.f32 %v664_v54, 0.0 }
 0x1cd   : > { %v1076_v22 = vmax.f32 %v666_v12, 0.0  ;;  %v669_v4 = vpop.f32.mrb[38].mxu1 }
 0x1ce   : > { %v670_v41 = vadd.f32 %v669_v4, %v3139_v57  ;;  %v671_v24 = vpop.f32.mrb[39].mxu1 }
 0x1cf   : > { %v672_v1 = vadd.f32 %v671_v24, %v3145_v59  ;;  %1443 = vmatprep.mubr.f32.mxu0 %v1076_v22 }
 0x1d0   : > { %1444 = vmatmul.mubr.f32.gmra.mrb[36].mxu0 %v1075_v23  ;;  %v1079_v5 = vmax.f32 %v670_v41, 0.0 }
 0x1d1   : > { %v1080_v3 = vmax.f32 %v672_v1, 0.0  ;;  %v675_v9 = vpop.f32.mrb[40].mxu1 }
 0x1d2   : > { %v676_v11 = vadd.f32 %v675_v9, %v3139_v57  ;;  %v677_v17 = vpop.f32.mrb[41].mxu1 }
 0x1d3   : > { %v678_v19 = vadd.f32 %v677_v17, %v3145_v59  ;;  %1449 = vmatprep.mubr.f32.mxu0 %v1080_v3 }
 0x1d4   : > { %1450 = vmatmul.mubr.f32.gmra.mrb[38].mxu0 %v1079_v5  ;;  %v1083_v25 = vmax.f32 %v676_v11, 0.0 }
 0x1d5   : > { %v1084_v42 = vmax.f32 %v678_v19, 0.0  ;;  %v681_v6 = vpop.f32.mrb[42].mxu1 }
 0x1d6   : > { %v682_v26 = vadd.f32 %v681_v6, %v3139_v57  ;;  %v683_v38 = vpop.f32.mrb[43].mxu1  ;;  %v479_v6 = vsub.s32 2, %v3123_v40 }
 0x1d7   : > { %v684_v39 = vadd.f32 %v683_v38, %v3145_v59  ;;  %1455 = vmatprep.mubr.f32.mxu0 %v1084_v42 }
 0x1d8   : > { %1456 = vmatmul.mubr.f32.gmra.mrb[40].mxu0 %v1083_v25  ;;  %v1087_v7 = vmax.f32 %v682_v26, 0.0  ;;  %v483_v26 = vsub.s32 3, %v3123_v40 }
 0x1d9   : > { %v1088_v44 = vmax.f32 %v684_v39, 0.0  ;;  %v687_v58 = vpop.f32.mrb[44].mxu1 }
 0x1da   : > { %v688_v60 = vadd.f32 %v687_v58, %v3139_v57  ;;  %v689_v13 = vpop.f32.mrb[45].mxu1 }
 0x1db   : > { %v690_v14 = vadd.f32 %v689_v13, %v3145_v59  ;;  %1461 = vmatprep.mubr.f32.mxu0 %v1088_v44 }
 0x1dc   : > { %1462 = vmatmul.mubr.f32.gmra.mrb[42].mxu0 %v1087_v7  ;;  %v1091_v32 = vmax.f32 %v688_v60, 0.0  ;;  %v3234_v60 = vrot.slane %v3132_v49, %v479_v6 }
 0x1dd   : > { %v1092_v31 = vmax.f32 %v690_v14, 0.0  ;;  %v693_v18 = vpop.f32.mrb[46].mxu1  ;;  %v3238_v14 = vrot.slane %v3132_v49, %v483_v26 }
 0x1de   : > { %v694_v46 = vadd.f32 %v693_v18, %v3139_v57  ;;  %v695_v52 = vpop.f32.mrb[47].mxu1 }
 0x1df   : > { %v696_v53 = vadd.f32 %v695_v52, %v3145_v59  ;;  %1467 = vmatprep.mubr.f32.mxu0 %v1092_v31 }
 0x1e0   : > { %1468 = vmatmul.mubr.f32.gmra.mrb[44].mxu0 %v1091_v32  ;;  %v1095_v27 = vmax.f32 %v694_v46, 0.0 }
 0x1e1   : > { %v1096_v8 = vmax.f32 %v696_v53, 0.0  ;;  %v699_v10 = vpop.f32.mrb[48].mxu1 }
 0x1e2   : > { %v700_v48 = vadd.f32 %v699_v10, %v3139_v57  ;;  %v701_v30 = vpop.f32.mrb[49].mxu1 }
 0x1e3   : > { %v702_v33 = vadd.f32 %v701_v30, %v3145_v59  ;;  %1473 = vmatprep.mubr.f32.mxu0 %v1096_v8 }
 0x1e4   : > { %1474 = vmatmul.mubr.f32.gmra.mrb[46].mxu0 %v1095_v27  ;;  %v1099_v62 = vmax.f32 %v700_v48, 0.0 }
 0x1e5   : > { %v1100_v55 = vmax.f32 %v702_v33, 0.0  ;;  %v705_v29 = vpop.f32.mrb[50].mxu1 }
 0x1e6   : > { %v706_v15 = vadd.f32 %v705_v29, %v3139_v57  ;;  %v707_v20 = vpop.f32.mrb[51].mxu1 }
 0x1e7   : > { %v708_v50 = vadd.f32 %v707_v20, %v3145_v59  ;;  %1479 = vmatprep.mubr.f32.mxu0 %v1100_v55 }
 0x1e8   : > { %1480 = vmatmul.mubr.f32.gmra.mrb[48].mxu0 %v1099_v62  ;;  %v1103_v45 = vmax.f32 %v706_v15, 0.0 }
 0x1e9   : > { %v1104_v28 = vmax.f32 %v708_v50, 0.0  ;;  %v711_v34 = vpop.f32.mrb[52].mxu1 }
 0x1ea   : > { %v712_v36 = vadd.f32 %v711_v34, %v3139_v57  ;;  %v713_v47 = vpop.f32.mrb[53].mxu1 }
 0x1eb   : > { %v714_v56 = vadd.f32 %v713_v47, %v3145_v59  ;;  %1485 = vmatprep.mubr.f32.mxu0 %v1104_v28 }
 0x1ec   : > { %1486 = vmatmul.mubr.f32.gmra.mrb[50].mxu0 %v1103_v45  ;;  %v1107_v16 = vmax.f32 %v712_v36, 0.0 }
 0x1ed   : > { %v1108_v63 = vmax.f32 %v714_v56, 0.0  ;;  %v717_v2 = vpop.f32.mrb[54].mxu1 }
 0x1ee   : > { %v718_v21 = vadd.f32 %v717_v2, %v3139_v57  ;;  %v719_v35 = vpop.f32.mrb[55].mxu1 }
 0x1ef   : > { %v720_v37 = vadd.f32 %v719_v35, %v3145_v59  ;;  %1491 = vmatprep.mubr.f32.mxu0 %v1108_v63 }
 0x1f0   : > { %1492 = vmatmul.mubr.f32.gmra.mrb[52].mxu0 %v1107_v16  ;;  %v1111_v61 = vmax.f32 %v718_v21, 0.0 }
 0x1f1   : > { %v1112_v0 = vmax.f32 %v720_v37, 0.0  ;;  %v723_v54 = vpop.f32.mrb[56].mxu1 }
 0x1f2   : > { %v724_v12 = vadd.f32 %v723_v54, %v3139_v57  ;;  %v725_v22 = vpop.f32.mrb[57].mxu1 }
 0x1f3   : > { %v726_v4 = vadd.f32 %v725_v22, %v3145_v59  ;;  %1497 = vmatprep.mubr.f32.mxu0 %v1112_v0 }
 0x1f4   : > { %1498 = vmatmul.mubr.f32.gmra.mrb[54].mxu0 %v1111_v61  ;;  %v1115_v24 = vmax.f32 %v724_v12, 0.0 }
 0x1f5   : > { %v1116_v23 = vmax.f32 %v726_v4, 0.0  ;;  %v729_v41 = vpop.f32.mrb[58].mxu1 }
 0x1f6   : > { %v730_v1 = vadd.f32 %v729_v41, %v3139_v57  ;;  %v731_v3 = vpop.f32.mrb[59].mxu1 }
 0x1f7   : > { %v732_v9 = vadd.f32 %v731_v3, %v3145_v59  ;;  %1503 = vmatprep.mubr.f32.mxu0 %v1116_v23 }
 0x1f8   : > { %1504 = vmatmul.mubr.f32.gmra.mrb[56].mxu0 %v1115_v24  ;;  %v1119_v17 = vmax.f32 %v730_v1, 0.0 }
 0x1f9   : > { %v1120_v5 = vmax.f32 %v732_v9, 0.0  ;;  %v735_v11 = vpop.f32.mrb[60].mxu1 }
 0x1fa   : > { %v736_v19 = vadd.f32 %v735_v11, %v3139_v57  ;;  %v737_v42 = vpop.f32.mrb[61].mxu1 }
 0x1fb   : > { %v738_v25 = vadd.f32 %v737_v42, %v3145_v59  ;;  %1509 = vmatprep.mubr.f32.mxu0 %v1120_v5 }
 0x1fc   : > { %1510 = vmatmul.mubr.f32.gmra.mrb[58].mxu0 %v1119_v17  ;;  %v1123_v44 = vmax.f32 %v736_v19, 0.0 }
 0x1fd   : > { %v1124_v38 = vmax.f32 %v738_v25, 0.0  ;;  %v741_v39 = vpop.f32.mrb[62].mxu1 }
 0x1fe   : > { %v742_v58 = vadd.f32 %v741_v39, %v3139_v57  ;;  %v743_v7 = vpop.f32.mrb[63].mxu1 }
 0x1ff   : > { %v744_v13 = vadd.f32 %v743_v7, %v3145_v59  ;;  %1515 = vmatprep.mubr.f32.mxu0 %v1124_v38 }
 0x200   : > { %1516 = vmatmul.mubr.f32.gmra.mrb[60].mxu0 %v1123_v44  ;;  %v1127_v32 = vmax.f32 %v742_v58, 0.0 }
 0x201   : > { %v1128_v31 = vmax.f32 %v744_v13, 0.0  ;;  %v812_v18 = vpop.f32.mrb[64].mxu1 }
 0x202   : > { %v813_v46 = vadd.f32 %v812_v18, %v3234_v60  ;;  %v814_v52 = vpop.f32.mrb[65].mxu1 }
 0x203   : > { %v815_v53 = vadd.f32 %v814_v52, %v3238_v14  ;;  %1521 = vmatprep.mubr.f32.mxu0 %v1128_v31 }
 0x204   : > { %1522 = vmatmul.mubr.f32.gmra.mrb[62].mxu0 %v1127_v32  ;;  %v1005_v10 = vmax.f32 %v813_v46, 0.0 }
 0x205   : > { %v1006_v57 = vmax.f32 %v815_v53, 0.0  ;;  %v818_v8 = vpop.f32.mrb[66].mxu1 }
 0x206   : > { %v819_v59 = vadd.f32 %v818_v8, %v3234_v60  ;;  %v820_v27 = vpop.f32.mrb[67].mxu1 }
 0x207   : > { %v821_v49 = vadd.f32 %v820_v27, %v3238_v14  ;;  %1592 = vmatprep.mubr.f32.mxu0 %v1006_v57 }
 0x208   : > { %1593 = vmatmul.mubr.f32.vlgmr.msra.gmra.mrb[0].mxu0 %v1005_v10  ;;  %v1009_v33 = vmax.f32 %v819_v59, 0.0 }
 0x209   : > { %v1010_v48 = vmax.f32 %v821_v49, 0.0  ;;  %v824_v30 = vpop.f32.mrb[68].mxu1 }
 0x20a   : > { %v825_v55 = vadd.f32 %v824_v30, %v3234_v60  ;;  %v826_v29 = vpop.f32.mrb[69].mxu1 }
 0x20b   : > { %v827_v62 = vadd.f32 %v826_v29, %v3238_v14  ;;  %1598 = vmatprep.mubr.f32.mxu0 %v1010_v48 }
 0x20c   : > { %1599 = vmatmul.mubr.f32.gmra.mrb[2].mxu0 %v1009_v33  ;;  %v1013_v50 = vmax.f32 %v825_v55, 0.0 }
 0x20d   : > { %v1014_v15 = vmax.f32 %v827_v62, 0.0  ;;  %v830_v20 = vpop.f32.mrb[70].mxu1 }
 0x20e   : > { %v831_v28 = vadd.f32 %v830_v20, %v3234_v60  ;;  %v832_v34 = vpop.f32.mrb[71].mxu1 }
 0x20f   : > { %v833_v45 = vadd.f32 %v832_v34, %v3238_v14  ;;  %1604 = vmatprep.mubr.f32.mxu0 %v1014_v15 }
 0x210   : > { %1605 = vmatmul.mubr.f32.gmra.mrb[4].mxu0 %v1013_v50  ;;  %v1017_v56 = vmax.f32 %v831_v28, 0.0 }
 0x211   : > { %v1018_v36 = vmax.f32 %v833_v45, 0.0  ;;  %v836_v47 = vpop.f32.mrb[72].mxu1 }
 0x212   : > { %v837_v63 = vadd.f32 %v836_v47, %v3234_v60  ;;  %v838_v2 = vpop.f32.mrb[73].mxu1 }
 0x213   : > { %v839_v16 = vadd.f32 %v838_v2, %v3238_v14  ;;  %1610 = vmatprep.mubr.f32.mxu0 %v1018_v36 }
 0x214   : > { %1611 = vmatmul.mubr.f32.gmra.mrb[6].mxu0 %v1017_v56  ;;  %v1021_v37 = vmax.f32 %v837_v63, 0.0 }
 0x215   : > { %v1022_v21 = vmax.f32 %v839_v16, 0.0  ;;  %v842_v35 = vpop.f32.mrb[74].mxu1 }
 0x216   : > { %v843_v0 = vadd.f32 %v842_v35, %v3234_v60  ;;  %v844_v54 = vpop.f32.mrb[75].mxu1 }
 0x217   : > { %v845_v61 = vadd.f32 %v844_v54, %v3238_v14  ;;  %1616 = vmatprep.mubr.f32.mxu0 %v1022_v21 }
 0x218   : > { %1617 = vmatmul.mubr.f32.gmra.mrb[8].mxu0 %v1021_v37  ;;  %v1025_v4 = vmax.f32 %v843_v0, 0.0 }
 0x219   : > { %v1026_v12 = vmax.f32 %v845_v61, 0.0  ;;  %v848_v22 = vpop.f32.mrb[76].mxu1 }
 0x21a   : > { %v849_v23 = vadd.f32 %v848_v22, %v3234_v60  ;;  %v850_v41 = vpop.f32.mrb[77].mxu1 }
 0x21b   : > { %v851_v24 = vadd.f32 %v850_v41, %v3238_v14  ;;  %1622 = vmatprep.mubr.f32.mxu0 %v1026_v12 }
 0x21c   : > { %1623 = vmatmul.mubr.f32.gmra.mrb[10].mxu0 %v1025_v4  ;;  %v1029_v9 = vmax.f32 %v849_v23, 0.0 }
 0x21d   : > { %v1030_v1 = vmax.f32 %v851_v24, 0.0  ;;  %v854_v3 = vpop.f32.mrb[78].mxu1 }
 0x21e   : > { %v855_v5 = vadd.f32 %v854_v3, %v3234_v60  ;;  %v856_v11 = vpop.f32.mrb[79].mxu1 }
 0x21f   : > { %v857_v17 = vadd.f32 %v856_v11, %v3238_v14  ;;  %1628 = vmatprep.mubr.f32.mxu0 %v1030_v1 }
 0x220   : > { %1629 = vmatmul.mubr.f32.gmra.mrb[12].mxu0 %v1029_v9  ;;  %v1033_v6 = vmax.f32 %v855_v5, 0.0 }
 0x221   : > { %v1034_v19 = vmax.f32 %v857_v17, 0.0  ;;  %v860_v42 = vpop.f32.mrb[80].mxu1 }
 0x222   : > { %v861_v25 = vadd.f32 %v860_v42, %v3234_v60  ;;  %v862_v26 = vpop.f32.mrb[81].mxu1 }
 0x223   : > { %v863_v38 = vadd.f32 %v862_v26, %v3238_v14  ;;  %1634 = vmatprep.mubr.f32.mxu0 %v1034_v19 }
 0x224   : > { %1635 = vmatmul.mubr.f32.gmra.mrb[14].mxu0 %v1033_v6  ;;  %v1037_v58 = vmax.f32 %v861_v25, 0.0 }
 0x225   : > { %v1038_v39 = vmax.f32 %v863_v38, 0.0  ;;  %v866_v44 = vpop.f32.mrb[82].mxu1 }
 0x226   : > { %v867_v7 = vadd.f32 %v866_v44, %v3234_v60  ;;  %v868_v13 = vpop.f32.mrb[83].mxu1 }
 0x227   : > { %v869_v31 = vadd.f32 %v868_v13, %v3238_v14  ;;  %1640 = vmatprep.mubr.f32.mxu0 %v1038_v39 }
 0x228   : > { %1641 = vmatmul.mubr.f32.gmra.mrb[16].mxu0 %v1037_v58  ;;  %v1041_v46 = vmax.f32 %v867_v7, 0.0 }
 0x229   : > { %v1042_v18 = vmax.f32 %v869_v31, 0.0  ;;  %v872_v32 = vpop.f32.mrb[84].mxu1 }
 0x22a   : > { %v873_v52 = vadd.f32 %v872_v32, %v3234_v60  ;;  %v874_v53 = vpop.f32.mrb[85].mxu1 }
 0x22b   : > { %v875_v57 = vadd.f32 %v874_v53, %v3238_v14  ;;  %1646 = vmatprep.mubr.f32.mxu0 %v1042_v18 }
 0x22c   : > { %1647 = vmatmul.mubr.f32.gmra.mrb[18].mxu0 %v1041_v46  ;;  %v1045_v59 = vmax.f32 %v873_v52, 0.0 }
 0x22d   : > { %v1046_v8 = vmax.f32 %v875_v57, 0.0  ;;  %v878_v10 = vpop.f32.mrb[86].mxu1 }
 0x22e   : > { %v879_v27 = vadd.f32 %v878_v10, %v3234_v60  ;;  %v880_v49 = vpop.f32.mrb[87].mxu1 }
 0x22f   : > { %v881_v48 = vadd.f32 %v880_v49, %v3238_v14  ;;  %1652 = vmatprep.mubr.f32.mxu0 %v1046_v8 }
 0x230   : > { %1653 = vmatmul.mubr.f32.gmra.mrb[20].mxu0 %v1045_v59  ;;  %v1049_v55 = vmax.f32 %v879_v27, 0.0 }
 0x231   : > { %v1050_v30 = vmax.f32 %v881_v48, 0.0  ;;  %v884_v33 = vpop.f32.mrb[88].mxu1 }
 0x232   : > { %v885_v29 = vadd.f32 %v884_v33, %v3234_v60  ;;  %v886_v62 = vpop.f32.mrb[89].mxu1 }
 0x233   : > { %v887_v15 = vadd.f32 %v886_v62, %v3238_v14  ;;  %1658 = vmatprep.mubr.f32.mxu0 %v1050_v30 }
 0x234   : > { %1659 = vmatmul.mubr.f32.gmra.mrb[22].mxu0 %v1049_v55  ;;  %v1053_v28 = vmax.f32 %v885_v29, 0.0 }
 0x235   : > { %v1054_v20 = vmax.f32 %v887_v15, 0.0  ;;  %v890_v50 = vpop.f32.mrb[90].mxu1 }
 0x236   : > { %v891_v34 = vadd.f32 %v890_v50, %v3234_v60  ;;  %v892_v45 = vpop.f32.mrb[91].mxu1 }
 0x237   : > { %v893_v36 = vadd.f32 %v892_v45, %v3238_v14  ;;  %1664 = vmatprep.mubr.f32.mxu0 %v1054_v20 }
 0x238   : > { %1665 = vmatmul.mubr.f32.gmra.mrb[24].mxu0 %v1053_v28  ;;  %v1057_v63 = vmax.f32 %v891_v34, 0.0 }
 0x239   : > { %v1058_v47 = vmax.f32 %v893_v36, 0.0  ;;  %v896_v56 = vpop.f32.mrb[92].mxu1 }
 0x23a   : > { %v897_v2 = vadd.f32 %v896_v56, %v3234_v60  ;;  %v898_v16 = vpop.f32.mrb[93].mxu1 }
 0x23b   : > { %v899_v21 = vadd.f32 %v898_v16, %v3238_v14  ;;  %1670 = vmatprep.mubr.f32.mxu0 %v1058_v47 }
 0x23c   : > { %1671 = vmatmul.mubr.f32.gmra.mrb[26].mxu0 %v1057_v63  ;;  %v1061_v0 = vmax.f32 %v897_v2, 0.0 }
 0x23d   : > { %v1062_v35 = vmax.f32 %v899_v21, 0.0  ;;  %v902_v37 = vpop.f32.mrb[94].mxu1 }
 0x23e   : > { %v903_v54 = vadd.f32 %v902_v37, %v3234_v60  ;;  %v904_v61 = vpop.f32.mrb[95].mxu1 }
 0x23f   : > { %v905_v12 = vadd.f32 %v904_v61, %v3238_v14  ;;  %1676 = vmatprep.mubr.f32.mxu0 %v1062_v35 }
 0x240   : > { %1677 = vmatmul.mubr.f32.gmra.mrb[28].mxu0 %v1061_v0  ;;  %v1065_v23 = vmax.f32 %v903_v54, 0.0 }
 0x241   : > { %v1066_v22 = vmax.f32 %v905_v12, 0.0  ;;  %v908_v4 = vpop.f32.mrb[96].mxu1 }
 0x242   : > { %v909_v41 = vadd.f32 %v908_v4, %v3234_v60  ;;  %v910_v24 = vpop.f32.mrb[97].mxu1 }
 0x243   : > { %v911_v1 = vadd.f32 %v910_v24, %v3238_v14  ;;  %1682 = vmatprep.mubr.f32.mxu0 %v1066_v22 }
 0x244   : > { %1683 = vmatmul.mubr.f32.gmra.mrb[30].mxu0 %v1065_v23  ;;  %v1069_v5 = vmax.f32 %v909_v41, 0.0 }
 0x245   : > { %v1070_v3 = vmax.f32 %v911_v1, 0.0  ;;  %v914_v9 = vpop.f32.mrb[98].mxu1 }
 0x246   : > { %v915_v11 = vadd.f32 %v914_v9, %v3234_v60  ;;  %v916_v17 = vpop.f32.mrb[99].mxu1 }
 0x247   : > { %v917_v19 = vadd.f32 %v916_v17, %v3238_v14  ;;  %1688 = vmatprep.mubr.f32.mxu0 %v1070_v3 }
 0x248   : > { %1689 = vmatmul.mubr.f32.gmra.mrb[32].mxu0 %v1069_v5  ;;  %v1073_v25 = vmax.f32 %v915_v11, 0.0 }
 0x249   : > { %v1074_v42 = vmax.f32 %v917_v19, 0.0  ;;  %v920_v6 = vpop.f32.mrb[100].mxu1 }
 0x24a   : > { %v921_v26 = vadd.f32 %v920_v6, %v3234_v60  ;;  %v922_v38 = vpop.f32.mrb[101].mxu1 }
 0x24b   : > { %v923_v39 = vadd.f32 %v922_v38, %v3238_v14  ;;  %1694 = vmatprep.mubr.f32.mxu0 %v1074_v42 }
 0x24c   : > { %1695 = vmatmul.mubr.f32.gmra.mrb[34].mxu0 %v1073_v25  ;;  %v1077_v7 = vmax.f32 %v921_v26, 0.0 }
 0x24d   : > { %v1078_v44 = vmax.f32 %v923_v39, 0.0  ;;  %v926_v58 = vpop.f32.mrb[102].mxu1 }
 0x24e   : > { %v927_v13 = vadd.f32 %v926_v58, %v3234_v60  ;;  %v928_v31 = vpop.f32.mrb[103].mxu1 }
 0x24f   : > { %v929_v18 = vadd.f32 %v928_v31, %v3238_v14  ;;  %1700 = vmatprep.mubr.f32.mxu0 %v1078_v44 }
 0x250   : > { %1701 = vmatmul.mubr.f32.gmra.mrb[36].mxu0 %v1077_v7  ;;  %v1081_v52 = vmax.f32 %v927_v13, 0.0 }
 0x251   : > { %v1082_v32 = vmax.f32 %v929_v18, 0.0  ;;  %v932_v46 = vpop.f32.mrb[104].mxu1 }
 0x252   : > { %v933_v53 = vadd.f32 %v932_v46, %v3234_v60  ;;  %v934_v57 = vpop.f32.mrb[105].mxu1 }
 0x253   : > { %v935_v8 = vadd.f32 %v934_v57, %v3238_v14  ;;  %1706 = vmatprep.mubr.f32.mxu0 %v1082_v32 }
 0x254   : > { %1707 = vmatmul.mubr.f32.gmra.mrb[38].mxu0 %v1081_v52  ;;  %v1085_v27 = vmax.f32 %v933_v53, 0.0 }
 0x255   : > { %v1086_v10 = vmax.f32 %v935_v8, 0.0  ;;  %v938_v59 = vpop.f32.mrb[106].mxu1 }
 0x256   : > { %v939_v49 = vadd.f32 %v938_v59, %v3234_v60  ;;  %v940_v48 = vpop.f32.mrb[107].mxu1 }
 0x257   : > { %v941_v30 = vadd.f32 %v940_v48, %v3238_v14  ;;  %1712 = vmatprep.mubr.f32.mxu0 %v1086_v10 }
 0x258   : > { %1713 = vmatmul.mubr.f32.gmra.mrb[40].mxu0 %v1085_v27  ;;  %v1089_v29 = vmax.f32 %v939_v49, 0.0 }
 0x259   : > { %v1090_v33 = vmax.f32 %v941_v30, 0.0  ;;  %v944_v55 = vpop.f32.mrb[108].mxu1 }
 0x25a   : > { %v945_v62 = vadd.f32 %v944_v55, %v3234_v60  ;;  %v946_v15 = vpop.f32.mrb[109].mxu1 }
 0x25b   : > { %v947_v20 = vadd.f32 %v946_v15, %v3238_v14  ;;  %1718 = vmatprep.mubr.f32.mxu0 %v1090_v33 }
 0x25c   : > { %1719 = vmatmul.mubr.f32.gmra.mrb[42].mxu0 %v1089_v29  ;;  %v1093_v34 = vmax.f32 %v945_v62, 0.0  ;;  %v1259_v62 = vld [vmem:[%s3502_s4] sm:$0x3] }
 0x25d   : > { %v1094_v50 = vmax.f32 %v947_v20, 0.0  ;;  %v950_v28 = vpop.f32.mrb[110].mxu1  ;;  %v3309_v15 = vrot.slane %v1259_v62, %v471_v43 }
 0x25e   : > { %v951_v45 = vadd.f32 %v950_v28, %v3234_v60  ;;  %v952_v36 = vpop.f32.mrb[111].mxu1 }
 0x25f   : > { %v953_v47 = vadd.f32 %v952_v36, %v3238_v14  ;;  %1724 = vmatprep.mubr.f32.mxu0 %v1094_v50 }
 0x260   : > { %1725 = vmatmul.mubr.f32.gmra.mrb[44].mxu0 %v1093_v34  ;;  %v1097_v2 = vmax.f32 %v951_v45, 0.0 }
 0x261   : > { %v1098_v56 = vmax.f32 %v953_v47, 0.0  ;;  %v956_v63 = vpop.f32.mrb[112].mxu1 }
 0x262   : > { %v957_v16 = vadd.f32 %v956_v63, %v3234_v60  ;;  %v958_v21 = vpop.f32.mrb[113].mxu1 }
 0x263   : > { %v959_v35 = vadd.f32 %v958_v21, %v3238_v14  ;;  %1730 = vmatprep.mubr.f32.mxu0 %v1098_v56 }
 0x264   : > { %1731 = vmatmul.mubr.f32.gmra.mrb[46].mxu0 %v1097_v2  ;;  %v1101_v54 = vmax.f32 %v957_v16, 0.0 }
 0x265   : > { %v1102_v37 = vmax.f32 %v959_v35, 0.0  ;;  %v962_v0 = vpop.f32.mrb[114].mxu1 }
 0x266   : > { %v963_v61 = vadd.f32 %v962_v0, %v3234_v60  ;;  %v964_v12 = vpop.f32.mrb[115].mxu1 }
 0x267   : > { %v965_v22 = vadd.f32 %v964_v12, %v3238_v14  ;;  %1736 = vmatprep.mubr.f32.mxu0 %v1102_v37 }
 0x268   : > { %1737 = vmatmul.mubr.f32.gmra.mrb[48].mxu0 %v1101_v54  ;;  %v1105_v41 = vmax.f32 %v963_v61, 0.0 }
 0x269   : > { %v1106_v4 = vmax.f32 %v965_v22, 0.0  ;;  %v968_v23 = vpop.f32.mrb[116].mxu1 }
 0x26a   : > { %v969_v24 = vadd.f32 %v968_v23, %v3234_v60  ;;  %v970_v1 = vpop.f32.mrb[117].mxu1 }
 0x26b   : > { %v971_v3 = vadd.f32 %v970_v1, %v3238_v14  ;;  %1742 = vmatprep.mubr.f32.mxu0 %v1106_v4 }
 0x26c   : > { %1743 = vmatmul.mubr.f32.gmra.mrb[50].mxu0 %v1105_v41  ;;  %v1109_v11 = vmax.f32 %v969_v24, 0.0 }
 0x26d   : > { %v1110_v9 = vmax.f32 %v971_v3, 0.0  ;;  %v974_v5 = vpop.f32.mrb[118].mxu1 }
 0x26e   : > { %v975_v17 = vadd.f32 %v974_v5, %v3234_v60  ;;  %v976_v19 = vpop.f32.mrb[119].mxu1 }
 0x26f   : > { %v977_v42 = vadd.f32 %v976_v19, %v3238_v14  ;;  %1748 = vmatprep.mubr.f32.mxu0 %v1110_v9 }
 0x270   : > { %1749 = vmatmul.mubr.f32.gmra.mrb[52].mxu0 %v1109_v11  ;;  %v1113_v26 = vmax.f32 %v975_v17, 0.0 }
 0x271   : > { %v1114_v6 = vmax.f32 %v977_v42, 0.0  ;;  %v980_v25 = vpop.f32.mrb[120].mxu1 }
 0x272   : > { %v981_v38 = vadd.f32 %v980_v25, %v3234_v60  ;;  %v982_v39 = vpop.f32.mrb[121].mxu1 }
 0x273   : > { %v983_v44 = vadd.f32 %v982_v39, %v3238_v14  ;;  %1754 = vmatprep.mubr.f32.mxu0 %v1114_v6 }
 0x274   : > { %1755 = vmatmul.mubr.f32.gmra.mrb[54].mxu0 %v1113_v26  ;;  %v1117_v13 = vmax.f32 %v981_v38, 0.0 }
 0x275   : > { %v1118_v58 = vmax.f32 %v983_v44, 0.0  ;;  %v986_v7 = vpop.f32.mrb[122].mxu1 }
 0x276   : > { %v987_v31 = vadd.f32 %v986_v7, %v3234_v60  ;;  %v988_v18 = vpop.f32.mrb[123].mxu1 }
 0x277   : > { %v989_v32 = vadd.f32 %v988_v18, %v3238_v14  ;;  %1760 = vmatprep.mubr.f32.mxu0 %v1118_v58 }
 0x278   : > { %1761 = vmatmul.mubr.f32.gmra.mrb[56].mxu0 %v1117_v13  ;;  %v1121_v53 = vmax.f32 %v987_v31, 0.0 }
 0x279   : > { %v1122_v46 = vmax.f32 %v989_v32, 0.0  ;;  %v992_v52 = vpop.f32.mrb[124].mxu1 }
 0x27a   : > { %v993_v57 = vadd.f32 %v992_v52, %v3234_v60  ;;  %v994_v8 = vpop.f32.mrb[125].mxu1 }
 0x27b   : > { %v995_v10 = vadd.f32 %v994_v8, %v3238_v14  ;;  %1766 = vmatprep.mubr.f32.mxu0 %v1122_v46 }
 0x27c   : > { %1767 = vmatmul.mubr.f32.gmra.mrb[58].mxu0 %v1121_v53  ;;  %v1125_v49 = vmax.f32 %v993_v57, 0.0 }
 0x27d   : > { %v1126_v59 = vmax.f32 %v995_v10, 0.0  ;;  %v998_v27 = vpop.f32.mrb[126].mxu1 }
 0x27e   : > { %v999_v48 = vadd.f32 %v998_v27, %v3234_v60  ;;  %v1000_v30 = vpop.f32.mrb[127].mxu1  ;;  %v3313_v60 = vrot.slane %v1259_v62, %v475_v51 }
 0x27f   : > { %v1001_v33 = vadd.f32 %v1000_v30, %v3238_v14  ;;  %1772 = vmatprep.mubr.f32.mxu0 %v1126_v59 }
 0x280   : > { %1773 = vmatmul.mubr.f32.gmra.mrb[60].mxu0 %v1125_v49  ;;  %v1129_v29 = vmax.f32 %v999_v48, 0.0 }
 0x281   : > { %v1130_v55 = vmax.f32 %v1001_v33, 0.0 }
 0x283   : > { %1778 = vmatprep.mubr.f32.mxu0 %v1130_v55 }
 0x284   : > { %1779 = vmatmul.mubr.f32.gmra.mrb[62].mxu0 %v1129_v29 }
 0x2db   : > { %v1594_v20 = vpop.f32.mrb[0].mxu0 }
 0x2dc   : > { %v2236_v14 = vadd.f32 %v1594_v20, %v3309_v15  ;;  %v1596_v50 = vpop.f32.mrb[1].mxu0 }
 0x2dd   : > { %v2237_v28 = vadd.f32 %v1596_v50, %v3313_v60 }
 0x2de   : > { %1785 = vst [vmem:[%s3319_s10] sm:$0xff] %v2236_v14 }
 0x2df   : > { %1786 = vst [vmem:[%s3319_s10 + $0x8] sm:$0xff] %v2237_v28  ;;  %v1600_v40 = vpop.f32.mrb[2].mxu0 }
 0x2e0   : > { %v2238_v43 = vadd.f32 %v1600_v40, %v3309_v15  ;;  %v1602_v51 = vpop.f32.mrb[3].mxu0 }
 0x2e1   : > { %v2239_v34 = vadd.f32 %v1602_v51, %v3313_v60 }
 0x2e2   : > { %1787 = vst [vmem:[%s3319_s10 + $0x10] sm:$0xff] %v2238_v43 }
 0x2e3   : > { %1788 = vst [vmem:[%s3319_s10 + $0x18] sm:$0xff] %v2239_v34  ;;  %v1606_v45 = vpop.f32.mrb[4].mxu0 }
 0x2e4   : > { %v2240_v36 = vadd.f32 %v1606_v45, %v3309_v15  ;;  %v1608_v47 = vpop.f32.mrb[5].mxu0 }
 0x2e5   : > { %v2241_v56 = vadd.f32 %v1608_v47, %v3313_v60 }
 0x2e6   : > { %1789 = vst [vmem:[%s3319_s10 + $0x20] sm:$0xff] %v2240_v36 }
 0x2e7   : > { %1790 = vst [vmem:[%s3319_s10 + $0x28] sm:$0xff] %v2241_v56  ;;  %v1612_v63 = vpop.f32.mrb[6].mxu0 }
 0x2e8   : > { %v2242_v2 = vadd.f32 %v1612_v63, %v3309_v15  ;;  %v1614_v16 = vpop.f32.mrb[7].mxu0 }
 0x2e9   : > { %v2243_v21 = vadd.f32 %v1614_v16, %v3313_v60 }
 0x2ea   : > { %1791 = vst [vmem:[%s3319_s10 + $0x30] sm:$0xff] %v2242_v2 }
 0x2eb   : > { %1792 = vst [vmem:[%s3319_s10 + $0x38] sm:$0xff] %v2243_v21  ;;  %v1618_v35 = vpop.f32.mrb[8].mxu0 }
 0x2ec   : > { %v2244_v37 = vadd.f32 %v1618_v35, %v3309_v15  ;;  %v1620_v0 = vpop.f32.mrb[9].mxu0 }
 0x2ed   : > { %v2245_v54 = vadd.f32 %v1620_v0, %v3313_v60 }
 0x2ee   : > { %1793 = vst [vmem:[%s3319_s10 + $0x40] sm:$0xff] %v2244_v37 }
 0x2ef   : > { %1794 = vst [vmem:[%s3319_s10 + $0x48] sm:$0xff] %v2245_v54  ;;  %v1624_v61 = vpop.f32.mrb[10].mxu0 }
 0x2f0   : > { %v2246_v12 = vadd.f32 %v1624_v61, %v3309_v15  ;;  %v1626_v22 = vpop.f32.mrb[11].mxu0 }
 0x2f1   : > { %v2247_v4 = vadd.f32 %v1626_v22, %v3313_v60 }
 0x2f2   : > { %1795 = vst [vmem:[%s3319_s10 + $0x50] sm:$0xff] %v2246_v12 }
 0x2f3   : > { %1796 = vst [vmem:[%s3319_s10 + $0x58] sm:$0xff] %v2247_v4  ;;  %v1630_v23 = vpop.f32.mrb[12].mxu0 }
 0x2f4   : > { %v2248_v41 = vadd.f32 %v1630_v23, %v3309_v15  ;;  %v1632_v24 = vpop.f32.mrb[13].mxu0 }
 0x2f5   : > { %v2249_v1 = vadd.f32 %v1632_v24, %v3313_v60 }
 0x2f6   : > { %1797 = vst [vmem:[%s3319_s10 + $0x60] sm:$0xff] %v2248_v41 }
 0x2f7   : > { %1798 = vst [vmem:[%s3319_s10 + $0x68] sm:$0xff] %v2249_v1  ;;  %v1636_v3 = vpop.f32.mrb[14].mxu0 }
 0x2f8   : > { %v2250_v9 = vadd.f32 %v1636_v3, %v3309_v15  ;;  %v1638_v5 = vpop.f32.mrb[15].mxu0 }
 0x2f9   : > { %v2251_v11 = vadd.f32 %v1638_v5, %v3313_v60 }
 0x2fa   : > { %1799 = vst [vmem:[%s3319_s10 + $0x70] sm:$0xff] %v2250_v9 }
 0x2fb   : > { %1800 = vst [vmem:[%s3319_s10 + $0x78] sm:$0xff] %v2251_v11  ;;  %v1642_v17 = vpop.f32.mrb[16].mxu0 }
 0x2fc   : > { %v2252_v19 = vadd.f32 %v1642_v17, %v3309_v15  ;;  %v1644_v42 = vpop.f32.mrb[17].mxu0 }
 0x2fd   : > { %v2253_v6 = vadd.f32 %v1644_v42, %v3313_v60 }
 0x2fe   : > { %1801 = vst [vmem:[%s3319_s10 + $0x80] sm:$0xff] %v2252_v19 }
 0x2ff   : > { %1802 = vst [vmem:[%s3319_s10 + $0x88] sm:$0xff] %v2253_v6  ;;  %v1648_v25 = vpop.f32.mrb[18].mxu0 }
 0x300   : > { %v2254_v26 = vadd.f32 %v1648_v25, %v3309_v15  ;;  %v1650_v38 = vpop.f32.mrb[19].mxu0 }
 0x301   : > { %v2255_v39 = vadd.f32 %v1650_v38, %v3313_v60 }
 0x302   : > { %1803 = vst [vmem:[%s3319_s10 + $0x90] sm:$0xff] %v2254_v26 }
 0x303   : > { %1804 = vst [vmem:[%s3319_s10 + $0x98] sm:$0xff] %v2255_v39  ;;  %v1654_v44 = vpop.f32.mrb[20].mxu0 }
 0x304   : > { %v2256_v58 = vadd.f32 %v1654_v44, %v3309_v15  ;;  %v1656_v7 = vpop.f32.mrb[21].mxu0 }
 0x305   : > { %v2257_v13 = vadd.f32 %v1656_v7, %v3313_v60 }
 0x306   : > { %1805 = vst [vmem:[%s3319_s10 + $0xa0] sm:$0xff] %v2256_v58 }
 0x307   : > { %1806 = vst [vmem:[%s3319_s10 + $0xa8] sm:$0xff] %v2257_v13  ;;  %v1660_v31 = vpop.f32.mrb[22].mxu0 }
 0x308   : > { %v2258_v18 = vadd.f32 %v1660_v31, %v3309_v15  ;;  %v1662_v32 = vpop.f32.mrb[23].mxu0 }
 0x309   : > { %v2259_v46 = vadd.f32 %v1662_v32, %v3313_v60 }
 0x30a   : > { %1807 = vst [vmem:[%s3319_s10 + $0xb0] sm:$0xff] %v2258_v18 }
 0x30b   : > { %1808 = vst [vmem:[%s3319_s10 + $0xb8] sm:$0xff] %v2259_v46  ;;  %v1666_v52 = vpop.f32.mrb[24].mxu0 }
 0x30c   : > { %v2260_v53 = vadd.f32 %v1666_v52, %v3309_v15  ;;  %v1668_v57 = vpop.f32.mrb[25].mxu0 }
 0x30d   : > { %v2261_v8 = vadd.f32 %v1668_v57, %v3313_v60 }
 0x30e   : > { %1809 = vst [vmem:[%s3319_s10 + $0xc0] sm:$0xff] %v2260_v53 }
 0x30f   : > { %1810 = vst [vmem:[%s3319_s10 + $0xc8] sm:$0xff] %v2261_v8  ;;  %v1672_v10 = vpop.f32.mrb[26].mxu0 }
 0x310   : > { %v2262_v59 = vadd.f32 %v1672_v10, %v3309_v15  ;;  %v1674_v27 = vpop.f32.mrb[27].mxu0 }
 0x311   : > { %v2263_v49 = vadd.f32 %v1674_v27, %v3313_v60 }
 0x312   : > { %1811 = vst [vmem:[%s3319_s10 + $0xd0] sm:$0xff] %v2262_v59 }
 0x313   : > { %1812 = vst [vmem:[%s3319_s10 + $0xd8] sm:$0xff] %v2263_v49  ;;  %v1678_v48 = vpop.f32.mrb[28].mxu0 }
 0x314   : > { %v2264_v30 = vadd.f32 %v1678_v48, %v3309_v15  ;;  %v1680_v33 = vpop.f32.mrb[29].mxu0 }
 0x315   : > { %v2265_v55 = vadd.f32 %v1680_v33, %v3313_v60 }
 0x316   : > { %1813 = vst [vmem:[%s3319_s10 + $0xe0] sm:$0xff] %v2264_v30 }
 0x317   : > { %1814 = vst [vmem:[%s3319_s10 + $0xe8] sm:$0xff] %v2265_v55  ;;  %v1684_v29 = vpop.f32.mrb[30].mxu0 }
 0x318   : > { %v2266_v62 = vadd.f32 %v1684_v29, %v3309_v15  ;;  %v1686_v20 = vpop.f32.mrb[31].mxu0 }
 0x319   : > { %v2267_v14 = vadd.f32 %v1686_v20, %v3313_v60 }
 0x31a   : > { %1815 = vst [vmem:[%s3319_s10 + $0xf0] sm:$0xff] %v2266_v62 }
 0x31b   : > { %1816 = vst [vmem:[%s3319_s10 + $0xf8] sm:$0xff] %v2267_v14  ;;  %v1690_v50 = vpop.f32.mrb[32].mxu0 }
 0x31c   : > { %v2268_v28 = vadd.f32 %v1690_v50, %v3309_v15  ;;  %v1692_v40 = vpop.f32.mrb[33].mxu0 }
 0x31d   : > { %v2269_v43 = vadd.f32 %v1692_v40, %v3313_v60 }
 0x31e   : > { %1817 = vst [vmem:[%s3319_s10 + $0x100] sm:$0xff] %v2268_v28 }
 0x31f   : > { %1818 = vst [vmem:[%s3319_s10 + $0x108] sm:$0xff] %v2269_v43  ;;  %v1696_v51 = vpop.f32.mrb[34].mxu0 }
 0x320   : > { %v2270_v34 = vadd.f32 %v1696_v51, %v3309_v15  ;;  %v1698_v45 = vpop.f32.mrb[35].mxu0 }
 0x321   : > { %v2271_v36 = vadd.f32 %v1698_v45, %v3313_v60 }
 0x322   : > { %1819 = vst [vmem:[%s3319_s10 + $0x110] sm:$0xff] %v2270_v34 }
 0x323   : > { %1820 = vst [vmem:[%s3319_s10 + $0x118] sm:$0xff] %v2271_v36  ;;  %v1702_v47 = vpop.f32.mrb[36].mxu0 }
 0x324   : > { %v2272_v56 = vadd.f32 %v1702_v47, %v3309_v15  ;;  %v1704_v63 = vpop.f32.mrb[37].mxu0 }
 0x325   : > { %v2273_v2 = vadd.f32 %v1704_v63, %v3313_v60 }
 0x326   : > { %1821 = vst [vmem:[%s3319_s10 + $0x120] sm:$0xff] %v2272_v56 }
 0x327   : > { %1822 = vst [vmem:[%s3319_s10 + $0x128] sm:$0xff] %v2273_v2  ;;  %v1708_v16 = vpop.f32.mrb[38].mxu0 }
 0x328   : > { %v2274_v21 = vadd.f32 %v1708_v16, %v3309_v15  ;;  %v1710_v35 = vpop.f32.mrb[39].mxu0 }
 0x329   : > { %v2275_v37 = vadd.f32 %v1710_v35, %v3313_v60 }
 0x32a   : > { %1823 = vst [vmem:[%s3319_s10 + $0x130] sm:$0xff] %v2274_v21 }
 0x32b   : > { %1824 = vst [vmem:[%s3319_s10 + $0x138] sm:$0xff] %v2275_v37  ;;  %v1714_v0 = vpop.f32.mrb[40].mxu0 }
 0x32c   : > { %v2276_v54 = vadd.f32 %v1714_v0, %v3309_v15  ;;  %v1716_v61 = vpop.f32.mrb[41].mxu0 }
 0x32d   : > { %v2277_v12 = vadd.f32 %v1716_v61, %v3313_v60 }
 0x32e   : > { %1825 = vst [vmem:[%s3319_s10 + $0x140] sm:$0xff] %v2276_v54 }
 0x32f   : > { %1826 = vst [vmem:[%s3319_s10 + $0x148] sm:$0xff] %v2277_v12  ;;  %v1720_v22 = vpop.f32.mrb[42].mxu0 }
 0x330   : > { %v2278_v4 = vadd.f32 %v1720_v22, %v3309_v15  ;;  %v1722_v23 = vpop.f32.mrb[43].mxu0 }
 0x331   : > { %v2279_v41 = vadd.f32 %v1722_v23, %v3313_v60 }
 0x332   : > { %1827 = vst [vmem:[%s3319_s10 + $0x150] sm:$0xff] %v2278_v4 }
 0x333   : > { %1828 = vst [vmem:[%s3319_s10 + $0x158] sm:$0xff] %v2279_v41  ;;  %v1726_v24 = vpop.f32.mrb[44].mxu0 }
 0x334   : > { %v2280_v1 = vadd.f32 %v1726_v24, %v3309_v15  ;;  %v1728_v3 = vpop.f32.mrb[45].mxu0 }
 0x335   : > { %v2281_v9 = vadd.f32 %v1728_v3, %v3313_v60 }
 0x336   : > { %1829 = vst [vmem:[%s3319_s10 + $0x160] sm:$0xff] %v2280_v1 }
 0x337   : > { %1830 = vst [vmem:[%s3319_s10 + $0x168] sm:$0xff] %v2281_v9  ;;  %v1732_v5 = vpop.f32.mrb[46].mxu0 }
 0x338   : > { %v2282_v11 = vadd.f32 %v1732_v5, %v3309_v15  ;;  %v1734_v17 = vpop.f32.mrb[47].mxu0 }
 0x339   : > { %v2283_v19 = vadd.f32 %v1734_v17, %v3313_v60 }
 0x33a   : > { %1831 = vst [vmem:[%s3319_s10 + $0x170] sm:$0xff] %v2282_v11 }
 0x33b   : > { %1832 = vst [vmem:[%s3319_s10 + $0x178] sm:$0xff] %v2283_v19  ;;  %v1738_v42 = vpop.f32.mrb[48].mxu0 }
 0x33c   : > { %v2284_v6 = vadd.f32 %v1738_v42, %v3309_v15  ;;  %v1740_v25 = vpop.f32.mrb[49].mxu0 }
 0x33d   : > { %v2285_v26 = vadd.f32 %v1740_v25, %v3313_v60 }
 0x33e   : > { %1833 = vst [vmem:[%s3319_s10 + $0x180] sm:$0xff] %v2284_v6 }
 0x33f   : > { %1834 = vst [vmem:[%s3319_s10 + $0x188] sm:$0xff] %v2285_v26  ;;  %v1744_v38 = vpop.f32.mrb[50].mxu0 }
 0x340   : > { %v2286_v39 = vadd.f32 %v1744_v38, %v3309_v15  ;;  %v1746_v44 = vpop.f32.mrb[51].mxu0 }
 0x341   : > { %v2287_v58 = vadd.f32 %v1746_v44, %v3313_v60 }
 0x342   : > { %1835 = vst [vmem:[%s3319_s10 + $0x190] sm:$0xff] %v2286_v39 }
 0x343   : > { %1836 = vst [vmem:[%s3319_s10 + $0x198] sm:$0xff] %v2287_v58  ;;  %v1750_v7 = vpop.f32.mrb[52].mxu0 }
 0x344   : > { %v2288_v13 = vadd.f32 %v1750_v7, %v3309_v15  ;;  %v1752_v31 = vpop.f32.mrb[53].mxu0 }
 0x345   : > { %v2289_v18 = vadd.f32 %v1752_v31, %v3313_v60 }
 0x346   : > { %1837 = vst [vmem:[%s3319_s10 + $0x1a0] sm:$0xff] %v2288_v13 }
 0x347   : > { %1838 = vst [vmem:[%s3319_s10 + $0x1a8] sm:$0xff] %v2289_v18  ;;  %v1756_v32 = vpop.f32.mrb[54].mxu0 }
 0x348   : > { %v2290_v46 = vadd.f32 %v1756_v32, %v3309_v15  ;;  %v1758_v52 = vpop.f32.mrb[55].mxu0 }
 0x349   : > { %v2291_v53 = vadd.f32 %v1758_v52, %v3313_v60 }
 0x34a   : > { %1839 = vst [vmem:[%s3319_s10 + $0x1b0] sm:$0xff] %v2290_v46 }
 0x34b   : > { %1840 = vst [vmem:[%s3319_s10 + $0x1b8] sm:$0xff] %v2291_v53  ;;  %v1762_v57 = vpop.f32.mrb[56].mxu0 }
 0x34c   : > { %v2292_v8 = vadd.f32 %v1762_v57, %v3309_v15  ;;  %v1764_v10 = vpop.f32.mrb[57].mxu0 }
 0x34d   : > { %v2293_v59 = vadd.f32 %v1764_v10, %v3313_v60 }
 0x34e   : > { %1841 = vst [vmem:[%s3319_s10 + $0x1c0] sm:$0xff] %v2292_v8 }
 0x34f   : > { %1842 = vst [vmem:[%s3319_s10 + $0x1c8] sm:$0xff] %v2293_v59  ;;  %v1768_v27 = vpop.f32.mrb[58].mxu0 }
 0x350   : > { %v2294_v49 = vadd.f32 %v1768_v27, %v3309_v15  ;;  %v1770_v48 = vpop.f32.mrb[59].mxu0 }
 0x351   : > { %v2295_v30 = vadd.f32 %v1770_v48, %v3313_v60 }
 0x352   : > { %1843 = vst [vmem:[%s3319_s10 + $0x1d0] sm:$0xff] %v2294_v49 }
 0x353   : > { %1844 = vst [vmem:[%s3319_s10 + $0x1d8] sm:$0xff] %v2295_v30  ;;  %v1774_v33 = vpop.f32.mrb[60].mxu0 }
 0x354   : > { %v2296_v55 = vadd.f32 %v1774_v33, %v3309_v15  ;;  %v1776_v29 = vpop.f32.mrb[61].mxu0 }
 0x355   : > { %v2297_v62 = vadd.f32 %v1776_v29, %v3313_v60 }
 0x356   : > { %1845 = vst [vmem:[%s3319_s10 + $0x1e0] sm:$0xff] %v2296_v55 }
 0x357   : > { %1846 = vst [vmem:[%s3319_s10 + $0x1e8] sm:$0xff] %v2297_v62  ;;  %v1780_v20 = vpop.f32.mrb[62].mxu0 }
 0x358   : > { %v2298_v14 = vadd.f32 %v1780_v20, %v3309_v15  ;;  %v1782_v50 = vpop.f32.mrb[63].mxu0 }
 0x359   : > { %v2299_v28 = vadd.f32 %v1782_v50, %v3313_v60 }
 0x35a   : > { %1847 = vst [vmem:[%s3319_s10 + $0x1f0] sm:$0xff] %v2298_v14 }
 0x35b   : > { %1848 = vst [vmem:[%s3319_s10 + $0x1f8] sm:$0xff] %v2299_v28 }
 0x35c   : > { %2536 = shalt.err (!%p2533_p2)
}
 0x35d   : > { %s2537_s14 = scalar_lea.hbm %s3449_s11, 8192  ;;  %s2541_s12 = scalar_lea.hbm %s3503_s5, 16384 }
 0x35e   : > { %p2538_p13 = scmp.ne.s32.totalorder %s3449_s11, %s2537_s14  ;;  %p2542_p4 = scmp.lt.u32.totalorder %s3449_s11, %s3503_s5 }
 0x35f   : > { %p2543_p7 = scmp.lt.u32.totalorder %s2541_s12, %s2537_s14  ;;  %p2545_p11 = scmp.lt.u32.totalorder %s2537_s14, %s3449_s11 }
 0x360   : > { %p2539_p6 = pnand %p2538_p13, %p3517_p0 }
 0x361   : > { %p2544_p8 = por %p2543_p7, %p2542_p4 }
 0x362   : > { %p2540_p10 = pneg %p2539_p6 }
 0x363   : > { %p2546_p1 = por %p2545_p11, %p2544_p8 }
 0x365   : > { %p2547_p3 = pnand %p2546_p1, %p2540_p10 }
 0x367   : > { %2550 = shalt.err (!%p2547_p3)
}
 0x368   : > { %s2603_s28 = smov 256   ;;  %s2604_s9 = smov 16  }
 0x369   : > { %2374 = dma.vmem_to_hbm [thread:$0]  (%p3517_p0), %s3451_s15, 8192, %s3449_s11, %s1850_s22, %s2603_s28, %s2603_s28, %s2604_s9  }
 0x36a PF: > { %s1879_s30 = sand.u32 1, %s2581_s18   ;;  %p3518_p5 = scmp.ne.s32.totalorder %s3508_s25, 0 }
 0x36b   : > { %p3519_p9 = scmp.ge.s32.totalorder %s2593_s21, 2  ;;  %s1880_s23 = scalar_lea.sflag [#allocation4], %s1879_s30 }
 0x36d   : > { %p2388_p12 = pnand %p3519_p9, %p3518_p5 }
 0x36f   : > { %2576 = dma.done.wait (!%p2388_p12), %s1880_s23, 8192  }
 0x370   : > { %2578 = vsyncadd (!%p2388_p12), %s1880_s23, 4294959104  ;;  %p19_p2 = scmp.ge.s32.totalorder %s2748_s16, 4   ;;  %s3520_s18 = smov %s2585_s19 }
 0x371   : > { %s3521_s19 = smov %s2589_s20  ;;  %s3522_s20 = smov %s2757_s27 }
 0x372   : > { %s3523_s21 = smov %s2748_s16  ;;  %21 = sbr.rel (!%p19_p2) target bundleno = 6 (0x6), region = 93 }
 0x379   :  { %1885 = vsyncpa [#allocation3], 1 }
 0x37a   :  { %1887 = vsyncpa [#allocation3 + $0x1], 1 }
 0x37b   :  { %1888 = vsyncpa [#allocation6], 1 }
 0x37c   :  { %1889 = vsyncpa [#allocation4], 1 }
 0x37d   :  { %1891 = vsyncpa [#allocation4 + $0x1], 1 }

</bundles_post_ra>
